<compile_context>
chip_gen: v7x
topology: tpu7x:2x2x1
jax: 0.10.0
libtpu: 0.0.40
codegen_flags: <defaults>
</compile_context>

<pallas_src>
import functools
import math

import jax
import jax.numpy as jnp
from jax.experimental import pallas as pl
from jax.experimental.pallas import tpu as pltpu


def _round_up(x, m):
    return ((x + m - 1) // m) * m


def _pad_k(k):
    tk = min(512, _round_up(k, 128))
    return _round_up(k, tk)


def _pad_n(n):
    tn = min(256, _round_up(n, 128))
    return _round_up(n, tn)


def _pick_tile(dim_p, candidates=(512, 256, 128)):
    """Largest tile from `candidates` that divides the padded dim."""
    for c in candidates:
        if dim_p % c == 0:
            return c
    return dim_p


def _pick_m_tile(m):
    if m >= 2048:
        return 512
    if m >= 256:
        return 256
    return _round_up(m, 16)


def _pick_vmem_limit():
    """Generation-aware scoped-VMEM budget.

    v7x has 64 MiB physical VMEM per TensorCore -> stay at ~30 MiB.
    v5e/v6e have 128 MiB physical -> 64 MiB unlocks deeper buffering.
    """
    try:
        cap = pltpu.get_tpu_info().vmem_capacity_bytes
        if cap >= 96 * 1024 * 1024:
            return 64 * 1024 * 1024
    except Exception:
        pass
    return 30 * 1024 * 1024


_VMEM_LIMIT = _pick_vmem_limit()


# --------------------------------------------------------------------------
# Pallas kernels
# --------------------------------------------------------------------------

def _matmul_kernel(*refs, apply_relu, has_residual):
    """Tiled (M,K)@(K,N): bf16 operands, f32 accumulation, fused bias /
    optional residual-add / ReLU in the last-k epilogue."""
    if has_residual:
        a_ref, b_ref, bias_ref, res_ref, o_ref, acc_ref = refs
    else:
        a_ref, b_ref, bias_ref, o_ref, acc_ref = refs
        res_ref = None

    @pl.when(pl.program_id(2) == 0)
    def _():
        acc_ref[...] = jnp.zeros_like(acc_ref)

    acc_ref[...] += jnp.dot(a_ref[...], b_ref[...],
                            preferred_element_type=jnp.float32)

    @pl.when(pl.program_id(2) == pl.num_programs(2) - 1)
    def _():
        out = acc_ref[...] + bias_ref[...]
        if has_residual:
            out = out + res_ref[...].astype(jnp.float32)
        if apply_relu:
            out = jnp.maximum(out, 0.0)
        o_ref[...] = out.astype(o_ref.dtype)


def pallas_matmul(a, w_p, bias_p, n_out, *, relu=False, residual=None,
                  out_dtype=jnp.bfloat16):
    """a:(M,K) x pre-padded weight (Kp,Np) + bias (1,Np); returns (M, n_out).

    If `residual` (shape (M, n_out)) is given, it is added (with the bias)
    before the ReLU inside the matmul epilogue (fused residual connection).
    """
    M, K = a.shape
    Kp, Np = w_p.shape
    tm = _pick_m_tile(M)
    Mp = _round_up(M, tm)
    tn = _pick_tile(Np)
    tk = _pick_tile(Kp)
    a_p = jnp.pad(a, ((0, Mp - M), (0, Kp - K))).astype(jnp.bfloat16)

    in_specs = [
        pl.BlockSpec((tm, tk), lambda i, j, k: (i, k)),
        pl.BlockSpec((tk, tn), lambda i, j, k: (k, j)),
        pl.BlockSpec((1, tn), lambda i, j, k: (0, j)),
    ]
    args = [a_p, w_p, bias_p]
    has_res = residual is not None
    if has_res:
        rM, rC = residual.shape
        res_p = jnp.pad(residual, ((0, Mp - rM), (0, Np - rC))).astype(jnp.bfloat16)
        in_specs.append(pl.BlockSpec((tm, tn), lambda i, j, k: (i, j)))
        args.append(res_p)

    grid = (Mp // tm, Np // tn, Kp // tk)
    out = pl.pallas_call(
        functools.partial(_matmul_kernel, apply_relu=relu, has_residual=has_res),
        out_shape=jax.ShapeDtypeStruct((Mp, Np), out_dtype),
        grid_spec=pltpu.PrefetchScalarGridSpec(
            num_scalar_prefetch=0,
            grid=grid,
            in_specs=in_specs,
            out_specs=pl.BlockSpec((tm, tn), lambda i, j, k: (i, j)),
            scratch_shapes=[pltpu.VMEM((tm, tn), jnp.float32)],
        ),
        compiler_params=pltpu.CompilerParams(
            dimension_semantics=("parallel", "parallel", "arbitrary"),
            vmem_limit_bytes=_VMEM_LIMIT),
    )(*args)
    return out[:M, :n_out]


def _grouped_matmul_kernel(a_ref, w_ref, bias_ref, o_ref, *, apply_relu):
    """One (group, m-tile) step: (tm,Kgp)@(Kgp,Cgp) on MXU, fused bias/ReLU.

    Output block is lane-dense (tm, Cgp) -> unmasked stores; padded output
    channels are sliced away outside the kernel."""
    acc = jnp.dot(a_ref[0], w_ref[0], preferred_element_type=jnp.float32)
    out = acc + bias_ref[0]
    if apply_relu:
        out = jnp.maximum(out, 0.0)
    o_ref[...] = out.astype(o_ref.dtype)


def _maxpool_kernel(x_ref, o_ref):
    o_ref[...] = jnp.max(x_ref[...], axis=0)


def _avgpool_kernel(x_ref, o_ref):
    o_ref[...] = jnp.mean(x_ref[...].astype(jnp.float32), axis=1, keepdims=True)


def _head_kernel(x_ref, w1_ref, b1_ref, w2_ref, b2_ref, o_ref):
    """Fused: Linear(n_features->h) + ReLU + Dropout(eval=identity) + Linear(h->C)."""
    h = jnp.dot(x_ref[...], w1_ref[...], preferred_element_type=jnp.float32)
    h = jnp.maximum(h + b1_ref[...], 0.0)
    # TODO(synk): training-mode Dropout(0.5) (pltpu.prng_* mask + 1/keep scale)
    # not implemented; eval-mode forward is the identity.
    out = jnp.dot(h.astype(w2_ref.dtype), w2_ref[...],
                  preferred_element_type=jnp.float32)
    o_ref[...] = (out + b2_ref[...]).astype(o_ref.dtype)


# --------------------------------------------------------------------------
# Layer wrappers (glue: im2col / padding / reshapes; compute in Pallas)
# --------------------------------------------------------------------------

def dense_conv_bn(x, layer, relu, residual=None):
    """Non-grouped Conv2d (BN folded) + optional fused residual-add + ReLU."""
    N, H, W, Cin = x.shape
    k, s, p, cout = layer['k'], layer['stride'], layer['pad'], layer['cout']
    Ho = (H + 2 * p - k) // s + 1
    Wo = (W + 2 * p - k) // s + 1
    if k == 1 and p == 0:
        xs = x if s == 1 else x[:, ::s, ::s, :]
        patches = xs.reshape(N * Ho * Wo, Cin)
    else:
        # TODO(synk): stem 7x7 im2col is still materialized in HBM (49 taps); a
        # halo-aware manual-DMA kernel (pl.ANY + make_async_copy row bands)
        # would avoid the blowup but is not expressible with BlockSpec alone.
        xp = jnp.pad(x, ((0, 0), (p, p), (p, p), (0, 0)))
        cols = [jax.lax.slice(
                    xp, (0, i, j, 0),
                    (N, i + s * (Ho - 1) + 1, j + s * (Wo - 1) + 1, Cin),
                    (1, s, s, 1))
                for i in range(k) for j in range(k)]
        patches = jnp.concatenate(cols, axis=-1).reshape(N * Ho * Wo, k * k * Cin)
    res_flat = None
    if residual is not None:
        res_flat = residual.reshape(N * Ho * Wo, cout)
    out = pallas_matmul(patches, layer['w'], layer['b'], cout,
                        relu=relu, residual=res_flat)
    return out.reshape(N, Ho, Wo, cout)


def grouped_conv_bn(x, layer, relu):
    """Grouped 3x3 Conv2d (BN folded) as ONE batched-per-group Pallas matmul
    with a lane-dense (Mp, G*Cgp) output (no post-kernel transpose)."""
    N, H, W, Cin = x.shape
    G, cing, coutg = layer['groups'], layer['cing'], layer['coutg']
    k, s, p, cout = layer['k'], layer['stride'], layer['pad'], layer['cout']
    Ho = (H + 2 * p - k) // s + 1
    Wo = (W + 2 * p - k) // s + 1
    M = N * Ho * Wo
    Kg = k * k * cing
    _, Kgp, Cgp = layer['w'].shape

    xp = jnp.pad(x, ((0, 0), (p, p), (p, p), (0, 0)))
    cols = [jax.lax.slice(
                xp, (0, i, j, 0),
                (N, i + s * (Ho - 1) + 1, j + s * (Wo - 1) + 1, Cin),
                (1, s, s, 1))
            for i in range(k) for j in range(k)]
    # (M, taps, G, Cing) -> (G, M, taps*Cing)
    # TODO(synk): group selection via index_map (keeping im2col in (M,9,G,cing))
    # needs a block with second-to-last dim 1 < G, which the (8,128) BlockSpec
    # constraint forbids, so this one input-side transpose remains.
    P = jnp.stack(cols, axis=3).reshape(M, k * k, G, cing)
    A = jnp.transpose(P, (2, 0, 1, 3)).reshape(G, M, Kg)

    tm = _pick_m_tile(M)
    Mp = _round_up(M, tm)
    A = jnp.pad(A, ((0, 0), (0, Mp - M), (0, Kgp - Kg))).astype(jnp.bfloat16)

    out = pl.pallas_call(
        functools.partial(_grouped_matmul_kernel, apply_relu=relu),
        out_shape=jax.ShapeDtypeStruct((Mp, G * Cgp), jnp.bfloat16),
        grid_spec=pltpu.PrefetchScalarGridSpec(
            num_scalar_prefetch=0,
            grid=(G, Mp // tm),          # mi fastest -> per-group weight stays resident
            in_specs=[
                pl.BlockSpec((1, tm, Kgp), lambda g, mi: (g, mi, 0)),
                pl.BlockSpec((1, Kgp, Cgp), lambda g, mi: (g, 0, 0)),
                pl.BlockSpec((1, 1, Cgp), lambda g, mi: (g, 0, 0)),
            ],
            out_specs=pl.BlockSpec((tm, Cgp), lambda g, mi: (mi, g)),
        ),
        compiler_params=pltpu.CompilerParams(
            dimension_semantics=("parallel", "parallel"),
            vmem_limit_bytes=_VMEM_LIMIT),
    )(A, layer['w'], layer['b'])

    # (Mp, G*Cgp) -> (M, cout); pure reshape when coutg == Cgp (real layer4).
    y = out[:M].reshape(M, G, Cgp)[:, :, :coutg].reshape(M, cout)
    return y.reshape(N, Ho, Wo, cout)


def conv_bn(x, layer, relu, residual=None):
    if layer['type'] == 'dense':
        return dense_conv_bn(x, layer, relu, residual=residual)
    return grouped_conv_bn(x, layer, relu)


def maxpool_3x3_s2_p1(x):
    """nn.MaxPool2d(3, stride=2, padding=1) on NHWC input, tiled over rows."""
    N, H, W, C = x.shape
    Ho = (H + 2 - 3) // 2 + 1
    Wo = (W + 2 - 3) // 2 + 1
    xp = jnp.pad(x, ((0, 0), (1, 1), (1, 1), (0, 0)), constant_values=-jnp.inf)
    views = [jax.lax.slice(
                 xp, (0, i, j, 0),
                 (N, i + 2 * (Ho - 1) + 1, j + 2 * (Wo - 1) + 1, C),
                 (1, 2, 2, 1))
             for i in range(3) for j in range(3)]
    M = N * Ho * Wo
    stk = jnp.stack(views, axis=0).reshape(9, M, C)
    Cp = _round_up(C, 128)
    tm = min(1024, _round_up(M, 16))
    Mp = _round_up(M, tm)
    stk = jnp.pad(stk, ((0, 0), (0, Mp - M), (0, Cp - C)),
                  constant_values=-jnp.inf)
    # TODO(synk): the 9-tap stack is still materialized in HBM; a halo-aware
    # in-kernel window walk would cut this to ~1 read pass.
    out = pl.pallas_call(
        _maxpool_kernel,
        out_shape=jax.ShapeDtypeStruct((Mp, Cp), x.dtype),
        grid_spec=pltpu.PrefetchScalarGridSpec(
            num_scalar_prefetch=0,
            grid=(Mp // tm,),
            in_specs=[pl.BlockSpec((9, tm, Cp), lambda i: (0, i, 0))],
            out_specs=pl.BlockSpec((tm, Cp), lambda i: (i, 0)),
        ),
        compiler_params=pltpu.CompilerParams(
            dimension_semantics=("parallel",),
            vmem_limit_bytes=_VMEM_LIMIT),
    )(stk)
    return out[:M, :C].reshape(N, Ho, Wo, C)


def global_avg_pool(x):
    """AdaptiveAvgPool2d((1,1)) + flatten on NHWC input -> (N, C) f32."""
    N, H, W, C = x.shape
    Cp = _round_up(C, 128)
    xf = jnp.pad(x.reshape(N, H * W, C), ((0, 0), (0, 0), (0, Cp - C)))
    out = pl.pallas_call(
        _avgpool_kernel,
        out_shape=jax.ShapeDtypeStruct((N, 1, Cp), jnp.float32),
        grid_spec=pltpu.PrefetchScalarGridSpec(
            num_scalar_prefetch=0,
            grid=(N,),
            in_specs=[pl.BlockSpec((1, H * W, Cp), lambda i: (i, 0, 0))],
            out_specs=pl.BlockSpec((1, 1, Cp), lambda i: (i, 0, 0)),
        ),
        compiler_params=pltpu.CompilerParams(
            dimension_semantics=("parallel",),
            vmem_limit_bytes=_VMEM_LIMIT),
    )(xf)
    return out.reshape(N, Cp)[:, :C]


def head_forward(feats, head):
    """Fused Linear -> ReLU -> Dropout(eval) -> Linear head, tiled over rows."""
    N, F = feats.shape
    Kp, Hp = head['w1'].shape
    _, Np = head['w2'].shape
    tm = 128 if N >= 128 else _round_up(N, 8)
    Mp = _round_up(N, tm)
    xf = jnp.pad(feats, ((0, Mp - N), (0, Kp - F))).astype(jnp.bfloat16)
    out = pl.pallas_call(
        _head_kernel,
        out_shape=jax.ShapeDtypeStruct((Mp, Np), jnp.float32),
        grid_spec=pltpu.PrefetchScalarGridSpec(
            num_scalar_prefetch=0,
            grid=(Mp // tm,),
            in_specs=[
                pl.BlockSpec((tm, Kp), lambda i: (i, 0)),
                pl.BlockSpec((Kp, Hp), lambda i: (0, 0)),
                pl.BlockSpec((1, Hp), lambda i: (0, 0)),
                pl.BlockSpec((Hp, Np), lambda i: (0, 0)),
                pl.BlockSpec((1, Np), lambda i: (0, 0)),
            ],
            out_specs=pl.BlockSpec((tm, Np), lambda i: (i, 0)),
        ),
        compiler_params=pltpu.CompilerParams(
            dimension_semantics=("parallel",),
            vmem_limit_bytes=_VMEM_LIMIT),
    )(xf, head['w1'], head['b1'], head['w2'], head['b2'])
    return out[:N, :head['n_classes']]


def bottleneck(x, blk):
    out = conv_bn(x, blk['conv1'], relu=True)
    out = conv_bn(out, blk['conv2'], relu=True)
    if 'down' in blk:
        identity = conv_bn(x, blk['down'], relu=False)
    else:
        identity = x
    # conv3 with the residual add + ReLU fused into its matmul epilogue.
    return conv_bn(out, blk['conv3'], relu=True, residual=identity)


def resnext_wsl_forward(prepared, x_nchw):
    x = jnp.transpose(x_nchw, (0, 2, 3, 1)).astype(jnp.bfloat16)  # NCHW -> NHWC
    x = conv_bn(x, prepared['stem'], relu=True)                   # 7x7/2 + BN + ReLU
    x = maxpool_3x3_s2_p1(x)
    for blk in prepared['blocks']:
        x = bottleneck(x, blk)
    feats = global_avg_pool(x)                                    # (N, n_features)
    return head_forward(feats, prepared['head'])


# --------------------------------------------------------------------------
# Parameters: synthetic BN-folded weights + one-time kernel-layout preparation
# --------------------------------------------------------------------------

def _fold_bn(key, cin, cout, k):
    k1, k2, k3, k4, k5 = jax.random.split(key, 5)
    fan_in = cin * k * k
    w = jax.random.normal(k1, (cout, cin, k, k), jnp.float32) / math.sqrt(fan_in)
    gamma = 1.0 + 0.1 * jax.random.normal(k2, (cout,), jnp.float32)
    beta = 0.1 * jax.random.normal(k3, (cout,), jnp.float32)
    mean = 0.1 * jax.random.normal(k4, (cout,), jnp.float32)
    var = jax.random.uniform(k5, (cout,), jnp.float32, 0.5, 1.5)
    scale = gamma / jnp.sqrt(var + 1e-5)
    return w * scale[:, None, None, None], beta - mean * scale


def make_model(key, *, inplanes=16, planes=(16, 32, 64, 128),
               layers=(1, 1, 1, 1), groups=4, width_per_group=16,
               n_classes=20, h=32):
    # Full resnext101_32x16d_wsl uses layers=(3,4,23,3), groups=32,
    # width_per_group=16, inplanes=64 (n_features=2048); this demo uses an
    # identically-structured scaled-down configuration.
    # TODO(synk): full-scale 32x16d channel widths omitted for demo runtime.
    expansion = 4
    keys = iter(jax.random.split(key, 1024))
    params = {'stem': _fold_bn(next(keys), 3, inplanes, 7)}
    blocks_cfg, layers_params = [], []
    in_c = inplanes
    for li, (p, nblocks) in enumerate(zip(planes, layers)):
        width = int(p * (width_per_group / 64.0)) * groups
        stride0 = 1 if li == 0 else 2
        layer_p, layer_c = [], []
        for bi in range(nblocks):
            stride = stride0 if bi == 0 else 1
            downsample = (stride != 1) or (in_c != p * expansion)
            bp = {}
            bp['w1'], bp['b1'] = _fold_bn(next(keys), in_c, width, 1)
            bp['w2'], bp['b2'] = _fold_bn(next(keys), width // groups, width, 3)
            bp['w3'], bp['b3'] = _fold_bn(next(keys), width, p * expansion, 1)
            if downsample:
                bp['wd'], bp['bd'] = _fold_bn(next(keys), in_c, p * expansion, 1)
            layer_p.append(bp)
            layer_c.append({'stride': stride, 'groups': groups,
                            'downsample': downsample})
            in_c = p * expansion
        layers_params.append(layer_p)
        blocks_cfg.append(layer_c)
    params['layers'] = layers_params
    n_features = in_c
    k1, k2, k3, k4 = jax.random.split(next(keys), 4)
    params['fc1'] = (
        jax.random.normal(k1, (h, n_features), jnp.float32) / math.sqrt(n_features),
        0.01 * jax.random.normal(k2, (h,), jnp.float32))
    params['fc2'] = (
        jax.random.normal(k3, (n_classes, h), jnp.float32) / math.sqrt(h),
        0.01 * jax.random.normal(k4, (n_classes,), jnp.float32))
    return params, {'blocks': blocks_cfg}


def _prep_dense(w, b, stride, pad):
    """PyTorch (Cout,Cin,kh,kw) -> padded bf16 (Kp,Np) matmul weight (one time)."""
    cout, cin, kh, kw = w.shape
    K = kh * kw * cin
    wm = jnp.transpose(w, (2, 3, 1, 0)).reshape(K, cout)
    Kp, Np = _pad_k(K), _pad_n(cout)
    wm = jnp.pad(wm, ((0, Kp - K), (0, Np - cout))).astype(jnp.bfloat16)
    bp = jnp.pad(b, (0, Np - cout)).reshape(1, Np).astype(jnp.float32)
    return {'type': 'dense', 'w': wm, 'b': bp, 'k': int(kh),
            'stride': int(stride), 'pad': int(pad), 'cout': int(cout)}


def _prep_grouped(w, b, groups, stride, pad):
    """PyTorch grouped (Cout,Cin/g,kh,kw) -> bf16 (G,Kgp,Cgp) stacked weight."""
    cout, cing, kh, kw = w.shape
    coutg = cout // groups
    Kg = kh * kw * cing
    Kgp = _round_up(Kg, 16)            # 16-aligned contraction dim (bf16 packing)
    Cgp = _round_up(coutg, 128)        # lane-dense output block
    wg = w.reshape(groups, coutg, cing, kh, kw)
    wg = jnp.transpose(wg, (0, 3, 4, 2, 1)).reshape(groups, Kg, coutg)
    wg = jnp.pad(wg, ((0, 0), (0, Kgp - Kg), (0, Cgp - coutg))).astype(jnp.bfloat16)
    bg = jnp.pad(b.reshape(groups, 1, coutg),
                 ((0, 0), (0, 0), (0, Cgp - coutg))).astype(jnp.float32)
    return {'type': 'grouped', 'w': wg, 'b': bg, 'groups': int(groups),
            'cing': int(cing), 'coutg': int(coutg), 'cout': int(cout),
            'k': int(kh), 'stride': int(stride), 'pad': int(pad)}


def _prep_head(fc1, fc2):
    w1, b1 = fc1            # (h, n_features), (h,)
    w2, b2 = fc2            # (n_classes, h), (n_classes,)
    h, F = w1.shape
    ncls = w2.shape[0]
    Kp, Hp, Np = _round_up(F, 128), _round_up(h, 128), _round_up(ncls, 128)
    w1p = jnp.pad(w1.T, ((0, Kp - F), (0, Hp - h))).astype(jnp.bfloat16)
    b1p = jnp.pad(b1, (0, Hp - h)).reshape(1, Hp).astype(jnp.float32)
    w2p = jnp.pad(w2.T, ((0, Hp - h), (0, Np - ncls))).astype(jnp.bfloat16)
    b2p = jnp.pad(b2, (0, Np - ncls)).reshape(1, Np).astype(jnp.float32)
    return {'w1': w1p, 'b1': b1p, 'w2': w2p, 'b2': b2p, 'n_classes': int(ncls)}


def prepare_params(params, cfg):
    """One-time conversion of torch-layout params to kernel-ready layout."""
    prep = {'stem': _prep_dense(params['stem'][0], params['stem'][1],
                                stride=2, pad=3)}
    blocks = []
    for layer_params, layer_cfg in zip(params['layers'], cfg['blocks']):
        for bp, bc in zip(layer_params, layer_cfg):
            blk = {
                'conv1': _prep_dense(bp['w1'], bp['b1'], stride=1, pad=0),
                'conv2': _prep_grouped(bp['w2'], bp['b2'], bc['groups'],
                                       stride=bc['stride'], pad=1),
                'conv3': _prep_dense(bp['w3'], bp['b3'], stride=1, pad=0),
            }
            if bc['downsample']:
                blk['down'] = _prep_dense(bp['wd'], bp['bd'],
                                          stride=bc['stride'], pad=0)
            blocks.append(blk)
    prep['blocks'] = blocks
    prep['head'] = _prep_head(params['fc1'], params['fc2'])
    return prep


if __name__ == "__main__":
    key = jax.random.PRNGKey(0)
    pkey, xkey = jax.random.split(key)
    raw_params, cfg = make_model(pkey, n_classes=20, h=32)
    prepared = prepare_params(raw_params, cfg)   # one-time weight layout prep
    # PyTorch-style NCHW input (batch=2, RGB, 16x16).
    x = jax.random.normal(xkey, (2, 3, 16, 16), jnp.float32)
    fwd = jax.jit(lambda inp: resnext_wsl_forward(prepared, inp))
    out = jax.block_until_ready(fwd(x))
    assert out.shape == (2, 20), out.shape
    assert jnp.all(jnp.isfinite(out))
    print("KERNEL_OK")
</pallas_src>

<mosaic_0001>
module attributes {stable_mosaic.version = 11 : i64} {
  func.func @_matmul_kernel(%arg0: i32, %arg1: i32, %arg2: i32, %arg3: memref<128x256xbf16, #tpu.memory_space<vmem>>, %arg4: memref<256x128xbf16, #tpu.memory_space<vmem>>, %arg5: memref<1x128xf32, #tpu.memory_space<vmem>>, %arg6: memref<128x128xbf16, #tpu.memory_space<vmem>>, %arg7: memref<128x128xf32, #tpu.memory_space<vmem>>) attributes {dimension_semantics = [#tpu.dimension_semantics<parallel>, #tpu.dimension_semantics<parallel>, #tpu.dimension_semantics<arbitrary>], iteration_bounds = array<i64: 1, 1, 1>, scalar_prefetch = 0 : i64, scratch_operands = 1 : i64, tpu.core_type = #tpu.core_type<tc>, window_params = [{transform_indices = @transform_0, window_bounds = array<i64: 128, 256>}, {transform_indices = @transform_1, window_bounds = array<i64: 256, 128>}, {transform_indices = @transform_2, window_bounds = array<i64: 1, 128>}, {transform_indices = @transform_3, window_bounds = array<i64: 128, 128>}]} {
    %c0_i32 = arith.constant 0 : i32
    %0 = arith.cmpi eq, %arg2, %c0_i32 : i32
    %1 = arith.extui %0 : i1 to i32
    %c0_i32_0 = arith.constant 0 : i32
    %2 = arith.cmpi ne, %1, %c0_i32_0 : i32
    scf.if %2 {
      %cst_10 = arith.constant 0.000000e+00 : f32
      %12 = vector.broadcast %cst_10 : f32 to vector<128x128xf32>
      %c0_11 = arith.constant 0 : index
      %c0_12 = arith.constant 0 : index
      %13 = vector.load %arg7[%c0_11, %c0_12] : memref<128x128xf32, #tpu.memory_space<vmem>>, vector<128x128xf32>
      tpu.vector_store %arg7[%c0_11, %c0_12], %12 {strides = array<i32>} : memref<128x128xf32, #tpu.memory_space<vmem>>, vector<128x128xf32>,
    } else {
    }
    %c0 = arith.constant 0 : index
    %c0_1 = arith.constant 0 : index
    %3 = vector.load %arg7[%c0, %c0_1] : memref<128x128xf32, #tpu.memory_space<vmem>>, vector<128x128xf32>
    %c0_2 = arith.constant 0 : index
    %c0_3 = arith.constant 0 : index
    %4 = vector.load %arg3[%c0_2, %c0_3] : memref<128x256xbf16, #tpu.memory_space<vmem>>, vector<128x256xbf16>
    %c0_4 = arith.constant 0 : index
    %c0_5 = arith.constant 0 : index
    %5 = vector.load %arg4[%c0_4, %c0_5] : memref<256x128xbf16, #tpu.memory_space<vmem>>, vector<256x128xbf16>
    %cst = arith.constant dense<0.000000e+00> : vector<128x128xf32>
    %6 = tpu.matmul %4, %5, %cst {dimension_numbers = #tpu.dot_dimension_numbers<[1], [0], [0], [1], [0, 0, 1, 1], [], []>} : vector<128x256xbf16>, vector<256x128xbf16>, vector<128x128xf32> -> vector<128x128xf32>
    %7 = arith.addf %3, %6 : vector<128x128xf32>
    %c0_6 = arith.constant 0 : index
    %c0_7 = arith.constant 0 : index
    %8 = vector.load %arg7[%c0_6, %c0_7] : memref<128x128xf32, #tpu.memory_space<vmem>>, vector<128x128xf32>
    tpu.vector_store %arg7[%c0_6, %c0_7], %7 {strides = array<i32>} : memref<128x128xf32, #tpu.memory_space<vmem>>, vector<128x128xf32>,
    %c0_i32_8 = arith.constant 0 : i32
    %9 = arith.cmpi eq, %arg2, %c0_i32_8 : i32
    %10 = arith.extui %9 : i1 to i32
    %c0_i32_9 = arith.constant 0 : i32
    %11 = arith.cmpi ne, %10, %c0_i32_9 : i32
    scf.if %11 {
      %c0_10 = arith.constant 0 : index
      %c0_11 = arith.constant 0 : index
      %12 = vector.load %arg7[%c0_10, %c0_11] : memref<128x128xf32, #tpu.memory_space<vmem>>, vector<128x128xf32>
      %c0_12 = arith.constant 0 : index
      %c0_13 = arith.constant 0 : index
      %13 = vector.load %arg5[%c0_12, %c0_13] : memref<1x128xf32, #tpu.memory_space<vmem>>, vector<1x128xf32>
      %14 = vector.broadcast %13 : vector<1x128xf32> to vector<128x128xf32>
      %15 = arith.addf %12, %14 : vector<128x128xf32>
      %cst_14 = arith.constant 0.000000e+00 : f32
      %16 = vector.broadcast %cst_14 : f32 to vector<128x128xf32>
      %17 = arith.maximumf %15, %16 : vector<128x128xf32>
      %18 = arith.truncf %17 : vector<128x128xf32> to vector<128x128xbf16>
      %c0_15 = arith.constant 0 : index
      %c0_16 = arith.constant 0 : index
      %19 = vector.load %arg6[%c0_15, %c0_16] : memref<128x128xbf16, #tpu.memory_space<vmem>>, vector<128x128xbf16>
      tpu.vector_store %arg6[%c0_15, %c0_16], %18 {strides = array<i32>} : memref<128x128xbf16, #tpu.memory_space<vmem>>, vector<128x128xbf16>,
    } else {
    }
    return
  }
  func.func @transform_0(%arg0: i32, %arg1: i32, %arg2: i32) -> (i32, i32) {
    %c0_i32 = arith.constant 0 : i32
    return %arg0, %arg2 : i32, i32
  }
  func.func @transform_1(%arg0: i32, %arg1: i32, %arg2: i32) -> (i32, i32) {
    %c0_i32 = arith.constant 0 : i32
    return %arg2, %arg1 : i32, i32
  }
  func.func @transform_2(%arg0: i32, %arg1: i32, %arg2: i32) -> (i32, i32) {
    %c0_i32 = arith.constant 0 : i32
    %c0_i32_0 = arith.constant 0 : i32
    return %c0_i32, %arg1 : i32, i32
  }
  func.func @transform_3(%arg0: i32, %arg1: i32, %arg2: i32) -> (i32, i32) {
    %c0_i32 = arith.constant 0 : i32
    return %arg0, %arg1 : i32, i32
  }
}

module attributes {stable_mosaic.version = 11 : i64} {
  func.func @_maxpool_kernel(%arg0: i32, %arg1: memref<9x32x128xbf16, #tpu.memory_space<vmem>>, %arg2: memref<32x128xbf16, #tpu.memory_space<vmem>>) attributes {dimension_semantics = [#tpu.dimension_semantics<parallel>], iteration_bounds = array<i64: 1>, scalar_prefetch = 0 : i64, scratch_operands = 0 : i64, tpu.core_type = #tpu.core_type<tc>, window_params = [{transform_indices = @transform_0, window_bounds = array<i64: 9, 32, 128>}, {transform_indices = @transform_1, window_bounds = array<i64: 32, 128>}]} {
    %c0 = arith.constant 0 : index
    %c0_0 = arith.constant 0 : index
    %c0_1 = arith.constant 0 : index
    %0 = vector.load %arg1[%c0, %c0_0, %c0_1] : memref<9x32x128xbf16, #tpu.memory_space<vmem>>, vector<9x32x128xbf16>
    %cst = arith.constant dense<0xFF80> : vector<32x128xbf16>
    %1 = vector.multi_reduction <maximumf>, %0, %cst [0] : vector<9x32x128xbf16> to vector<32x128xbf16>
    %c0_2 = arith.constant 0 : index
    %c0_3 = arith.constant 0 : index
    %2 = vector.load %arg2[%c0_2, %c0_3] : memref<32x128xbf16, #tpu.memory_space<vmem>>, vector<32x128xbf16>
    tpu.vector_store %arg2[%c0_2, %c0_3], %1 {strides = array<i32>} : memref<32x128xbf16, #tpu.memory_space<vmem>>, vector<32x128xbf16>,
    return
  }
  func.func @transform_0(%arg0: i32) -> (i32, i32, i32) {
    %c0_i32 = arith.constant 0 : i32
    %c0_i32_0 = arith.constant 0 : i32
    %c0_i32_1 = arith.constant 0 : i32
    return %c0_i32, %arg0, %c0_i32_0 : i32, i32, i32
  }
  func.func @transform_1(%arg0: i32) -> (i32, i32) {
    %c0_i32 = arith.constant 0 : i32
    %c0_i32_0 = arith.constant 0 : i32
    return %arg0, %c0_i32 : i32, i32
  }
}

module attributes {stable_mosaic.version = 11 : i64} {
  func.func @_matmul_kernel(%arg0: i32, %arg1: i32, %arg2: i32, %arg3: memref<32x128xbf16, #tpu.memory_space<vmem>>, %arg4: memref<128x128xbf16, #tpu.memory_space<vmem>>, %arg5: memref<1x128xf32, #tpu.memory_space<vmem>>, %arg6: memref<32x128xbf16, #tpu.memory_space<vmem>>, %arg7: memref<32x128xf32, #tpu.memory_space<vmem>>) attributes {dimension_semantics = [#tpu.dimension_semantics<parallel>, #tpu.dimension_semantics<parallel>, #tpu.dimension_semantics<arbitrary>], iteration_bounds = array<i64: 1, 1, 1>, scalar_prefetch = 0 : i64, scratch_operands = 1 : i64, tpu.core_type = #tpu.core_type<tc>, window_params = [{transform_indices = @transform_0, window_bounds = array<i64: 32, 128>}, {transform_indices = @transform_1, window_bounds = array<i64: 128, 128>}, {transform_indices = @transform_2, window_bounds = array<i64: 1, 128>}, {transform_indices = @transform_3, window_bounds = array<i64: 32, 128>}]} {
    %c0_i32 = arith.constant 0 : i32
    %0 = arith.cmpi eq, %arg2, %c0_i32 : i32
    %1 = arith.extui %0 : i1 to i32
    %c0_i32_0 = arith.constant 0 : i32
    %2 = arith.cmpi ne, %1, %c0_i32_0 : i32
    scf.if %2 {
      %cst_10 = arith.constant 0.000000e+00 : f32
      %12 = vector.broadcast %cst_10 : f32 to vector<32x128xf32>
      %c0_11 = arith.constant 0 : index
      %c0_12 = arith.constant 0 : index
      %13 = vector.load %arg7[%c0_11, %c0_12] : memref<32x128xf32, #tpu.memory_space<vmem>>, vector<32x128xf32>
      tpu.vector_store %arg7[%c0_11, %c0_12], %12 {strides = array<i32>} : memref<32x128xf32, #tpu.memory_space<vmem>>, vector<32x128xf32>,
    } else {
    }
    %c0 = arith.constant 0 : index
    %c0_1 = arith.constant 0 : index
    %3 = vector.load %arg7[%c0, %c0_1] : memref<32x128xf32, #tpu.memory_space<vmem>>, vector<32x128xf32>
    %c0_2 = arith.constant 0 : index
    %c0_3 = arith.constant 0 : index
    %4 = vector.load %arg3[%c0_2, %c0_3] : memref<32x128xbf16, #tpu.memory_space<vmem>>, vector<32x128xbf16>
    %c0_4 = arith.constant 0 : index
    %c0_5 = arith.constant 0 : index
    %5 = vector.load %arg4[%c0_4, %c0_5] : memref<128x128xbf16, #tpu.memory_space<vmem>>, vector<128x128xbf16>
    %cst = arith.constant dense<0.000000e+00> : vector<32x128xf32>
    %6 = tpu.matmul %4, %5, %cst {dimension_numbers = #tpu.dot_dimension_numbers<[1], [0], [0], [1], [0, 0, 1, 1], [], []>} : vector<32x128xbf16>, vector<128x128xbf16>, vector<32x128xf32> -> vector<32x128xf32>
    %7 = arith.addf %3, %6 : vector<32x128xf32>
    %c0_6 = arith.constant 0 : index
    %c0_7 = arith.constant 0 : index
    %8 = vector.load %arg7[%c0_6, %c0_7] : memref<32x128xf32, #tpu.memory_space<vmem>>, vector<32x128xf32>
    tpu.vector_store %arg7[%c0_6, %c0_7], %7 {strides = array<i32>} : memref<32x128xf32, #tpu.memory_space<vmem>>, vector<32x128xf32>,
    %c0_i32_8 = arith.constant 0 : i32
    %9 = arith.cmpi eq, %arg2, %c0_i32_8 : i32
    %10 = arith.extui %9 : i1 to i32
    %c0_i32_9 = arith.constant 0 : i32
    %11 = arith.cmpi ne, %10, %c0_i32_9 : i32
    scf.if %11 {
      %c0_10 = arith.constant 0 : index
      %c0_11 = arith.constant 0 : index
      %12 = vector.load %arg7[%c0_10, %c0_11] : memref<32x128xf32, #tpu.memory_space<vmem>>, vector<32x128xf32>
      %c0_12 = arith.constant 0 : index
      %c0_13 = arith.constant 0 : index
      %13 = vector.load %arg5[%c0_12, %c0_13] : memref<1x128xf32, #tpu.memory_space<vmem>>, vector<1x128xf32>
      %14 = vector.broadcast %13 : vector<1x128xf32> to vector<32x128xf32>
      %15 = arith.addf %12, %14 : vector<32x128xf32>
      %cst_14 = arith.constant 0.000000e+00 : f32
      %16 = vector.broadcast %cst_14 : f32 to vector<32x128xf32>
      %17 = arith.maximumf %15, %16 : vector<32x128xf32>
      %18 = arith.truncf %17 : vector<32x128xf32> to vector<32x128xbf16>
      %c0_15 = arith.constant 0 : index
      %c0_16 = arith.constant 0 : index
      %19 = vector.load %arg6[%c0_15, %c0_16] : memref<32x128xbf16, #tpu.memory_space<vmem>>, vector<32x128xbf16>
      tpu.vector_store %arg6[%c0_15, %c0_16], %18 {strides = array<i32>} : memref<32x128xbf16, #tpu.memory_space<vmem>>, vector<32x128xbf16>,
    } else {
    }
    return
  }
  func.func @transform_0(%arg0: i32, %arg1: i32, %arg2: i32) -> (i32, i32) {
    %c0_i32 = arith.constant 0 : i32
    return %arg0, %arg2 : i32, i32
  }
  func.func @transform_1(%arg0: i32, %arg1: i32, %arg2: i32) -> (i32, i32) {
    %c0_i32 = arith.constant 0 : i32
    return %arg2, %arg1 : i32, i32
  }
  func.func @transform_2(%arg0: i32, %arg1: i32, %arg2: i32) -> (i32, i32) {
    %c0_i32 = arith.constant 0 : i32
    %c0_i32_0 = arith.constant 0 : i32
    return %c0_i32, %arg1 : i32, i32
  }
  func.func @transform_3(%arg0: i32, %arg1: i32, %arg2: i32) -> (i32, i32) {
    %c0_i32 = arith.constant 0 : i32
    return %arg0, %arg1 : i32, i32
  }
}

module attributes {stable_mosaic.version = 11 : i64} {
  func.func @_grouped_matmul_kernel(%arg0: i32, %arg1: i32, %arg2: memref<1x32x48xbf16, #tpu.memory_space<vmem>>, %arg3: memref<1x48x128xbf16, #tpu.memory_space<vmem>>, %arg4: memref<1x1x128xf32, #tpu.memory_space<vmem>>, %arg5: memref<32x128xbf16, #tpu.memory_space<vmem>>) attributes {dimension_semantics = [#tpu.dimension_semantics<parallel>, #tpu.dimension_semantics<parallel>], iteration_bounds = array<i64: 4, 1>, scalar_prefetch = 0 : i64, scratch_operands = 0 : i64, tpu.core_type = #tpu.core_type<tc>, window_params = [{transform_indices = @transform_0, window_bounds = array<i64: 1, 32, 48>}, {transform_indices = @transform_1, window_bounds = array<i64: 1, 48, 128>}, {transform_indices = @transform_2, window_bounds = array<i64: 1, 1, 128>}, {transform_indices = @transform_3, window_bounds = array<i64: 32, 128>}]} {
    %c0 = arith.constant 0 : index
    %c0_0 = arith.constant 0 : index
    %c0_1 = arith.constant 0 : index
    %0 = vector.load %arg2[%c0, %c0_0, %c0_1] : memref<1x32x48xbf16, #tpu.memory_space<vmem>>, vector<1x32x48xbf16>
    %1 = vector.shape_cast %0 : vector<1x32x48xbf16> to vector<32x48xbf16>
    %c0_2 = arith.constant 0 : index
    %c0_3 = arith.constant 0 : index
    %c0_4 = arith.constant 0 : index
    %2 = vector.load %arg3[%c0_2, %c0_3, %c0_4] : memref<1x48x128xbf16, #tpu.memory_space<vmem>>, vector<1x48x128xbf16>
    %3 = vector.shape_cast %2 : vector<1x48x128xbf16> to vector<48x128xbf16>
    %cst = arith.constant dense<0.000000e+00> : vector<32x128xf32>
    %4 = tpu.matmul %1, %3, %cst {dimension_numbers = #tpu.dot_dimension_numbers<[1], [0], [0], [1], [0, 0, 1, 1], [], []>} : vector<32x48xbf16>, vector<48x128xbf16>, vector<32x128xf32> -> vector<32x128xf32>
    %c0_5 = arith.constant 0 : index
    %c0_6 = arith.constant 0 : index
    %c0_7 = arith.constant 0 : index
    %5 = vector.load %arg4[%c0_5, %c0_6, %c0_7] : memref<1x1x128xf32, #tpu.memory_space<vmem>>, vector<1x1x128xf32>
    %6 = vector.shape_cast %5 : vector<1x1x128xf32> to vector<1x128xf32>
    %7 = vector.broadcast %6 : vector<1x128xf32> to vector<32x128xf32>
    %8 = arith.addf %4, %7 : vector<32x128xf32>
    %cst_8 = arith.constant 0.000000e+00 : f32
    %9 = vector.broadcast %cst_8 : f32 to vector<32x128xf32>
    %10 = arith.maximumf %8, %9 : vector<32x128xf32>
    %11 = arith.truncf %10 : vector<32x128xf32> to vector<32x128xbf16>
    %c0_9 = arith.constant 0 : index
    %c0_10 = arith.constant 0 : index
    %12 = vector.load %arg5[%c0_9, %c0_10] : memref<32x128xbf16, #tpu.memory_space<vmem>>, vector<32x128xbf16>
    tpu.vector_store %arg5[%c0_9, %c0_10], %11 {strides = array<i32>} : memref<32x128xbf16, #tpu.memory_space<vmem>>, vector<32x128xbf16>,
    return
  }
  func.func @transform_0(%arg0: i32, %arg1: i32) -> (i32, i32, i32) {
    %c0_i32 = arith.constant 0 : i32
    %c0_i32_0 = arith.constant 0 : i32
    return %arg0, %arg1, %c0_i32 : i32, i32, i32
  }
  func.func @transform_1(%arg0: i32, %arg1: i32) -> (i32, i32, i32) {
    %c0_i32 = arith.constant 0 : i32
    %c0_i32_0 = arith.constant 0 : i32
    %c0_i32_1 = arith.constant 0 : i32
    return %arg0, %c0_i32, %c0_i32_0 : i32, i32, i32
  }
  func.func @transform_2(%arg0: i32, %arg1: i32) -> (i32, i32, i32) {
    %c0_i32 = arith.constant 0 : i32
    %c0_i32_0 = arith.constant 0 : i32
    %c0_i32_1 = arith.constant 0 : i32
    return %arg0, %c0_i32, %c0_i32_0 : i32, i32, i32
  }
  func.func @transform_3(%arg0: i32, %arg1: i32) -> (i32, i32) {
    %c0_i32 = arith.constant 0 : i32
    return %arg1, %arg0 : i32, i32
  }
}

module attributes {stable_mosaic.version = 11 : i64} {
  func.func @_matmul_kernel(%arg0: i32, %arg1: i32, %arg2: i32, %arg3: memref<32x128xbf16, #tpu.memory_space<vmem>>, %arg4: memref<128x128xbf16, #tpu.memory_space<vmem>>, %arg5: memref<1x128xf32, #tpu.memory_space<vmem>>, %arg6: memref<32x128xbf16, #tpu.memory_space<vmem>>, %arg7: memref<32x128xf32, #tpu.memory_space<vmem>>) attributes {dimension_semantics = [#tpu.dimension_semantics<parallel>, #tpu.dimension_semantics<parallel>, #tpu.dimension_semantics<arbitrary>], iteration_bounds = array<i64: 1, 1, 1>, scalar_prefetch = 0 : i64, scratch_operands = 1 : i64, tpu.core_type = #tpu.core_type<tc>, window_params = [{transform_indices = @transform_0, window_bounds = array<i64: 32, 128>}, {transform_indices = @transform_1, window_bounds = array<i64: 128, 128>}, {transform_indices = @transform_2, window_bounds = array<i64: 1, 128>}, {transform_indices = @transform_3, window_bounds = array<i64: 32, 128>}]} {
    %c0_i32 = arith.constant 0 : i32
    %0 = arith.cmpi eq, %arg2, %c0_i32 : i32
    %1 = arith.extui %0 : i1 to i32
    %c0_i32_0 = arith.constant 0 : i32
    %2 = arith.cmpi ne, %1, %c0_i32_0 : i32
    scf.if %2 {
      %cst_10 = arith.constant 0.000000e+00 : f32
      %12 = vector.broadcast %cst_10 : f32 to vector<32x128xf32>
      %c0_11 = arith.constant 0 : index
      %c0_12 = arith.constant 0 : index
      %13 = vector.load %arg7[%c0_11, %c0_12] : memref<32x128xf32, #tpu.memory_space<vmem>>, vector<32x128xf32>
      tpu.vector_store %arg7[%c0_11, %c0_12], %12 {strides = array<i32>} : memref<32x128xf32, #tpu.memory_space<vmem>>, vector<32x128xf32>,
    } else {
    }
    %c0 = arith.constant 0 : index
    %c0_1 = arith.constant 0 : index
    %3 = vector.load %arg7[%c0, %c0_1] : memref<32x128xf32, #tpu.memory_space<vmem>>, vector<32x128xf32>
    %c0_2 = arith.constant 0 : index
    %c0_3 = arith.constant 0 : index
    %4 = vector.load %arg3[%c0_2, %c0_3] : memref<32x128xbf16, #tpu.memory_space<vmem>>, vector<32x128xbf16>
    %c0_4 = arith.constant 0 : index
    %c0_5 = arith.constant 0 : index
    %5 = vector.load %arg4[%c0_4, %c0_5] : memref<128x128xbf16, #tpu.memory_space<vmem>>, vector<128x128xbf16>
    %cst = arith.constant dense<0.000000e+00> : vector<32x128xf32>
    %6 = tpu.matmul %4, %5, %cst {dimension_numbers = #tpu.dot_dimension_numbers<[1], [0], [0], [1], [0, 0, 1, 1], [], []>} : vector<32x128xbf16>, vector<128x128xbf16>, vector<32x128xf32> -> vector<32x128xf32>
    %7 = arith.addf %3, %6 : vector<32x128xf32>
    %c0_6 = arith.constant 0 : index
    %c0_7 = arith.constant 0 : index
    %8 = vector.load %arg7[%c0_6, %c0_7] : memref<32x128xf32, #tpu.memory_space<vmem>>, vector<32x128xf32>
    tpu.vector_store %arg7[%c0_6, %c0_7], %7 {strides = array<i32>} : memref<32x128xf32, #tpu.memory_space<vmem>>, vector<32x128xf32>,
    %c0_i32_8 = arith.constant 0 : i32
    %9 = arith.cmpi eq, %arg2, %c0_i32_8 : i32
    %10 = arith.extui %9 : i1 to i32
    %c0_i32_9 = arith.constant 0 : i32
    %11 = arith.cmpi ne, %10, %c0_i32_9 : i32
    scf.if %11 {
      %c0_10 = arith.constant 0 : index
      %c0_11 = arith.constant 0 : index
      %12 = vector.load %arg7[%c0_10, %c0_11] : memref<32x128xf32, #tpu.memory_space<vmem>>, vector<32x128xf32>
      %c0_12 = arith.constant 0 : index
      %c0_13 = arith.constant 0 : index
      %13 = vector.load %arg5[%c0_12, %c0_13] : memref<1x128xf32, #tpu.memory_space<vmem>>, vector<1x128xf32>
      %14 = vector.broadcast %13 : vector<1x128xf32> to vector<32x128xf32>
      %15 = arith.addf %12, %14 : vector<32x128xf32>
      %16 = arith.truncf %15 : vector<32x128xf32> to vector<32x128xbf16>
      %c0_14 = arith.constant 0 : index
      %c0_15 = arith.constant 0 : index
      %17 = vector.load %arg6[%c0_14, %c0_15] : memref<32x128xbf16, #tpu.memory_space<vmem>>, vector<32x128xbf16>
      tpu.vector_store %arg6[%c0_14, %c0_15], %16 {strides = array<i32>} : memref<32x128xbf16, #tpu.memory_space<vmem>>, vector<32x128xbf16>,
    } else {
    }
    return
  }
  func.func @transform_0(%arg0: i32, %arg1: i32, %arg2: i32) -> (i32, i32) {
    %c0_i32 = arith.constant 0 : i32
    return %arg0, %arg2 : i32, i32
  }
  func.func @transform_1(%arg0: i32, %arg1: i32, %arg2: i32) -> (i32, i32) {
    %c0_i32 = arith.constant 0 : i32
    return %arg2, %arg1 : i32, i32
  }
  func.func @transform_2(%arg0: i32, %arg1: i32, %arg2: i32) -> (i32, i32) {
    %c0_i32 = arith.constant 0 : i32
    %c0_i32_0 = arith.constant 0 : i32
    return %c0_i32, %arg1 : i32, i32
  }
  func.func @transform_3(%arg0: i32, %arg1: i32, %arg2: i32) -> (i32, i32) {
    %c0_i32 = arith.constant 0 : i32
    return %arg0, %arg1 : i32, i32
  }
}

module attributes {stable_mosaic.version = 11 : i64} {
  func.func @_matmul_kernel(%arg0: i32, %arg1: i32, %arg2: i32, %arg3: memref<32x128xbf16, #tpu.memory_space<vmem>>, %arg4: memref<128x128xbf16, #tpu.memory_space<vmem>>, %arg5: memref<1x128xf32, #tpu.memory_space<vmem>>, %arg6: memref<32x128xbf16, #tpu.memory_space<vmem>>, %arg7: memref<32x128xbf16, #tpu.memory_space<vmem>>, %arg8: memref<32x128xf32, #tpu.memory_space<vmem>>) attributes {dimension_semantics = [#tpu.dimension_semantics<parallel>, #tpu.dimension_semantics<parallel>, #tpu.dimension_semantics<arbitrary>], iteration_bounds = array<i64: 1, 1, 1>, scalar_prefetch = 0 : i64, scratch_operands = 1 : i64, tpu.core_type = #tpu.core_type<tc>, window_params = [{transform_indices = @transform_0, window_bounds = array<i64: 32, 128>}, {transform_indices = @transform_1, window_bounds = array<i64: 128, 128>}, {transform_indices = @transform_2, window_bounds = array<i64: 1, 128>}, {transform_indices = @transform_3, window_bounds = array<i64: 32, 128>}, {transform_indices = @transform_4, window_bounds = array<i64: 32, 128>}]} {
    %c0_i32 = arith.constant 0 : i32
    %0 = arith.cmpi eq, %arg2, %c0_i32 : i32
    %1 = arith.extui %0 : i1 to i32
    %c0_i32_0 = arith.constant 0 : i32
    %2 = arith.cmpi ne, %1, %c0_i32_0 : i32
    scf.if %2 {
      %cst_10 = arith.constant 0.000000e+00 : f32
      %12 = vector.broadcast %cst_10 : f32 to vector<32x128xf32>
      %c0_11 = arith.constant 0 : index
      %c0_12 = arith.constant 0 : index
      %13 = vector.load %arg8[%c0_11, %c0_12] : memref<32x128xf32, #tpu.memory_space<vmem>>, vector<32x128xf32>
      tpu.vector_store %arg8[%c0_11, %c0_12], %12 {strides = array<i32>} : memref<32x128xf32, #tpu.memory_space<vmem>>, vector<32x128xf32>,
    } else {
    }
    %c0 = arith.constant 0 : index
    %c0_1 = arith.constant 0 : index
    %3 = vector.load %arg8[%c0, %c0_1] : memref<32x128xf32, #tpu.memory_space<vmem>>, vector<32x128xf32>
    %c0_2 = arith.constant 0 : index
    %c0_3 = arith.constant 0 : index
    %4 = vector.load %arg3[%c0_2, %c0_3] : memref<32x128xbf16, #tpu.memory_space<vmem>>, vector<32x128xbf16>
    %c0_4 = arith.constant 0 : index
    %c0_5 = arith.constant 0 : index
    %5 = vector.load %arg4[%c0_4, %c0_5] : memref<128x128xbf16, #tpu.memory_space<vmem>>, vector<128x128xbf16>
    %cst = arith.constant dense<0.000000e+00> : vector<32x128xf32>
    %6 = tpu.matmul %4, %5, %cst {dimension_numbers = #tpu.dot_dimension_numbers<[1], [0], [0], [1], [0, 0, 1, 1], [], []>} : vector<32x128xbf16>, vector<128x128xbf16>, vector<32x128xf32> -> vector<32x128xf32>
    %7 = arith.addf %3, %6 : vector<32x128xf32>
    %c0_6 = arith.constant 0 : index
    %c0_7 = arith.constant 0 : index
    %8 = vector.load %arg8[%c0_6, %c0_7] : memref<32x128xf32, #tpu.memory_space<vmem>>, vector<32x128xf32>
    tpu.vector_store %arg8[%c0_6, %c0_7], %7 {strides = array<i32>} : memref<32x128xf32, #tpu.memory_space<vmem>>, vector<32x128xf32>,
    %c0_i32_8 = arith.constant 0 : i32
    %9 = arith.cmpi eq, %arg2, %c0_i32_8 : i32
    %10 = arith.extui %9 : i1 to i32
    %c0_i32_9 = arith.constant 0 : i32
    %11 = arith.cmpi ne, %10, %c0_i32_9 : i32
    scf.if %11 {
      %c0_10 = arith.constant 0 : index
      %c0_11 = arith.constant 0 : index
      %12 = vector.load %arg8[%c0_10, %c0_11] : memref<32x128xf32, #tpu.memory_space<vmem>>, vector<32x128xf32>
      %c0_12 = arith.constant 0 : index
      %c0_13 = arith.constant 0 : index
      %13 = vector.load %arg5[%c0_12, %c0_13] : memref<1x128xf32, #tpu.memory_space<vmem>>, vector<1x128xf32>
      %14 = vector.broadcast %13 : vector<1x128xf32> to vector<32x128xf32>
      %15 = arith.addf %12, %14 : vector<32x128xf32>
      %c0_14 = arith.constant 0 : index
      %c0_15 = arith.constant 0 : index
      %16 = vector.load %arg6[%c0_14, %c0_15] : memref<32x128xbf16, #tpu.memory_space<vmem>>, vector<32x128xbf16>
      %17 = arith.extf %16 : vector<32x128xbf16> to vector<32x128xf32>
      %18 = arith.addf %15, %17 : vector<32x128xf32>
      %cst_16 = arith.constant 0.000000e+00 : f32
      %19 = vector.broadcast %cst_16 : f32 to vector<32x128xf32>
      %20 = arith.maximumf %18, %19 : vector<32x128xf32>
      %21 = arith.truncf %20 : vector<32x128xf32> to vector<32x128xbf16>
      %c0_17 = arith.constant 0 : index
      %c0_18 = arith.constant 0 : index
      %22 = vector.load %arg7[%c0_17, %c0_18] : memref<32x128xbf16, #tpu.memory_space<vmem>>, vector<32x128xbf16>
      tpu.vector_store %arg7[%c0_17, %c0_18], %21 {strides = array<i32>} : memref<32x128xbf16, #tpu.memory_space<vmem>>, vector<32x128xbf16>,
    } else {
    }
    return
  }
  func.func @transform_0(%arg0: i32, %arg1: i32, %arg2: i32) -> (i32, i32) {
    %c0_i32 = arith.constant 0 : i32
    return %arg0, %arg2 : i32, i32
  }
  func.func @transform_1(%arg0: i32, %arg1: i32, %arg2: i32) -> (i32, i32) {
    %c0_i32 = arith.constant 0 : i32
    return %arg2, %arg1 : i32, i32
  }
  func.func @transform_2(%arg0: i32, %arg1: i32, %arg2: i32) -> (i32, i32) {
    %c0_i32 = arith.constant 0 : i32
    %c0_i32_0 = arith.constant 0 : i32
    return %c0_i32, %arg1 : i32, i32
  }
  func.func @transform_3(%arg0: i32, %arg1: i32, %arg2: i32) -> (i32, i32) {
    %c0_i32 = arith.constant 0 : i32
    return %arg0, %arg1 : i32, i32
  }
  func.func @transform_4(%arg0: i32, %arg1: i32, %arg2: i32) -> (i32, i32) {
    %c0_i32 = arith.constant 0 : i32
    return %arg0, %arg1 : i32, i32
  }
}

module attributes {stable_mosaic.version = 11 : i64} {
  func.func @_grouped_matmul_kernel(%arg0: i32, %arg1: i32, %arg2: memref<1x16x80xbf16, #tpu.memory_space<vmem>>, %arg3: memref<1x80x128xbf16, #tpu.memory_space<vmem>>, %arg4: memref<1x1x128xf32, #tpu.memory_space<vmem>>, %arg5: memref<16x128xbf16, #tpu.memory_space<vmem>>) attributes {dimension_semantics = [#tpu.dimension_semantics<parallel>, #tpu.dimension_semantics<parallel>], iteration_bounds = array<i64: 4, 1>, scalar_prefetch = 0 : i64, scratch_operands = 0 : i64, tpu.core_type = #tpu.core_type<tc>, window_params = [{transform_indices = @transform_0, window_bounds = array<i64: 1, 16, 80>}, {transform_indices = @transform_1, window_bounds = array<i64: 1, 80, 128>}, {transform_indices = @transform_2, window_bounds = array<i64: 1, 1, 128>}, {transform_indices = @transform_3, window_bounds = array<i64: 16, 128>}]} {
    %c0 = arith.constant 0 : index
    %c0_0 = arith.constant 0 : index
    %c0_1 = arith.constant 0 : index
    %0 = vector.load %arg2[%c0, %c0_0, %c0_1] : memref<1x16x80xbf16, #tpu.memory_space<vmem>>, vector<1x16x80xbf16>
    %1 = vector.shape_cast %0 : vector<1x16x80xbf16> to vector<16x80xbf16>
    %c0_2 = arith.constant 0 : index
    %c0_3 = arith.constant 0 : index
    %c0_4 = arith.constant 0 : index
    %2 = vector.load %arg3[%c0_2, %c0_3, %c0_4] : memref<1x80x128xbf16, #tpu.memory_space<vmem>>, vector<1x80x128xbf16>
    %3 = vector.shape_cast %2 : vector<1x80x128xbf16> to vector<80x128xbf16>
    %cst = arith.constant dense<0.000000e+00> : vector<16x128xf32>
    %4 = tpu.matmul %1, %3, %cst {dimension_numbers = #tpu.dot_dimension_numbers<[1], [0], [0], [1], [0, 0, 1, 1], [], []>} : vector<16x80xbf16>, vector<80x128xbf16>, vector<16x128xf32> -> vector<16x128xf32>
    %c0_5 = arith.constant 0 : index
    %c0_6 = arith.constant 0 : index
    %c0_7 = arith.constant 0 : index
    %5 = vector.load %arg4[%c0_5, %c0_6, %c0_7] : memref<1x1x128xf32, #tpu.memory_space<vmem>>, vector<1x1x128xf32>
    %6 = vector.shape_cast %5 : vector<1x1x128xf32> to vector<1x128xf32>
    %7 = vector.broadcast %6 : vector<1x128xf32> to vector<16x128xf32>
    %8 = arith.addf %4, %7 : vector<16x128xf32>
    %cst_8 = arith.constant 0.000000e+00 : f32
    %9 = vector.broadcast %cst_8 : f32 to vector<16x128xf32>
    %10 = arith.maximumf %8, %9 : vector<16x128xf32>
    %11 = arith.truncf %10 : vector<16x128xf32> to vector<16x128xbf16>
    %c0_9 = arith.constant 0 : index
    %c0_10 = arith.constant 0 : index
    %12 = vector.load %arg5[%c0_9, %c0_10] : memref<16x128xbf16, #tpu.memory_space<vmem>>, vector<16x128xbf16>
    tpu.vector_store %arg5[%c0_9, %c0_10], %11 {strides = array<i32>} : memref<16x128xbf16, #tpu.memory_space<vmem>>, vector<16x128xbf16>,
    return
  }
  func.func @transform_0(%arg0: i32, %arg1: i32) -> (i32, i32, i32) {
    %c0_i32 = arith.constant 0 : i32
    %c0_i32_0 = arith.constant 0 : i32
    return %arg0, %arg1, %c0_i32 : i32, i32, i32
  }
  func.func @transform_1(%arg0: i32, %arg1: i32) -> (i32, i32, i32) {
    %c0_i32 = arith.constant 0 : i32
    %c0_i32_0 = arith.constant 0 : i32
    %c0_i32_1 = arith.constant 0 : i32
    return %arg0, %c0_i32, %c0_i32_0 : i32, i32, i32
  }
  func.func @transform_2(%arg0: i32, %arg1: i32) -> (i32, i32, i32) {
    %c0_i32 = arith.constant 0 : i32
    %c0_i32_0 = arith.constant 0 : i32
    %c0_i32_1 = arith.constant 0 : i32
    return %arg0, %c0_i32, %c0_i32_0 : i32, i32, i32
  }
  func.func @transform_3(%arg0: i32, %arg1: i32) -> (i32, i32) {
    %c0_i32 = arith.constant 0 : i32
    return %arg1, %arg0 : i32, i32
  }
}

module attributes {stable_mosaic.version = 11 : i64} {
  func.func @_matmul_kernel(%arg0: i32, %arg1: i32, %arg2: i32, %arg3: memref<16x128xbf16, #tpu.memory_space<vmem>>, %arg4: memref<128x128xbf16, #tpu.memory_space<vmem>>, %arg5: memref<1x128xf32, #tpu.memory_space<vmem>>, %arg6: memref<16x128xbf16, #tpu.memory_space<vmem>>, %arg7: memref<16x128xf32, #tpu.memory_space<vmem>>) attributes {dimension_semantics = [#tpu.dimension_semantics<parallel>, #tpu.dimension_semantics<parallel>, #tpu.dimension_semantics<arbitrary>], iteration_bounds = array<i64: 1, 1, 1>, scalar_prefetch = 0 : i64, scratch_operands = 1 : i64, tpu.core_type = #tpu.core_type<tc>, window_params = [{transform_indices = @transform_0, window_bounds = array<i64: 16, 128>}, {transform_indices = @transform_1, window_bounds = array<i64: 128, 128>}, {transform_indices = @transform_2, window_bounds = array<i64: 1, 128>}, {transform_indices = @transform_3, window_bounds = array<i64: 16, 128>}]} {
    %c0_i32 = arith.constant 0 : i32
    %0 = arith.cmpi eq, %arg2, %c0_i32 : i32
    %1 = arith.extui %0 : i1 to i32
    %c0_i32_0 = arith.constant 0 : i32
    %2 = arith.cmpi ne, %1, %c0_i32_0 : i32
    scf.if %2 {
      %cst_10 = arith.constant 0.000000e+00 : f32
      %12 = vector.broadcast %cst_10 : f32 to vector<16x128xf32>
      %c0_11 = arith.constant 0 : index
      %c0_12 = arith.constant 0 : index
      %13 = vector.load %arg7[%c0_11, %c0_12] : memref<16x128xf32, #tpu.memory_space<vmem>>, vector<16x128xf32>
      tpu.vector_store %arg7[%c0_11, %c0_12], %12 {strides = array<i32>} : memref<16x128xf32, #tpu.memory_space<vmem>>, vector<16x128xf32>,
    } else {
    }
    %c0 = arith.constant 0 : index
    %c0_1 = arith.constant 0 : index
    %3 = vector.load %arg7[%c0, %c0_1] : memref<16x128xf32, #tpu.memory_space<vmem>>, vector<16x128xf32>
    %c0_2 = arith.constant 0 : index
    %c0_3 = arith.constant 0 : index
    %4 = vector.load %arg3[%c0_2, %c0_3] : memref<16x128xbf16, #tpu.memory_space<vmem>>, vector<16x128xbf16>
    %c0_4 = arith.constant 0 : index
    %c0_5 = arith.constant 0 : index
    %5 = vector.load %arg4[%c0_4, %c0_5] : memref<128x128xbf16, #tpu.memory_space<vmem>>, vector<128x128xbf16>
    %cst = arith.constant dense<0.000000e+00> : vector<16x128xf32>
    %6 = tpu.matmul %4, %5, %cst {dimension_numbers = #tpu.dot_dimension_numbers<[1], [0], [0], [1], [0, 0, 1, 1], [], []>} : vector<16x128xbf16>, vector<128x128xbf16>, vector<16x128xf32> -> vector<16x128xf32>
    %7 = arith.addf %3, %6 : vector<16x128xf32>
    %c0_6 = arith.constant 0 : index
    %c0_7 = arith.constant 0 : index
    %8 = vector.load %arg7[%c0_6, %c0_7] : memref<16x128xf32, #tpu.memory_space<vmem>>, vector<16x128xf32>
    tpu.vector_store %arg7[%c0_6, %c0_7], %7 {strides = array<i32>} : memref<16x128xf32, #tpu.memory_space<vmem>>, vector<16x128xf32>,
    %c0_i32_8 = arith.constant 0 : i32
    %9 = arith.cmpi eq, %arg2, %c0_i32_8 : i32
    %10 = arith.extui %9 : i1 to i32
    %c0_i32_9 = arith.constant 0 : i32
    %11 = arith.cmpi ne, %10, %c0_i32_9 : i32
    scf.if %11 {
      %c0_10 = arith.constant 0 : index
      %c0_11 = arith.constant 0 : index
      %12 = vector.load %arg7[%c0_10, %c0_11] : memref<16x128xf32, #tpu.memory_space<vmem>>, vector<16x128xf32>
      %c0_12 = arith.constant 0 : index
      %c0_13 = arith.constant 0 : index
      %13 = vector.load %arg5[%c0_12, %c0_13] : memref<1x128xf32, #tpu.memory_space<vmem>>, vector<1x128xf32>
      %14 = vector.broadcast %13 : vector<1x128xf32> to vector<16x128xf32>
      %15 = arith.addf %12, %14 : vector<16x128xf32>
      %16 = arith.truncf %15 : vector<16x128xf32> to vector<16x128xbf16>
      %c0_14 = arith.constant 0 : index
      %c0_15 = arith.constant 0 : index
      %17 = vector.load %arg6[%c0_14, %c0_15] : memref<16x128xbf16, #tpu.memory_space<vmem>>, vector<16x128xbf16>
      tpu.vector_store %arg6[%c0_14, %c0_15], %16 {strides = array<i32>} : memref<16x128xbf16, #tpu.memory_space<vmem>>, vector<16x128xbf16>,
    } else {
    }
    return
  }
  func.func @transform_0(%arg0: i32, %arg1: i32, %arg2: i32) -> (i32, i32) {
    %c0_i32 = arith.constant 0 : i32
    return %arg0, %arg2 : i32, i32
  }
  func.func @transform_1(%arg0: i32, %arg1: i32, %arg2: i32) -> (i32, i32) {
    %c0_i32 = arith.constant 0 : i32
    return %arg2, %arg1 : i32, i32
  }
  func.func @transform_2(%arg0: i32, %arg1: i32, %arg2: i32) -> (i32, i32) {
    %c0_i32 = arith.constant 0 : i32
    %c0_i32_0 = arith.constant 0 : i32
    return %c0_i32, %arg1 : i32, i32
  }
  func.func @transform_3(%arg0: i32, %arg1: i32, %arg2: i32) -> (i32, i32) {
    %c0_i32 = arith.constant 0 : i32
    return %arg0, %arg1 : i32, i32
  }
}

module attributes {stable_mosaic.version = 11 : i64} {
  func.func @_matmul_kernel(%arg0: i32, %arg1: i32, %arg2: i32, %arg3: memref<16x128xbf16, #tpu.memory_space<vmem>>, %arg4: memref<128x128xbf16, #tpu.memory_space<vmem>>, %arg5: memref<1x128xf32, #tpu.memory_space<vmem>>, %arg6: memref<16x128xbf16, #tpu.memory_space<vmem>>, %arg7: memref<16x128xbf16, #tpu.memory_space<vmem>>, %arg8: memref<16x128xf32, #tpu.memory_space<vmem>>) attributes {dimension_semantics = [#tpu.dimension_semantics<parallel>, #tpu.dimension_semantics<parallel>, #tpu.dimension_semantics<arbitrary>], iteration_bounds = array<i64: 1, 1, 1>, scalar_prefetch = 0 : i64, scratch_operands = 1 : i64, tpu.core_type = #tpu.core_type<tc>, window_params = [{transform_indices = @transform_0, window_bounds = array<i64: 16, 128>}, {transform_indices = @transform_1, window_bounds = array<i64: 128, 128>}, {transform_indices = @transform_2, window_bounds = array<i64: 1, 128>}, {transform_indices = @transform_3, window_bounds = array<i64: 16, 128>}, {transform_indices = @transform_4, window_bounds = array<i64: 16, 128>}]} {
    %c0_i32 = arith.constant 0 : i32
    %0 = arith.cmpi eq, %arg2, %c0_i32 : i32
    %1 = arith.extui %0 : i1 to i32
    %c0_i32_0 = arith.constant 0 : i32
    %2 = arith.cmpi ne, %1, %c0_i32_0 : i32
    scf.if %2 {
      %cst_10 = arith.constant 0.000000e+00 : f32
      %12 = vector.broadcast %cst_10 : f32 to vector<16x128xf32>
      %c0_11 = arith.constant 0 : index
      %c0_12 = arith.constant 0 : index
      %13 = vector.load %arg8[%c0_11, %c0_12] : memref<16x128xf32, #tpu.memory_space<vmem>>, vector<16x128xf32>
      tpu.vector_store %arg8[%c0_11, %c0_12], %12 {strides = array<i32>} : memref<16x128xf32, #tpu.memory_space<vmem>>, vector<16x128xf32>,
    } else {
    }
    %c0 = arith.constant 0 : index
    %c0_1 = arith.constant 0 : index
    %3 = vector.load %arg8[%c0, %c0_1] : memref<16x128xf32, #tpu.memory_space<vmem>>, vector<16x128xf32>
    %c0_2 = arith.constant 0 : index
    %c0_3 = arith.constant 0 : index
    %4 = vector.load %arg3[%c0_2, %c0_3] : memref<16x128xbf16, #tpu.memory_space<vmem>>, vector<16x128xbf16>
    %c0_4 = arith.constant 0 : index
    %c0_5 = arith.constant 0 : index
    %5 = vector.load %arg4[%c0_4, %c0_5] : memref<128x128xbf16, #tpu.memory_space<vmem>>, vector<128x128xbf16>
    %cst = arith.constant dense<0.000000e+00> : vector<16x128xf32>
    %6 = tpu.matmul %4, %5, %cst {dimension_numbers = #tpu.dot_dimension_numbers<[1], [0], [0], [1], [0, 0, 1, 1], [], []>} : vector<16x128xbf16>, vector<128x128xbf16>, vector<16x128xf32> -> vector<16x128xf32>
    %7 = arith.addf %3, %6 : vector<16x128xf32>
    %c0_6 = arith.constant 0 : index
    %c0_7 = arith.constant 0 : index
    %8 = vector.load %arg8[%c0_6, %c0_7] : memref<16x128xf32, #tpu.memory_space<vmem>>, vector<16x128xf32>
    tpu.vector_store %arg8[%c0_6, %c0_7], %7 {strides = array<i32>} : memref<16x128xf32, #tpu.memory_space<vmem>>, vector<16x128xf32>,
    %c0_i32_8 = arith.constant 0 : i32
    %9 = arith.cmpi eq, %arg2, %c0_i32_8 : i32
    %10 = arith.extui %9 : i1 to i32
    %c0_i32_9 = arith.constant 0 : i32
    %11 = arith.cmpi ne, %10, %c0_i32_9 : i32
    scf.if %11 {
      %c0_10 = arith.constant 0 : index
      %c0_11 = arith.constant 0 : index
      %12 = vector.load %arg8[%c0_10, %c0_11] : memref<16x128xf32, #tpu.memory_space<vmem>>, vector<16x128xf32>
      %c0_12 = arith.constant 0 : index
      %c0_13 = arith.constant 0 : index
      %13 = vector.load %arg5[%c0_12, %c0_13] : memref<1x128xf32, #tpu.memory_space<vmem>>, vector<1x128xf32>
      %14 = vector.broadcast %13 : vector<1x128xf32> to vector<16x128xf32>
      %15 = arith.addf %12, %14 : vector<16x128xf32>
      %c0_14 = arith.constant 0 : index
      %c0_15 = arith.constant 0 : index
      %16 = vector.load %arg6[%c0_14, %c0_15] : memref<16x128xbf16, #tpu.memory_space<vmem>>, vector<16x128xbf16>
      %17 = arith.extf %16 : vector<16x128xbf16> to vector<16x128xf32>
      %18 = arith.addf %15, %17 : vector<16x128xf32>
      %cst_16 = arith.constant 0.000000e+00 : f32
      %19 = vector.broadcast %cst_16 : f32 to vector<16x128xf32>
      %20 = arith.maximumf %18, %19 : vector<16x128xf32>
      %21 = arith.truncf %20 : vector<16x128xf32> to vector<16x128xbf16>
      %c0_17 = arith.constant 0 : index
      %c0_18 = arith.constant 0 : index
      %22 = vector.load %arg7[%c0_17, %c0_18] : memref<16x128xbf16, #tpu.memory_space<vmem>>, vector<16x128xbf16>
      tpu.vector_store %arg7[%c0_17, %c0_18], %21 {strides = array<i32>} : memref<16x128xbf16, #tpu.memory_space<vmem>>, vector<16x128xbf16>,
    } else {
    }
    return
  }
  func.func @transform_0(%arg0: i32, %arg1: i32, %arg2: i32) -> (i32, i32) {
    %c0_i32 = arith.constant 0 : i32
    return %arg0, %arg2 : i32, i32
  }
  func.func @transform_1(%arg0: i32, %arg1: i32, %arg2: i32) -> (i32, i32) {
    %c0_i32 = arith.constant 0 : i32
    return %arg2, %arg1 : i32, i32
  }
  func.func @transform_2(%arg0: i32, %arg1: i32, %arg2: i32) -> (i32, i32) {
    %c0_i32 = arith.constant 0 : i32
    %c0_i32_0 = arith.constant 0 : i32
    return %c0_i32, %arg1 : i32, i32
  }
  func.func @transform_3(%arg0: i32, %arg1: i32, %arg2: i32) -> (i32, i32) {
    %c0_i32 = arith.constant 0 : i32
    return %arg0, %arg1 : i32, i32
  }
  func.func @transform_4(%arg0: i32, %arg1: i32, %arg2: i32) -> (i32, i32) {
    %c0_i32 = arith.constant 0 : i32
    return %arg0, %arg1 : i32, i32
  }
}

module attributes {stable_mosaic.version = 11 : i64} {
  func.func @_matmul_kernel(%arg0: i32, %arg1: i32, %arg2: i32, %arg3: memref<16x128xbf16, #tpu.memory_space<vmem>>, %arg4: memref<128x128xbf16, #tpu.memory_space<vmem>>, %arg5: memref<1x128xf32, #tpu.memory_space<vmem>>, %arg6: memref<16x128xbf16, #tpu.memory_space<vmem>>, %arg7: memref<16x128xf32, #tpu.memory_space<vmem>>) attributes {dimension_semantics = [#tpu.dimension_semantics<parallel>, #tpu.dimension_semantics<parallel>, #tpu.dimension_semantics<arbitrary>], iteration_bounds = array<i64: 1, 1, 1>, scalar_prefetch = 0 : i64, scratch_operands = 1 : i64, tpu.core_type = #tpu.core_type<tc>, window_params = [{transform_indices = @transform_0, window_bounds = array<i64: 16, 128>}, {transform_indices = @transform_1, window_bounds = array<i64: 128, 128>}, {transform_indices = @transform_2, window_bounds = array<i64: 1, 128>}, {transform_indices = @transform_3, window_bounds = array<i64: 16, 128>}]} {
    %c0_i32 = arith.constant 0 : i32
    %0 = arith.cmpi eq, %arg2, %c0_i32 : i32
    %1 = arith.extui %0 : i1 to i32
    %c0_i32_0 = arith.constant 0 : i32
    %2 = arith.cmpi ne, %1, %c0_i32_0 : i32
    scf.if %2 {
      %cst_10 = arith.constant 0.000000e+00 : f32
      %12 = vector.broadcast %cst_10 : f32 to vector<16x128xf32>
      %c0_11 = arith.constant 0 : index
      %c0_12 = arith.constant 0 : index
      %13 = vector.load %arg7[%c0_11, %c0_12] : memref<16x128xf32, #tpu.memory_space<vmem>>, vector<16x128xf32>
      tpu.vector_store %arg7[%c0_11, %c0_12], %12 {strides = array<i32>} : memref<16x128xf32, #tpu.memory_space<vmem>>, vector<16x128xf32>,
    } else {
    }
    %c0 = arith.constant 0 : index
    %c0_1 = arith.constant 0 : index
    %3 = vector.load %arg7[%c0, %c0_1] : memref<16x128xf32, #tpu.memory_space<vmem>>, vector<16x128xf32>
    %c0_2 = arith.constant 0 : index
    %c0_3 = arith.constant 0 : index
    %4 = vector.load %arg3[%c0_2, %c0_3] : memref<16x128xbf16, #tpu.memory_space<vmem>>, vector<16x128xbf16>
    %c0_4 = arith.constant 0 : index
    %c0_5 = arith.constant 0 : index
    %5 = vector.load %arg4[%c0_4, %c0_5] : memref<128x128xbf16, #tpu.memory_space<vmem>>, vector<128x128xbf16>
    %cst = arith.constant dense<0.000000e+00> : vector<16x128xf32>
    %6 = tpu.matmul %4, %5, %cst {dimension_numbers = #tpu.dot_dimension_numbers<[1], [0], [0], [1], [0, 0, 1, 1], [], []>} : vector<16x128xbf16>, vector<128x128xbf16>, vector<16x128xf32> -> vector<16x128xf32>
    %7 = arith.addf %3, %6 : vector<16x128xf32>
    %c0_6 = arith.constant 0 : index
    %c0_7 = arith.constant 0 : index
    %8 = vector.load %arg7[%c0_6, %c0_7] : memref<16x128xf32, #tpu.memory_space<vmem>>, vector<16x128xf32>
    tpu.vector_store %arg7[%c0_6, %c0_7], %7 {strides = array<i32>} : memref<16x128xf32, #tpu.memory_space<vmem>>, vector<16x128xf32>,
    %c0_i32_8 = arith.constant 0 : i32
    %9 = arith.cmpi eq, %arg2, %c0_i32_8 : i32
    %10 = arith.extui %9 : i1 to i32
    %c0_i32_9 = arith.constant 0 : i32
    %11 = arith.cmpi ne, %10, %c0_i32_9 : i32
    scf.if %11 {
      %c0_10 = arith.constant 0 : index
      %c0_11 = arith.constant 0 : index
      %12 = vector.load %arg7[%c0_10, %c0_11] : memref<16x128xf32, #tpu.memory_space<vmem>>, vector<16x128xf32>
      %c0_12 = arith.constant 0 : index
      %c0_13 = arith.constant 0 : index
      %13 = vector.load %arg5[%c0_12, %c0_13] : memref<1x128xf32, #tpu.memory_space<vmem>>, vector<1x128xf32>
      %14 = vector.broadcast %13 : vector<1x128xf32> to vector<16x128xf32>
      %15 = arith.addf %12, %14 : vector<16x128xf32>
      %cst_14 = arith.constant 0.000000e+00 : f32
      %16 = vector.broadcast %cst_14 : f32 to vector<16x128xf32>
      %17 = arith.maximumf %15, %16 : vector<16x128xf32>
      %18 = arith.truncf %17 : vector<16x128xf32> to vector<16x128xbf16>
      %c0_15 = arith.constant 0 : index
      %c0_16 = arith.constant 0 : index
      %19 = vector.load %arg6[%c0_15, %c0_16] : memref<16x128xbf16, #tpu.memory_space<vmem>>, vector<16x128xbf16>
      tpu.vector_store %arg6[%c0_15, %c0_16], %18 {strides = array<i32>} : memref<16x128xbf16, #tpu.memory_space<vmem>>, vector<16x128xbf16>,
    } else {
    }
    return
  }
  func.func @transform_0(%arg0: i32, %arg1: i32, %arg2: i32) -> (i32, i32) {
    %c0_i32 = arith.constant 0 : i32
    return %arg0, %arg2 : i32, i32
  }
  func.func @transform_1(%arg0: i32, %arg1: i32, %arg2: i32) -> (i32, i32) {
    %c0_i32 = arith.constant 0 : i32
    return %arg2, %arg1 : i32, i32
  }
  func.func @transform_2(%arg0: i32, %arg1: i32, %arg2: i32) -> (i32, i32) {
    %c0_i32 = arith.constant 0 : i32
    %c0_i32_0 = arith.constant 0 : i32
    return %c0_i32, %arg1 : i32, i32
  }
  func.func @transform_3(%arg0: i32, %arg1: i32, %arg2: i32) -> (i32, i32) {
    %c0_i32 = arith.constant 0 : i32
    return %arg0, %arg1 : i32, i32
  }
}

module attributes {stable_mosaic.version = 11 : i64} {
  func.func @_grouped_matmul_kernel(%arg0: i32, %arg1: i32, %arg2: memref<1x16x144xbf16, #tpu.memory_space<vmem>>, %arg3: memref<1x144x128xbf16, #tpu.memory_space<vmem>>, %arg4: memref<1x1x128xf32, #tpu.memory_space<vmem>>, %arg5: memref<16x128xbf16, #tpu.memory_space<vmem>>) attributes {dimension_semantics = [#tpu.dimension_semantics<parallel>, #tpu.dimension_semantics<parallel>], iteration_bounds = array<i64: 4, 1>, scalar_prefetch = 0 : i64, scratch_operands = 0 : i64, tpu.core_type = #tpu.core_type<tc>, window_params = [{transform_indices = @transform_0, window_bounds = array<i64: 1, 16, 144>}, {transform_indices = @transform_1, window_bounds = array<i64: 1, 144, 128>}, {transform_indices = @transform_2, window_bounds = array<i64: 1, 1, 128>}, {transform_indices = @transform_3, window_bounds = array<i64: 16, 128>}]} {
    %c0 = arith.constant 0 : index
    %c0_0 = arith.constant 0 : index
    %c0_1 = arith.constant 0 : index
    %0 = vector.load %arg2[%c0, %c0_0, %c0_1] : memref<1x16x144xbf16, #tpu.memory_space<vmem>>, vector<1x16x144xbf16>
    %1 = vector.shape_cast %0 : vector<1x16x144xbf16> to vector<16x144xbf16>
    %c0_2 = arith.constant 0 : index
    %c0_3 = arith.constant 0 : index
    %c0_4 = arith.constant 0 : index
    %2 = vector.load %arg3[%c0_2, %c0_3, %c0_4] : memref<1x144x128xbf16, #tpu.memory_space<vmem>>, vector<1x144x128xbf16>
    %3 = vector.shape_cast %2 : vector<1x144x128xbf16> to vector<144x128xbf16>
    %cst = arith.constant dense<0.000000e+00> : vector<16x128xf32>
    %4 = tpu.matmul %1, %3, %cst {dimension_numbers = #tpu.dot_dimension_numbers<[1], [0], [0], [1], [0, 0, 1, 1], [], []>} : vector<16x144xbf16>, vector<144x128xbf16>, vector<16x128xf32> -> vector<16x128xf32>
    %c0_5 = arith.constant 0 : index
    %c0_6 = arith.constant 0 : index
    %c0_7 = arith.constant 0 : index
    %5 = vector.load %arg4[%c0_5, %c0_6, %c0_7] : memref<1x1x128xf32, #tpu.memory_space<vmem>>, vector<1x1x128xf32>
    %6 = vector.shape_cast %5 : vector<1x1x128xf32> to vector<1x128xf32>
    %7 = vector.broadcast %6 : vector<1x128xf32> to vector<16x128xf32>
    %8 = arith.addf %4, %7 : vector<16x128xf32>
    %cst_8 = arith.constant 0.000000e+00 : f32
    %9 = vector.broadcast %cst_8 : f32 to vector<16x128xf32>
    %10 = arith.maximumf %8, %9 : vector<16x128xf32>
    %11 = arith.truncf %10 : vector<16x128xf32> to vector<16x128xbf16>
    %c0_9 = arith.constant 0 : index
    %c0_10 = arith.constant 0 : index
    %12 = vector.load %arg5[%c0_9, %c0_10] : memref<16x128xbf16, #tpu.memory_space<vmem>>, vector<16x128xbf16>
    tpu.vector_store %arg5[%c0_9, %c0_10], %11 {strides = array<i32>} : memref<16x128xbf16, #tpu.memory_space<vmem>>, vector<16x128xbf16>,
    return
  }
  func.func @transform_0(%arg0: i32, %arg1: i32) -> (i32, i32, i32) {
    %c0_i32 = arith.constant 0 : i32
    %c0_i32_0 = arith.constant 0 : i32
    return %arg0, %arg1, %c0_i32 : i32, i32, i32
  }
  func.func @transform_1(%arg0: i32, %arg1: i32) -> (i32, i32, i32) {
    %c0_i32 = arith.constant 0 : i32
    %c0_i32_0 = arith.constant 0 : i32
    %c0_i32_1 = arith.constant 0 : i32
    return %arg0, %c0_i32, %c0_i32_0 : i32, i32, i32
  }
  func.func @transform_2(%arg0: i32, %arg1: i32) -> (i32, i32, i32) {
    %c0_i32 = arith.constant 0 : i32
    %c0_i32_0 = arith.constant 0 : i32
    %c0_i32_1 = arith.constant 0 : i32
    return %arg0, %c0_i32, %c0_i32_0 : i32, i32, i32
  }
  func.func @transform_3(%arg0: i32, %arg1: i32) -> (i32, i32) {
    %c0_i32 = arith.constant 0 : i32
    return %arg1, %arg0 : i32, i32
  }
}

module attributes {stable_mosaic.version = 11 : i64} {
  func.func @_matmul_kernel(%arg0: i32, %arg1: i32, %arg2: i32, %arg3: memref<16x128xbf16, #tpu.memory_space<vmem>>, %arg4: memref<128x256xbf16, #tpu.memory_space<vmem>>, %arg5: memref<1x256xf32, #tpu.memory_space<vmem>>, %arg6: memref<16x256xbf16, #tpu.memory_space<vmem>>, %arg7: memref<16x256xf32, #tpu.memory_space<vmem>>) attributes {dimension_semantics = [#tpu.dimension_semantics<parallel>, #tpu.dimension_semantics<parallel>, #tpu.dimension_semantics<arbitrary>], iteration_bounds = array<i64: 1, 1, 1>, scalar_prefetch = 0 : i64, scratch_operands = 1 : i64, tpu.core_type = #tpu.core_type<tc>, window_params = [{transform_indices = @transform_0, window_bounds = array<i64: 16, 128>}, {transform_indices = @transform_1, window_bounds = array<i64: 128, 256>}, {transform_indices = @transform_2, window_bounds = array<i64: 1, 256>}, {transform_indices = @transform_3, window_bounds = array<i64: 16, 256>}]} {
    %c0_i32 = arith.constant 0 : i32
    %0 = arith.cmpi eq, %arg2, %c0_i32 : i32
    %1 = arith.extui %0 : i1 to i32
    %c0_i32_0 = arith.constant 0 : i32
    %2 = arith.cmpi ne, %1, %c0_i32_0 : i32
    scf.if %2 {
      %cst_10 = arith.constant 0.000000e+00 : f32
      %12 = vector.broadcast %cst_10 : f32 to vector<16x256xf32>
      %c0_11 = arith.constant 0 : index
      %c0_12 = arith.constant 0 : index
      %13 = vector.load %arg7[%c0_11, %c0_12] : memref<16x256xf32, #tpu.memory_space<vmem>>, vector<16x256xf32>
      tpu.vector_store %arg7[%c0_11, %c0_12], %12 {strides = array<i32>} : memref<16x256xf32, #tpu.memory_space<vmem>>, vector<16x256xf32>,
    } else {
    }
    %c0 = arith.constant 0 : index
    %c0_1 = arith.constant 0 : index
    %3 = vector.load %arg7[%c0, %c0_1] : memref<16x256xf32, #tpu.memory_space<vmem>>, vector<16x256xf32>
    %c0_2 = arith.constant 0 : index
    %c0_3 = arith.constant 0 : index
    %4 = vector.load %arg3[%c0_2, %c0_3] : memref<16x128xbf16, #tpu.memory_space<vmem>>, vector<16x128xbf16>
    %c0_4 = arith.constant 0 : index
    %c0_5 = arith.constant 0 : index
    %5 = vector.load %arg4[%c0_4, %c0_5] : memref<128x256xbf16, #tpu.memory_space<vmem>>, vector<128x256xbf16>
    %cst = arith.constant dense<0.000000e+00> : vector<16x256xf32>
    %6 = tpu.matmul %4, %5, %cst {dimension_numbers = #tpu.dot_dimension_numbers<[1], [0], [0], [1], [0, 0, 1, 1], [], []>} : vector<16x128xbf16>, vector<128x256xbf16>, vector<16x256xf32> -> vector<16x256xf32>
    %7 = arith.addf %3, %6 : vector<16x256xf32>
    %c0_6 = arith.constant 0 : index
    %c0_7 = arith.constant 0 : index
    %8 = vector.load %arg7[%c0_6, %c0_7] : memref<16x256xf32, #tpu.memory_space<vmem>>, vector<16x256xf32>
    tpu.vector_store %arg7[%c0_6, %c0_7], %7 {strides = array<i32>} : memref<16x256xf32, #tpu.memory_space<vmem>>, vector<16x256xf32>,
    %c0_i32_8 = arith.constant 0 : i32
    %9 = arith.cmpi eq, %arg2, %c0_i32_8 : i32
    %10 = arith.extui %9 : i1 to i32
    %c0_i32_9 = arith.constant 0 : i32
    %11 = arith.cmpi ne, %10, %c0_i32_9 : i32
    scf.if %11 {
      %c0_10 = arith.constant 0 : index
      %c0_11 = arith.constant 0 : index
      %12 = vector.load %arg7[%c0_10, %c0_11] : memref<16x256xf32, #tpu.memory_space<vmem>>, vector<16x256xf32>
      %c0_12 = arith.constant 0 : index
      %c0_13 = arith.constant 0 : index
      %13 = vector.load %arg5[%c0_12, %c0_13] : memref<1x256xf32, #tpu.memory_space<vmem>>, vector<1x256xf32>
      %14 = vector.broadcast %13 : vector<1x256xf32> to vector<16x256xf32>
      %15 = arith.addf %12, %14 : vector<16x256xf32>
      %16 = arith.truncf %15 : vector<16x256xf32> to vector<16x256xbf16>
      %c0_14 = arith.constant 0 : index
      %c0_15 = arith.constant 0 : index
      %17 = vector.load %arg6[%c0_14, %c0_15] : memref<16x256xbf16, #tpu.memory_space<vmem>>, vector<16x256xbf16>
      tpu.vector_store %arg6[%c0_14, %c0_15], %16 {strides = array<i32>} : memref<16x256xbf16, #tpu.memory_space<vmem>>, vector<16x256xbf16>,
    } else {
    }
    return
  }
  func.func @transform_0(%arg0: i32, %arg1: i32, %arg2: i32) -> (i32, i32) {
    %c0_i32 = arith.constant 0 : i32
    return %arg0, %arg2 : i32, i32
  }
  func.func @transform_1(%arg0: i32, %arg1: i32, %arg2: i32) -> (i32, i32) {
    %c0_i32 = arith.constant 0 : i32
    return %arg2, %arg1 : i32, i32
  }
  func.func @transform_2(%arg0: i32, %arg1: i32, %arg2: i32) -> (i32, i32) {
    %c0_i32 = arith.constant 0 : i32
    %c0_i32_0 = arith.constant 0 : i32
    return %c0_i32, %arg1 : i32, i32
  }
  func.func @transform_3(%arg0: i32, %arg1: i32, %arg2: i32) -> (i32, i32) {
    %c0_i32 = arith.constant 0 : i32
    return %arg0, %arg1 : i32, i32
  }
}

module attributes {stable_mosaic.version = 11 : i64} {
  func.func @_matmul_kernel(%arg0: i32, %arg1: i32, %arg2: i32, %arg3: memref<16x128xbf16, #tpu.memory_space<vmem>>, %arg4: memref<128x256xbf16, #tpu.memory_space<vmem>>, %arg5: memref<1x256xf32, #tpu.memory_space<vmem>>, %arg6: memref<16x256xbf16, #tpu.memory_space<vmem>>, %arg7: memref<16x256xbf16, #tpu.memory_space<vmem>>, %arg8: memref<16x256xf32, #tpu.memory_space<vmem>>) attributes {dimension_semantics = [#tpu.dimension_semantics<parallel>, #tpu.dimension_semantics<parallel>, #tpu.dimension_semantics<arbitrary>], iteration_bounds = array<i64: 1, 1, 1>, scalar_prefetch = 0 : i64, scratch_operands = 1 : i64, tpu.core_type = #tpu.core_type<tc>, window_params = [{transform_indices = @transform_0, window_bounds = array<i64: 16, 128>}, {transform_indices = @transform_1, window_bounds = array<i64: 128, 256>}, {transform_indices = @transform_2, window_bounds = array<i64: 1, 256>}, {transform_indices = @transform_3, window_bounds = array<i64: 16, 256>}, {transform_indices = @transform_4, window_bounds = array<i64: 16, 256>}]} {
    %c0_i32 = arith.constant 0 : i32
    %0 = arith.cmpi eq, %arg2, %c0_i32 : i32
    %1 = arith.extui %0 : i1 to i32
    %c0_i32_0 = arith.constant 0 : i32
    %2 = arith.cmpi ne, %1, %c0_i32_0 : i32
    scf.if %2 {
      %cst_10 = arith.constant 0.000000e+00 : f32
      %12 = vector.broadcast %cst_10 : f32 to vector<16x256xf32>
      %c0_11 = arith.constant 0 : index
      %c0_12 = arith.constant 0 : index
      %13 = vector.load %arg8[%c0_11, %c0_12] : memref<16x256xf32, #tpu.memory_space<vmem>>, vector<16x256xf32>
      tpu.vector_store %arg8[%c0_11, %c0_12], %12 {strides = array<i32>} : memref<16x256xf32, #tpu.memory_space<vmem>>, vector<16x256xf32>,
    } else {
    }
    %c0 = arith.constant 0 : index
    %c0_1 = arith.constant 0 : index
    %3 = vector.load %arg8[%c0, %c0_1] : memref<16x256xf32, #tpu.memory_space<vmem>>, vector<16x256xf32>
    %c0_2 = arith.constant 0 : index
    %c0_3 = arith.constant 0 : index
    %4 = vector.load %arg3[%c0_2, %c0_3] : memref<16x128xbf16, #tpu.memory_space<vmem>>, vector<16x128xbf16>
    %c0_4 = arith.constant 0 : index
    %c0_5 = arith.constant 0 : index
    %5 = vector.load %arg4[%c0_4, %c0_5] : memref<128x256xbf16, #tpu.memory_space<vmem>>, vector<128x256xbf16>
    %cst = arith.constant dense<0.000000e+00> : vector<16x256xf32>
    %6 = tpu.matmul %4, %5, %cst {dimension_numbers = #tpu.dot_dimension_numbers<[1], [0], [0], [1], [0, 0, 1, 1], [], []>} : vector<16x128xbf16>, vector<128x256xbf16>, vector<16x256xf32> -> vector<16x256xf32>
    %7 = arith.addf %3, %6 : vector<16x256xf32>
    %c0_6 = arith.constant 0 : index
    %c0_7 = arith.constant 0 : index
    %8 = vector.load %arg8[%c0_6, %c0_7] : memref<16x256xf32, #tpu.memory_space<vmem>>, vector<16x256xf32>
    tpu.vector_store %arg8[%c0_6, %c0_7], %7 {strides = array<i32>} : memref<16x256xf32, #tpu.memory_space<vmem>>, vector<16x256xf32>,
    %c0_i32_8 = arith.constant 0 : i32
    %9 = arith.cmpi eq, %arg2, %c0_i32_8 : i32
    %10 = arith.extui %9 : i1 to i32
    %c0_i32_9 = arith.constant 0 : i32
    %11 = arith.cmpi ne, %10, %c0_i32_9 : i32
    scf.if %11 {
      %c0_10 = arith.constant 0 : index
      %c0_11 = arith.constant 0 : index
      %12 = vector.load %arg8[%c0_10, %c0_11] : memref<16x256xf32, #tpu.memory_space<vmem>>, vector<16x256xf32>
      %c0_12 = arith.constant 0 : index
      %c0_13 = arith.constant 0 : index
      %13 = vector.load %arg5[%c0_12, %c0_13] : memref<1x256xf32, #tpu.memory_space<vmem>>, vector<1x256xf32>
      %14 = vector.broadcast %13 : vector<1x256xf32> to vector<16x256xf32>
      %15 = arith.addf %12, %14 : vector<16x256xf32>
      %c0_14 = arith.constant 0 : index
      %c0_15 = arith.constant 0 : index
      %16 = vector.load %arg6[%c0_14, %c0_15] : memref<16x256xbf16, #tpu.memory_space<vmem>>, vector<16x256xbf16>
      %17 = arith.extf %16 : vector<16x256xbf16> to vector<16x256xf32>
      %18 = arith.addf %15, %17 : vector<16x256xf32>
      %cst_16 = arith.constant 0.000000e+00 : f32
      %19 = vector.broadcast %cst_16 : f32 to vector<16x256xf32>
      %20 = arith.maximumf %18, %19 : vector<16x256xf32>
      %21 = arith.truncf %20 : vector<16x256xf32> to vector<16x256xbf16>
      %c0_17 = arith.constant 0 : index
      %c0_18 = arith.constant 0 : index
      %22 = vector.load %arg7[%c0_17, %c0_18] : memref<16x256xbf16, #tpu.memory_space<vmem>>, vector<16x256xbf16>
      tpu.vector_store %arg7[%c0_17, %c0_18], %21 {strides = array<i32>} : memref<16x256xbf16, #tpu.memory_space<vmem>>, vector<16x256xbf16>,
    } else {
    }
    return
  }
  func.func @transform_0(%arg0: i32, %arg1: i32, %arg2: i32) -> (i32, i32) {
    %c0_i32 = arith.constant 0 : i32
    return %arg0, %arg2 : i32, i32
  }
  func.func @transform_1(%arg0: i32, %arg1: i32, %arg2: i32) -> (i32, i32) {
    %c0_i32 = arith.constant 0 : i32
    return %arg2, %arg1 : i32, i32
  }
  func.func @transform_2(%arg0: i32, %arg1: i32, %arg2: i32) -> (i32, i32) {
    %c0_i32 = arith.constant 0 : i32
    %c0_i32_0 = arith.constant 0 : i32
    return %c0_i32, %arg1 : i32, i32
  }
  func.func @transform_3(%arg0: i32, %arg1: i32, %arg2: i32) -> (i32, i32) {
    %c0_i32 = arith.constant 0 : i32
    return %arg0, %arg1 : i32, i32
  }
  func.func @transform_4(%arg0: i32, %arg1: i32, %arg2: i32) -> (i32, i32) {
    %c0_i32 = arith.constant 0 : i32
    return %arg0, %arg1 : i32, i32
  }
}

module attributes {stable_mosaic.version = 11 : i64} {
  func.func @_matmul_kernel(%arg0: i32, %arg1: i32, %arg2: i32, %arg3: memref<16x256xbf16, #tpu.memory_space<vmem>>, %arg4: memref<256x512xbf16, #tpu.memory_space<vmem>>, %arg5: memref<1x512xf32, #tpu.memory_space<vmem>>, %arg6: memref<16x512xbf16, #tpu.memory_space<vmem>>, %arg7: memref<16x512xf32, #tpu.memory_space<vmem>>) attributes {dimension_semantics = [#tpu.dimension_semantics<parallel>, #tpu.dimension_semantics<parallel>, #tpu.dimension_semantics<arbitrary>], iteration_bounds = array<i64: 1, 1, 1>, scalar_prefetch = 0 : i64, scratch_operands = 1 : i64, tpu.core_type = #tpu.core_type<tc>, window_params = [{transform_indices = @transform_0, window_bounds = array<i64: 16, 256>}, {transform_indices = @transform_1, window_bounds = array<i64: 256, 512>}, {transform_indices = @transform_2, window_bounds = array<i64: 1, 512>}, {transform_indices = @transform_3, window_bounds = array<i64: 16, 512>}]} {
    %c0_i32 = arith.constant 0 : i32
    %0 = arith.cmpi eq, %arg2, %c0_i32 : i32
    %1 = arith.extui %0 : i1 to i32
    %c0_i32_0 = arith.constant 0 : i32
    %2 = arith.cmpi ne, %1, %c0_i32_0 : i32
    scf.if %2 {
      %cst_10 = arith.constant 0.000000e+00 : f32
      %12 = vector.broadcast %cst_10 : f32 to vector<16x512xf32>
      %c0_11 = arith.constant 0 : index
      %c0_12 = arith.constant 0 : index
      %13 = vector.load %arg7[%c0_11, %c0_12] : memref<16x512xf32, #tpu.memory_space<vmem>>, vector<16x512xf32>
      tpu.vector_store %arg7[%c0_11, %c0_12], %12 {strides = array<i32>} : memref<16x512xf32, #tpu.memory_space<vmem>>, vector<16x512xf32>,
    } else {
    }
    %c0 = arith.constant 0 : index
    %c0_1 = arith.constant 0 : index
    %3 = vector.load %arg7[%c0, %c0_1] : memref<16x512xf32, #tpu.memory_space<vmem>>, vector<16x512xf32>
    %c0_2 = arith.constant 0 : index
    %c0_3 = arith.constant 0 : index
    %4 = vector.load %arg3[%c0_2, %c0_3] : memref<16x256xbf16, #tpu.memory_space<vmem>>, vector<16x256xbf16>
    %c0_4 = arith.constant 0 : index
    %c0_5 = arith.constant 0 : index
    %5 = vector.load %arg4[%c0_4, %c0_5] : memref<256x512xbf16, #tpu.memory_space<vmem>>, vector<256x512xbf16>
    %cst = arith.constant dense<0.000000e+00> : vector<16x512xf32>
    %6 = tpu.matmul %4, %5, %cst {dimension_numbers = #tpu.dot_dimension_numbers<[1], [0], [0], [1], [0, 0, 1, 1], [], []>} : vector<16x256xbf16>, vector<256x512xbf16>, vector<16x512xf32> -> vector<16x512xf32>
    %7 = arith.addf %3, %6 : vector<16x512xf32>
    %c0_6 = arith.constant 0 : index
    %c0_7 = arith.constant 0 : index
    %8 = vector.load %arg7[%c0_6, %c0_7] : memref<16x512xf32, #tpu.memory_space<vmem>>, vector<16x512xf32>
    tpu.vector_store %arg7[%c0_6, %c0_7], %7 {strides = array<i32>} : memref<16x512xf32, #tpu.memory_space<vmem>>, vector<16x512xf32>,
    %c0_i32_8 = arith.constant 0 : i32
    %9 = arith.cmpi eq, %arg2, %c0_i32_8 : i32
    %10 = arith.extui %9 : i1 to i32
    %c0_i32_9 = arith.constant 0 : i32
    %11 = arith.cmpi ne, %10, %c0_i32_9 : i32
    scf.if %11 {
      %c0_10 = arith.constant 0 : index
      %c0_11 = arith.constant 0 : index
      %12 = vector.load %arg7[%c0_10, %c0_11] : memref<16x512xf32, #tpu.memory_space<vmem>>, vector<16x512xf32>
      %c0_12 = arith.constant 0 : index
      %c0_13 = arith.constant 0 : index
      %13 = vector.load %arg5[%c0_12, %c0_13] : memref<1x512xf32, #tpu.memory_space<vmem>>, vector<1x512xf32>
      %14 = vector.broadcast %13 : vector<1x512xf32> to vector<16x512xf32>
      %15 = arith.addf %12, %14 : vector<16x512xf32>
      %16 = arith.truncf %15 : vector<16x512xf32> to vector<16x512xbf16>
      %c0_14 = arith.constant 0 : index
      %c0_15 = arith.constant 0 : index
      %17 = vector.load %arg6[%c0_14, %c0_15] : memref<16x512xbf16, #tpu.memory_space<vmem>>, vector<16x512xbf16>
      tpu.vector_store %arg6[%c0_14, %c0_15], %16 {strides = array<i32>} : memref<16x512xbf16, #tpu.memory_space<vmem>>, vector<16x512xbf16>,
    } else {
    }
    return
  }
  func.func @transform_0(%arg0: i32, %arg1: i32, %arg2: i32) -> (i32, i32) {
    %c0_i32 = arith.constant 0 : i32
    return %arg0, %arg2 : i32, i32
  }
  func.func @transform_1(%arg0: i32, %arg1: i32, %arg2: i32) -> (i32, i32) {
    %c0_i32 = arith.constant 0 : i32
    return %arg2, %arg1 : i32, i32
  }
  func.func @transform_2(%arg0: i32, %arg1: i32, %arg2: i32) -> (i32, i32) {
    %c0_i32 = arith.constant 0 : i32
    %c0_i32_0 = arith.constant 0 : i32
    return %c0_i32, %arg1 : i32, i32
  }
  func.func @transform_3(%arg0: i32, %arg1: i32, %arg2: i32) -> (i32, i32) {
    %c0_i32 = arith.constant 0 : i32
    return %arg0, %arg1 : i32, i32
  }
}

module attributes {stable_mosaic.version = 11 : i64} {
  func.func @_matmul_kernel(%arg0: i32, %arg1: i32, %arg2: i32, %arg3: memref<16x256xbf16, #tpu.memory_space<vmem>>, %arg4: memref<256x128xbf16, #tpu.memory_space<vmem>>, %arg5: memref<1x128xf32, #tpu.memory_space<vmem>>, %arg6: memref<16x128xbf16, #tpu.memory_space<vmem>>, %arg7: memref<16x128xf32, #tpu.memory_space<vmem>>) attributes {dimension_semantics = [#tpu.dimension_semantics<parallel>, #tpu.dimension_semantics<parallel>, #tpu.dimension_semantics<arbitrary>], iteration_bounds = array<i64: 1, 1, 1>, scalar_prefetch = 0 : i64, scratch_operands = 1 : i64, tpu.core_type = #tpu.core_type<tc>, window_params = [{transform_indices = @transform_0, window_bounds = array<i64: 16, 256>}, {transform_indices = @transform_1, window_bounds = array<i64: 256, 128>}, {transform_indices = @transform_2, window_bounds = array<i64: 1, 128>}, {transform_indices = @transform_3, window_bounds = array<i64: 16, 128>}]} {
    %c0_i32 = arith.constant 0 : i32
    %0 = arith.cmpi eq, %arg2, %c0_i32 : i32
    %1 = arith.extui %0 : i1 to i32
    %c0_i32_0 = arith.constant 0 : i32
    %2 = arith.cmpi ne, %1, %c0_i32_0 : i32
    scf.if %2 {
      %cst_10 = arith.constant 0.000000e+00 : f32
      %12 = vector.broadcast %cst_10 : f32 to vector<16x128xf32>
      %c0_11 = arith.constant 0 : index
      %c0_12 = arith.constant 0 : index
      %13 = vector.load %arg7[%c0_11, %c0_12] : memref<16x128xf32, #tpu.memory_space<vmem>>, vector<16x128xf32>
      tpu.vector_store %arg7[%c0_11, %c0_12], %12 {strides = array<i32>} : memref<16x128xf32, #tpu.memory_space<vmem>>, vector<16x128xf32>,
    } else {
    }
    %c0 = arith.constant 0 : index
    %c0_1 = arith.constant 0 : index
    %3 = vector.load %arg7[%c0, %c0_1] : memref<16x128xf32, #tpu.memory_space<vmem>>, vector<16x128xf32>
    %c0_2 = arith.constant 0 : index
    %c0_3 = arith.constant 0 : index
    %4 = vector.load %arg3[%c0_2, %c0_3] : memref<16x256xbf16, #tpu.memory_space<vmem>>, vector<16x256xbf16>
    %c0_4 = arith.constant 0 : index
    %c0_5 = arith.constant 0 : index
    %5 = vector.load %arg4[%c0_4, %c0_5] : memref<256x128xbf16, #tpu.memory_space<vmem>>, vector<256x128xbf16>
    %cst = arith.constant dense<0.000000e+00> : vector<16x128xf32>
    %6 = tpu.matmul %4, %5, %cst {dimension_numbers = #tpu.dot_dimension_numbers<[1], [0], [0], [1], [0, 0, 1, 1], [], []>} : vector<16x256xbf16>, vector<256x128xbf16>, vector<16x128xf32> -> vector<16x128xf32>
    %7 = arith.addf %3, %6 : vector<16x128xf32>
    %c0_6 = arith.constant 0 : index
    %c0_7 = arith.constant 0 : index
    %8 = vector.load %arg7[%c0_6, %c0_7] : memref<16x128xf32, #tpu.memory_space<vmem>>, vector<16x128xf32>
    tpu.vector_store %arg7[%c0_6, %c0_7], %7 {strides = array<i32>} : memref<16x128xf32, #tpu.memory_space<vmem>>, vector<16x128xf32>,
    %c0_i32_8 = arith.constant 0 : i32
    %9 = arith.cmpi eq, %arg2, %c0_i32_8 : i32
    %10 = arith.extui %9 : i1 to i32
    %c0_i32_9 = arith.constant 0 : i32
    %11 = arith.cmpi ne, %10, %c0_i32_9 : i32
    scf.if %11 {
      %c0_10 = arith.constant 0 : index
      %c0_11 = arith.constant 0 : index
      %12 = vector.load %arg7[%c0_10, %c0_11] : memref<16x128xf32, #tpu.memory_space<vmem>>, vector<16x128xf32>
      %c0_12 = arith.constant 0 : index
      %c0_13 = arith.constant 0 : index
      %13 = vector.load %arg5[%c0_12, %c0_13] : memref<1x128xf32, #tpu.memory_space<vmem>>, vector<1x128xf32>
      %14 = vector.broadcast %13 : vector<1x128xf32> to vector<16x128xf32>
      %15 = arith.addf %12, %14 : vector<16x128xf32>
      %cst_14 = arith.constant 0.000000e+00 : f32
      %16 = vector.broadcast %cst_14 : f32 to vector<16x128xf32>
      %17 = arith.maximumf %15, %16 : vector<16x128xf32>
      %18 = arith.truncf %17 : vector<16x128xf32> to vector<16x128xbf16>
      %c0_15 = arith.constant 0 : index
      %c0_16 = arith.constant 0 : index
      %19 = vector.load %arg6[%c0_15, %c0_16] : memref<16x128xbf16, #tpu.memory_space<vmem>>, vector<16x128xbf16>
      tpu.vector_store %arg6[%c0_15, %c0_16], %18 {strides = array<i32>} : memref<16x128xbf16, #tpu.memory_space<vmem>>, vector<16x128xbf16>,
    } else {
    }
    return
  }
  func.func @transform_0(%arg0: i32, %arg1: i32, %arg2: i32) -> (i32, i32) {
    %c0_i32 = arith.constant 0 : i32
    return %arg0, %arg2 : i32, i32
  }
  func.func @transform_1(%arg0: i32, %arg1: i32, %arg2: i32) -> (i32, i32) {
    %c0_i32 = arith.constant 0 : i32
    return %arg2, %arg1 : i32, i32
  }
  func.func @transform_2(%arg0: i32, %arg1: i32, %arg2: i32) -> (i32, i32) {
    %c0_i32 = arith.constant 0 : i32
    %c0_i32_0 = arith.constant 0 : i32
    return %c0_i32, %arg1 : i32, i32
  }
  func.func @transform_3(%arg0: i32, %arg1: i32, %arg2: i32) -> (i32, i32) {
    %c0_i32 = arith.constant 0 : i32
    return %arg0, %arg1 : i32, i32
  }
}

module attributes {stable_mosaic.version = 11 : i64} {
  func.func @_grouped_matmul_kernel(%arg0: i32, %arg1: i32, %arg2: memref<1x16x288xbf16, #tpu.memory_space<vmem>>, %arg3: memref<1x288x128xbf16, #tpu.memory_space<vmem>>, %arg4: memref<1x1x128xf32, #tpu.memory_space<vmem>>, %arg5: memref<16x128xbf16, #tpu.memory_space<vmem>>) attributes {dimension_semantics = [#tpu.dimension_semantics<parallel>, #tpu.dimension_semantics<parallel>], iteration_bounds = array<i64: 4, 1>, scalar_prefetch = 0 : i64, scratch_operands = 0 : i64, tpu.core_type = #tpu.core_type<tc>, window_params = [{transform_indices = @transform_0, window_bounds = array<i64: 1, 16, 288>}, {transform_indices = @transform_1, window_bounds = array<i64: 1, 288, 128>}, {transform_indices = @transform_2, window_bounds = array<i64: 1, 1, 128>}, {transform_indices = @transform_3, window_bounds = array<i64: 16, 128>}]} {
    %c0 = arith.constant 0 : index
    %c0_0 = arith.constant 0 : index
    %c0_1 = arith.constant 0 : index
    %0 = vector.load %arg2[%c0, %c0_0, %c0_1] : memref<1x16x288xbf16, #tpu.memory_space<vmem>>, vector<1x16x288xbf16>
    %1 = vector.shape_cast %0 : vector<1x16x288xbf16> to vector<16x288xbf16>
    %c0_2 = arith.constant 0 : index
    %c0_3 = arith.constant 0 : index
    %c0_4 = arith.constant 0 : index
    %2 = vector.load %arg3[%c0_2, %c0_3, %c0_4] : memref<1x288x128xbf16, #tpu.memory_space<vmem>>, vector<1x288x128xbf16>
    %3 = vector.shape_cast %2 : vector<1x288x128xbf16> to vector<288x128xbf16>
    %cst = arith.constant dense<0.000000e+00> : vector<16x128xf32>
    %4 = tpu.matmul %1, %3, %cst {dimension_numbers = #tpu.dot_dimension_numbers<[1], [0], [0], [1], [0, 0, 1, 1], [], []>} : vector<16x288xbf16>, vector<288x128xbf16>, vector<16x128xf32> -> vector<16x128xf32>
    %c0_5 = arith.constant 0 : index
    %c0_6 = arith.constant 0 : index
    %c0_7 = arith.constant 0 : index
    %5 = vector.load %arg4[%c0_5, %c0_6, %c0_7] : memref<1x1x128xf32, #tpu.memory_space<vmem>>, vector<1x1x128xf32>
    %6 = vector.shape_cast %5 : vector<1x1x128xf32> to vector<1x128xf32>
    %7 = vector.broadcast %6 : vector<1x128xf32> to vector<16x128xf32>
    %8 = arith.addf %4, %7 : vector<16x128xf32>
    %cst_8 = arith.constant 0.000000e+00 : f32
    %9 = vector.broadcast %cst_8 : f32 to vector<16x128xf32>
    %10 = arith.maximumf %8, %9 : vector<16x128xf32>
    %11 = arith.truncf %10 : vector<16x128xf32> to vector<16x128xbf16>
    %c0_9 = arith.constant 0 : index
    %c0_10 = arith.constant 0 : index
    %12 = vector.load %arg5[%c0_9, %c0_10] : memref<16x128xbf16, #tpu.memory_space<vmem>>, vector<16x128xbf16>
    tpu.vector_store %arg5[%c0_9, %c0_10], %11 {strides = array<i32>} : memref<16x128xbf16, #tpu.memory_space<vmem>>, vector<16x128xbf16>,
    return
  }
  func.func @transform_0(%arg0: i32, %arg1: i32) -> (i32, i32, i32) {
    %c0_i32 = arith.constant 0 : i32
    %c0_i32_0 = arith.constant 0 : i32
    return %arg0, %arg1, %c0_i32 : i32, i32, i32
  }
  func.func @transform_1(%arg0: i32, %arg1: i32) -> (i32, i32, i32) {
    %c0_i32 = arith.constant 0 : i32
    %c0_i32_0 = arith.constant 0 : i32
    %c0_i32_1 = arith.constant 0 : i32
    return %arg0, %c0_i32, %c0_i32_0 : i32, i32, i32
  }
  func.func @transform_2(%arg0: i32, %arg1: i32) -> (i32, i32, i32) {
    %c0_i32 = arith.constant 0 : i32
    %c0_i32_0 = arith.constant 0 : i32
    %c0_i32_1 = arith.constant 0 : i32
    return %arg0, %c0_i32, %c0_i32_0 : i32, i32, i32
  }
  func.func @transform_3(%arg0: i32, %arg1: i32) -> (i32, i32) {
    %c0_i32 = arith.constant 0 : i32
    return %arg1, %arg0 : i32, i32
  }
}

module attributes {stable_mosaic.version = 11 : i64} {
  func.func @_matmul_kernel(%arg0: i32, %arg1: i32, %arg2: i32, %arg3: memref<16x128xbf16, #tpu.memory_space<vmem>>, %arg4: memref<128x512xbf16, #tpu.memory_space<vmem>>, %arg5: memref<1x512xf32, #tpu.memory_space<vmem>>, %arg6: memref<16x512xbf16, #tpu.memory_space<vmem>>, %arg7: memref<16x512xbf16, #tpu.memory_space<vmem>>, %arg8: memref<16x512xf32, #tpu.memory_space<vmem>>) attributes {dimension_semantics = [#tpu.dimension_semantics<parallel>, #tpu.dimension_semantics<parallel>, #tpu.dimension_semantics<arbitrary>], iteration_bounds = array<i64: 1, 1, 1>, scalar_prefetch = 0 : i64, scratch_operands = 1 : i64, tpu.core_type = #tpu.core_type<tc>, window_params = [{transform_indices = @transform_0, window_bounds = array<i64: 16, 128>}, {transform_indices = @transform_1, window_bounds = array<i64: 128, 512>}, {transform_indices = @transform_2, window_bounds = array<i64: 1, 512>}, {transform_indices = @transform_3, window_bounds = array<i64: 16, 512>}, {transform_indices = @transform_4, window_bounds = array<i64: 16, 512>}]} {
    %c0_i32 = arith.constant 0 : i32
    %0 = arith.cmpi eq, %arg2, %c0_i32 : i32
    %1 = arith.extui %0 : i1 to i32
    %c0_i32_0 = arith.constant 0 : i32
    %2 = arith.cmpi ne, %1, %c0_i32_0 : i32
    scf.if %2 {
      %cst_10 = arith.constant 0.000000e+00 : f32
      %12 = vector.broadcast %cst_10 : f32 to vector<16x512xf32>
      %c0_11 = arith.constant 0 : index
      %c0_12 = arith.constant 0 : index
      %13 = vector.load %arg8[%c0_11, %c0_12] : memref<16x512xf32, #tpu.memory_space<vmem>>, vector<16x512xf32>
      tpu.vector_store %arg8[%c0_11, %c0_12], %12 {strides = array<i32>} : memref<16x512xf32, #tpu.memory_space<vmem>>, vector<16x512xf32>,
    } else {
    }
    %c0 = arith.constant 0 : index
    %c0_1 = arith.constant 0 : index
    %3 = vector.load %arg8[%c0, %c0_1] : memref<16x512xf32, #tpu.memory_space<vmem>>, vector<16x512xf32>
    %c0_2 = arith.constant 0 : index
    %c0_3 = arith.constant 0 : index
    %4 = vector.load %arg3[%c0_2, %c0_3] : memref<16x128xbf16, #tpu.memory_space<vmem>>, vector<16x128xbf16>
    %c0_4 = arith.constant 0 : index
    %c0_5 = arith.constant 0 : index
    %5 = vector.load %arg4[%c0_4, %c0_5] : memref<128x512xbf16, #tpu.memory_space<vmem>>, vector<128x512xbf16>
    %cst = arith.constant dense<0.000000e+00> : vector<16x512xf32>
    %6 = tpu.matmul %4, %5, %cst {dimension_numbers = #tpu.dot_dimension_numbers<[1], [0], [0], [1], [0, 0, 1, 1], [], []>} : vector<16x128xbf16>, vector<128x512xbf16>, vector<16x512xf32> -> vector<16x512xf32>
    %7 = arith.addf %3, %6 : vector<16x512xf32>
    %c0_6 = arith.constant 0 : index
    %c0_7 = arith.constant 0 : index
    %8 = vector.load %arg8[%c0_6, %c0_7] : memref<16x512xf32, #tpu.memory_space<vmem>>, vector<16x512xf32>
    tpu.vector_store %arg8[%c0_6, %c0_7], %7 {strides = array<i32>} : memref<16x512xf32, #tpu.memory_space<vmem>>, vector<16x512xf32>,
    %c0_i32_8 = arith.constant 0 : i32
    %9 = arith.cmpi eq, %arg2, %c0_i32_8 : i32
    %10 = arith.extui %9 : i1 to i32
    %c0_i32_9 = arith.constant 0 : i32
    %11 = arith.cmpi ne, %10, %c0_i32_9 : i32
    scf.if %11 {
      %c0_10 = arith.constant 0 : index
      %c0_11 = arith.constant 0 : index
      %12 = vector.load %arg8[%c0_10, %c0_11] : memref<16x512xf32, #tpu.memory_space<vmem>>, vector<16x512xf32>
      %c0_12 = arith.constant 0 : index
      %c0_13 = arith.constant 0 : index
      %13 = vector.load %arg5[%c0_12, %c0_13] : memref<1x512xf32, #tpu.memory_space<vmem>>, vector<1x512xf32>
      %14 = vector.broadcast %13 : vector<1x512xf32> to vector<16x512xf32>
      %15 = arith.addf %12, %14 : vector<16x512xf32>
      %c0_14 = arith.constant 0 : index
      %c0_15 = arith.constant 0 : index
      %16 = vector.load %arg6[%c0_14, %c0_15] : memref<16x512xbf16, #tpu.memory_space<vmem>>, vector<16x512xbf16>
      %17 = arith.extf %16 : vector<16x512xbf16> to vector<16x512xf32>
      %18 = arith.addf %15, %17 : vector<16x512xf32>
      %cst_16 = arith.constant 0.000000e+00 : f32
      %19 = vector.broadcast %cst_16 : f32 to vector<16x512xf32>
      %20 = arith.maximumf %18, %19 : vector<16x512xf32>
      %21 = arith.truncf %20 : vector<16x512xf32> to vector<16x512xbf16>
      %c0_17 = arith.constant 0 : index
      %c0_18 = arith.constant 0 : index
      %22 = vector.load %arg7[%c0_17, %c0_18] : memref<16x512xbf16, #tpu.memory_space<vmem>>, vector<16x512xbf16>
      tpu.vector_store %arg7[%c0_17, %c0_18], %21 {strides = array<i32>} : memref<16x512xbf16, #tpu.memory_space<vmem>>, vector<16x512xbf16>,
    } else {
    }
    return
  }
  func.func @transform_0(%arg0: i32, %arg1: i32, %arg2: i32) -> (i32, i32) {
    %c0_i32 = arith.constant 0 : i32
    return %arg0, %arg2 : i32, i32
  }
  func.func @transform_1(%arg0: i32, %arg1: i32, %arg2: i32) -> (i32, i32) {
    %c0_i32 = arith.constant 0 : i32
    return %arg2, %arg1 : i32, i32
  }
  func.func @transform_2(%arg0: i32, %arg1: i32, %arg2: i32) -> (i32, i32) {
    %c0_i32 = arith.constant 0 : i32
    %c0_i32_0 = arith.constant 0 : i32
    return %c0_i32, %arg1 : i32, i32
  }
  func.func @transform_3(%arg0: i32, %arg1: i32, %arg2: i32) -> (i32, i32) {
    %c0_i32 = arith.constant 0 : i32
    return %arg0, %arg1 : i32, i32
  }
  func.func @transform_4(%arg0: i32, %arg1: i32, %arg2: i32) -> (i32, i32) {
    %c0_i32 = arith.constant 0 : i32
    return %arg0, %arg1 : i32, i32
  }
}

module attributes {stable_mosaic.version = 11 : i64} {
  func.func @_avgpool_kernel(%arg0: i32, %arg1: memref<1x1x512xbf16, #tpu.memory_space<vmem>>, %arg2: memref<1x1x512xf32, #tpu.memory_space<vmem>>) attributes {dimension_semantics = [#tpu.dimension_semantics<parallel>], iteration_bounds = array<i64: 2>, scalar_prefetch = 0 : i64, scratch_operands = 0 : i64, tpu.core_type = #tpu.core_type<tc>, window_params = [{transform_indices = @transform_0, window_bounds = array<i64: 1, 1, 512>}, {transform_indices = @transform_1, window_bounds = array<i64: 1, 1, 512>}]} {
    %c0 = arith.constant 0 : index
    %c0_0 = arith.constant 0 : index
    %c0_1 = arith.constant 0 : index
    %0 = vector.load %arg1[%c0, %c0_0, %c0_1] : memref<1x1x512xbf16, #tpu.memory_space<vmem>>, vector<1x1x512xbf16>
    %1 = arith.extf %0 : vector<1x1x512xbf16> to vector<1x1x512xf32>
    %cst = arith.constant dense<0.000000e+00> : vector<1x512xf32>
    %2 = vector.multi_reduction <add>, %1, %cst [1] : vector<1x1x512xf32> to vector<1x512xf32>
    %3 = vector.shape_cast %2 : vector<1x512xf32> to vector<1x1x512xf32>
    %cst_2 = arith.constant 1.000000e+00 : f32
    %4 = vector.broadcast %cst_2 : f32 to vector<1x1x512xf32>
    %5 = arith.divf %3, %4 : vector<1x1x512xf32>
    %c0_3 = arith.constant 0 : index
    %c0_4 = arith.constant 0 : index
    %c0_5 = arith.constant 0 : index
    %6 = vector.load %arg2[%c0_3, %c0_4, %c0_5] : memref<1x1x512xf32, #tpu.memory_space<vmem>>, vector<1x1x512xf32>
    tpu.vector_store %arg2[%c0_3, %c0_4, %c0_5], %5 {strides = array<i32>} : memref<1x1x512xf32, #tpu.memory_space<vmem>>, vector<1x1x512xf32>,
    return
  }
  func.func @transform_0(%arg0: i32) -> (i32, i32, i32) {
    %c0_i32 = arith.constant 0 : i32
    %c0_i32_0 = arith.constant 0 : i32
    %c0_i32_1 = arith.constant 0 : i32
    return %arg0, %c0_i32, %c0_i32_0 : i32, i32, i32
  }
  func.func @transform_1(%arg0: i32) -> (i32, i32, i32) {
    %c0_i32 = arith.constant 0 : i32
    %c0_i32_0 = arith.constant 0 : i32
    %c0_i32_1 = arith.constant 0 : i32
    return %arg0, %c0_i32, %c0_i32_0 : i32, i32, i32
  }
}

module attributes {stable_mosaic.version = 11 : i64} {
  func.func @_head_kernel(%arg0: i32, %arg1: memref<8x512xbf16, #tpu.memory_space<vmem>>, %arg2: memref<512x128xbf16, #tpu.memory_space<vmem>>, %arg3: memref<1x128xf32, #tpu.memory_space<vmem>>, %arg4: memref<128x128xbf16, #tpu.memory_space<vmem>>, %arg5: memref<1x128xf32, #tpu.memory_space<vmem>>, %arg6: memref<8x128xf32, #tpu.memory_space<vmem>>) attributes {dimension_semantics = [#tpu.dimension_semantics<parallel>], iteration_bounds = array<i64: 1>, scalar_prefetch = 0 : i64, scratch_operands = 0 : i64, tpu.core_type = #tpu.core_type<tc>, window_params = [{transform_indices = @transform_0, window_bounds = array<i64: 8, 512>}, {pipeline_mode = #tpu.pipeline_mode<synchronous>, transform_indices = @transform_1, window_bounds = array<i64: 512, 128>}, {pipeline_mode = #tpu.pipeline_mode<synchronous>, transform_indices = @transform_2, window_bounds = array<i64: 1, 128>}, {pipeline_mode = #tpu.pipeline_mode<synchronous>, transform_indices = @transform_3, window_bounds = array<i64: 128, 128>}, {pipeline_mode = #tpu.pipeline_mode<synchronous>, transform_indices = @transform_4, window_bounds = array<i64: 1, 128>}, {transform_indices = @transform_5, window_bounds = array<i64: 8, 128>}]} {
    %c0 = arith.constant 0 : index
    %c0_0 = arith.constant 0 : index
    %0 = vector.load %arg1[%c0, %c0_0] : memref<8x512xbf16, #tpu.memory_space<vmem>>, vector<8x512xbf16>
    %c0_1 = arith.constant 0 : index
    %c0_2 = arith.constant 0 : index
    %1 = vector.load %arg2[%c0_1, %c0_2] : memref<512x128xbf16, #tpu.memory_space<vmem>>, vector<512x128xbf16>
    %cst = arith.constant dense<0.000000e+00> : vector<8x128xf32>
    %2 = tpu.matmul %0, %1, %cst {dimension_numbers = #tpu.dot_dimension_numbers<[1], [0], [0], [1], [0, 0, 1, 1], [], []>} : vector<8x512xbf16>, vector<512x128xbf16>, vector<8x128xf32> -> vector<8x128xf32>
    %c0_3 = arith.constant 0 : index
    %c0_4 = arith.constant 0 : index
    %3 = vector.load %arg3[%c0_3, %c0_4] : memref<1x128xf32, #tpu.memory_space<vmem>>, vector<1x128xf32>
    %4 = vector.broadcast %3 : vector<1x128xf32> to vector<8x128xf32>
    %5 = arith.addf %2, %4 : vector<8x128xf32>
    %cst_5 = arith.constant 0.000000e+00 : f32
    %6 = vector.broadcast %cst_5 : f32 to vector<8x128xf32>
    %7 = arith.maximumf %5, %6 : vector<8x128xf32>
    %8 = arith.truncf %7 : vector<8x128xf32> to vector<8x128xbf16>
    %c0_6 = arith.constant 0 : index
    %c0_7 = arith.constant 0 : index
    %9 = vector.load %arg4[%c0_6, %c0_7] : memref<128x128xbf16, #tpu.memory_space<vmem>>, vector<128x128xbf16>
    %cst_8 = arith.constant dense<0.000000e+00> : vector<8x128xf32>
    %10 = tpu.matmul %8, %9, %cst_8 {dimension_numbers = #tpu.dot_dimension_numbers<[1], [0], [0], [1], [0, 0, 1, 1], [], []>} : vector<8x128xbf16>, vector<128x128xbf16>, vector<8x128xf32> -> vector<8x128xf32>
    %c0_9 = arith.constant 0 : index
    %c0_10 = arith.constant 0 : index
    %11 = vector.load %arg5[%c0_9, %c0_10] : memref<1x128xf32, #tpu.memory_space<vmem>>, vector<1x128xf32>
    %12 = vector.broadcast %11 : vector<1x128xf32> to vector<8x128xf32>
    %13 = arith.addf %10, %12 : vector<8x128xf32>
    %c0_11 = arith.constant 0 : index
    %c0_12 = arith.constant 0 : index
    %14 = vector.load %arg6[%c0_11, %c0_12] : memref<8x128xf32, #tpu.memory_space<vmem>>, vector<8x128xf32>
    tpu.vector_store %arg6[%c0_11, %c0_12], %13 {strides = array<i32>} : memref<8x128xf32, #tpu.memory_space<vmem>>, vector<8x128xf32>,
    return
  }
  func.func @transform_0(%arg0: i32) -> (i32, i32) {
    %c0_i32 = arith.constant 0 : i32
    %c0_i32_0 = arith.constant 0 : i32
    return %arg0, %c0_i32 : i32, i32
  }
  func.func @transform_1(%arg0: i32) -> (i32, i32) {
    %c0_i32 = arith.constant 0 : i32
    %c0_i32_0 = arith.constant 0 : i32
    %c0_i32_1 = arith.constant 0 : i32
    return %c0_i32, %c0_i32_0 : i32, i32
  }
  func.func @transform_2(%arg0: i32) -> (i32, i32) {
    %c0_i32 = arith.constant 0 : i32
    %c0_i32_0 = arith.constant 0 : i32
    %c0_i32_1 = arith.constant 0 : i32
    return %c0_i32, %c0_i32_0 : i32, i32
  }
  func.func @transform_3(%arg0: i32) -> (i32, i32) {
    %c0_i32 = arith.constant 0 : i32
    %c0_i32_0 = arith.constant 0 : i32
    %c0_i32_1 = arith.constant 0 : i32
    return %c0_i32, %c0_i32_0 : i32, i32
  }
  func.func @transform_4(%arg0: i32) -> (i32, i32) {
    %c0_i32 = arith.constant 0 : i32
    %c0_i32_0 = arith.constant 0 : i32
    %c0_i32_1 = arith.constant 0 : i32
    return %c0_i32, %c0_i32_0 : i32, i32
  }
  func.func @transform_5(%arg0: i32) -> (i32, i32) {
    %c0_i32 = arith.constant 0 : i32
    %c0_i32_0 = arith.constant 0 : i32
    return %arg0, %c0_i32 : i32, i32
  }
}

</mosaic_0001>

<bundles_post_ra>
// kernel: _lambda_.20
= control target key start
LH: loop header
LB: loop body
LE: loop exit
PB: predicated region body
PF: predicated region fallthrough
CT: control target
= control target key end

     0   :  { %s939_s1 = inlined_call_operand.vmem [shape: bf16[256,128], index: 1, kind: input, shape index: {}]   ;;  %s940_s0 = inlined_call_operand.vmem [shape: bf16[128,256], index: 0, kind: input, shape index: {}]   ;;  %s941_s2 = inlined_call_operand.vmem [shape: f32[1,128], index: 2, kind: input, shape index: {}]   ;;  %s942_s3 = inlined_call_operand.vmem [shape: bf16[128,128], index: 3, kind: output, shape index: {}]  }
   0x1   :  { %v738_v0 = vld [vmem:[%s939_s1 + $0x40] sm:$0xff]   ;;  %v740_v2 = vld [vmem:[%s939_s1 + $0x48] sm:$0xff]   ;;  %v742_v4 = vld [vmem:[%s939_s1 + $0x50] sm:$0xff]  }
   0x2   :  { %v739_v1 = vld [vmem:[%s939_s1] sm:$0xff]   ;;  %658 = vmatprep.subr.bf16.mxu0 %v738_v0  ;;  %722 = vmatprep.subr.bf16.mxu1 %v738_v0  ;;  %v741_v3 = vld [vmem:[%s939_s1 + $0x8] sm:$0xff]   ;;  %v743_v5 = vld [vmem:[%s939_s1 + $0x10] sm:$0xff]  }
   0x3   :  { %659 = vmatpush3.bf16.msra.mxu0 %v739_v1  ;;  %730 = vmatpush3.bf16.msra.mxu1 %v739_v1  ;;  %v744_v6 = vld [vmem:[%s939_s1 + $0x58] sm:$0xff]   ;;  %v746_v8 = vld [vmem:[%s939_s1 + $0x60] sm:$0xff]   ;;  %v748_v10 = vld [vmem:[%s939_s1 + $0x68] sm:$0xff]  }
   0x4   :  { %660 = vmatprep.subr.bf16.mxu0 %v740_v2  ;;  %723 = vmatprep.subr.bf16.mxu1 %v740_v2  ;;  %v745_v7 = vld [vmem:[%s939_s1 + $0x18] sm:$0xff]   ;;  %v747_v9 = vld [vmem:[%s939_s1 + $0x20] sm:$0xff]   ;;  %v749_v13 = vld [vmem:[%s939_s1 + $0x28] sm:$0xff]  }
   0x5   :  { %v756_v11 = vld [vmem:[%s940_s0 + $0x4] ss:$8 sps:$4 sm:$0xff]   ;;  %v750_v14 = vld [vmem:[%s939_s1 + $0x70] sm:$0xff]   ;;  %v752_v16 = vld [vmem:[%s939_s1 + $0x78] sm:$0xff]  }
   0x6   :  { %v759_v12 = vld [vmem:[%s940_s0 + $0x44] ss:$8 sps:$4 sm:$0xff]   ;;  %307 = vmatprep.mubr.bf16.mxu0 %v756_v11  ;;  %v751_v15 = vld [vmem:[%s939_s1 + $0x30] sm:$0xff]   ;;  %v753_v17 = vld [vmem:[%s939_s1 + $0x38] sm:$0xff]  }
   0x7   :  { %661 = vmatpush3.bf16.msra.mxu0 %v741_v3  ;;  %731 = vmatpush3.bf16.msra.mxu1 %v741_v3  ;;  %v754_v18 = vld [vmem:[%s940_s0] ss:$8 sps:$4 sm:$0xff]   ;;  %v760_v20 = vld [vmem:[%s940_s0 + $0x14] ss:$8 sps:$4 sm:$0xff]   ;;  %v764_v22 = vld [vmem:[%s940_s0 + $0x10] ss:$8 sps:$4 sm:$0xff]  }
   0x8   :  { %662 = vmatprep.subr.bf16.mxu0 %v742_v4  ;;  %724 = vmatprep.subr.bf16.mxu1 %v742_v4  ;;  %v757_v19 = vld [vmem:[%s940_s0 + $0x40] ss:$8 sps:$4 sm:$0xff]   ;;  %v762_v21 = vld [vmem:[%s940_s0 + $0x54] ss:$8 sps:$4 sm:$0xff]   ;;  %v765_v23 = vld [vmem:[%s940_s0 + $0x50] ss:$8 sps:$4 sm:$0xff]  }
   0x9   :  { %339 = vmatprep.mubr.bf16.mxu1 %v759_v12  ;;  %v766_v24 = vld [vmem:[%s940_s0 + $0x24] ss:$8 sps:$4 sm:$0xff]   ;;  %v770_v26 = vld [vmem:[%s940_s0 + $0x20] ss:$8 sps:$4 sm:$0xff]   ;;  %v772_v28 = vld [vmem:[%s940_s0 + $0x34] ss:$8 sps:$4 sm:$0xff]  }
   0xa   :  { %v768_v25 = vld [vmem:[%s940_s0 + $0x64] ss:$8 sps:$4 sm:$0xff]   ;;  %v771_v27 = vld [vmem:[%s940_s0 + $0x60] ss:$8 sps:$4 sm:$0xff]   ;;  %v774_v29 = vld [vmem:[%s940_s0 + $0x74] ss:$8 sps:$4 sm:$0xff]  }
   0xb   :  { %663 = vmatpush3.bf16.msra.mxu0 %v743_v5  ;;  %732 = vmatpush3.bf16.msra.mxu1 %v743_v5  ;;  %v776_v30 = vld [vmem:[%s940_s0 + $0x30] ss:$8 sps:$4 sm:$0xff]   ;;  %v897_v35 = vld [vmem:[%s941_s2] ss:$0 sm:$0xff] }
   0xc   :  { %664 = vmatprep.subr.bf16.mxu0 %v744_v6  ;;  %725 = vmatprep.subr.bf16.mxu1 %v744_v6  ;;  %v777_v31 = vld [vmem:[%s940_s0 + $0x70] ss:$8 sps:$4 sm:$0xff]  }
   0xf   :  { %665 = vmatpush3.bf16.msra.mxu0 %v745_v7  ;;  %733 = vmatpush3.bf16.msra.mxu1 %v745_v7 }
  0x10   :  { %666 = vmatprep.subr.bf16.mxu0 %v746_v8  ;;  %726 = vmatprep.subr.bf16.mxu1 %v746_v8 }
  0x13   :  { %667 = vmatpush3.bf16.msra.mxu0 %v747_v9  ;;  %734 = vmatpush3.bf16.msra.mxu1 %v747_v9 }
  0x14   :  { %668 = vmatprep.subr.bf16.mxu0 %v748_v10  ;;  %727 = vmatprep.subr.bf16.mxu1 %v748_v10 }
  0x17   :  { %669 = vmatpush3.bf16.msra.mxu0 %v749_v13  ;;  %735 = vmatpush3.bf16.msra.mxu1 %v749_v13 }
  0x18   :  { %670 = vmatprep.subr.bf16.mxu0 %v750_v14  ;;  %728 = vmatprep.subr.bf16.mxu1 %v750_v14 }
  0x1b   :  { %671 = vmatpush3.bf16.msra.mxu0 %v751_v15  ;;  %736 = vmatpush3.bf16.msra.mxu1 %v751_v15 }
  0x1c   :  { %672 = vmatprep.subr.bf16.mxu0 %v752_v16  ;;  %729 = vmatprep.subr.bf16.mxu1 %v752_v16 }
  0x1f   :  { %673 = vmatpush3.bf16.msra.mxu0 %v753_v17  ;;  %737 = vmatpush3.bf16.msra.mxu1 %v753_v17 }
  0x22   :  { %308 = vmatmul.mubr.bf16.vlgmr.msra.gmra.mrb[0].mxu0 %v754_v18  ;;  %340 = vmatmul.mubr.bf16.vlgmr.msra.gmra.mrb[0].mxu1 %v757_v19 }
  0x23   :  { %315 = vmatprep.mubr.bf16.mxu0 %v760_v20  ;;  %347 = vmatprep.mubr.bf16.mxu1 %v762_v21 }
  0x2a   :  { %316 = vmatmul.mubr.bf16.gmra.mrb[4].mxu0 %v764_v22  ;;  %348 = vmatmul.mubr.bf16.gmra.mrb[4].mxu1 %v765_v23 }
  0x2b   :  { %323 = vmatprep.mubr.bf16.mxu0 %v766_v24  ;;  %355 = vmatprep.mubr.bf16.mxu1 %v768_v25 }
  0x32   :  { %324 = vmatmul.mubr.bf16.gmra.mrb[8].mxu0 %v770_v26  ;;  %356 = vmatmul.mubr.bf16.gmra.mrb[8].mxu1 %v771_v27 }
  0x33   :  { %331 = vmatprep.mubr.bf16.mxu0 %v772_v28  ;;  %363 = vmatprep.mubr.bf16.mxu1 %v774_v29 }
  0x3a   :  { %332 = vmatmul.mubr.bf16.gmra.mrb[12].mxu0 %v776_v30  ;;  %364 = vmatmul.mubr.bf16.gmra.mrb[12].mxu1 %v777_v31 }
  0xf5   :  { %v674_v32 = vpop.f32.mrb[0].mxu0  ;;  %v698_v33 = vpop.f32.mrb[0].mxu1 }
  0xf6   :  { %v675_v34 = vpop.f32.mrb[1].mxu0  ;;  %v699_v36 = vpop.f32.mrb[1].mxu1 }
  0xf7   :  { %v676_v37 = vadd.f32 %v675_v34, %v674_v32  ;;  %v700_v38 = vadd.f32 %v699_v36, %v698_v33  ;;  %v677_v39 = vpop.f32.mrb[2].mxu0  ;;  %v701_v40 = vpop.f32.mrb[2].mxu1 }
  0xf8   :  { %v678_v41 = vpop.f32.mrb[3].mxu0  ;;  %v702_v42 = vpop.f32.mrb[3].mxu1 }
  0xf9   :  { %v430_v43 = vadd.f32 %v676_v37, %v897_v35  ;;  %v438_v44 = vadd.f32 %v700_v38, %v897_v35  ;;  %v679_v45 = vadd.f32 %v678_v41, %v677_v39  ;;  %v703_v46 = vadd.f32 %v702_v42, %v701_v40 }
  0xfb   :  { %v431_v47 = vadd.f32 %v679_v45, %v897_v35  ;;  %v439_v48 = vadd.f32 %v703_v46, %v897_v35  ;;  %v446_v49 = vmax.f32 %v430_v43, 0.0  ;;  %v454_v50 = vmax.f32 %v438_v44, 0.0 }
  0xfd   :  { %v447_v51 = vmax.f32 %v431_v47, 0.0  ;;  %v455_v52 = vmax.f32 %v439_v48, 0.0  ;;  %v680_v53 = vpop.f32.mrb[4].mxu0  ;;  %v704_v54 = vpop.f32.mrb[4].mxu1 }
  0xfe   :  { %v681_v55 = vpop.f32.mrb[5].mxu0  ;;  %v705_v56 = vpop.f32.mrb[5].mxu1 }
  0xff   :  { %v614_v57 = vpack.c.bf16 %v447_v51, %v446_v49  ;;  %v634_v58 = vpack.c.bf16 %v455_v52, %v454_v50  ;;  %v682_v59 = vadd.f32 %v681_v55, %v680_v53  ;;  %v706_v60 = vadd.f32 %v705_v56, %v704_v54  ;;  %v683_v61 = vpop.f32.mrb[6].mxu0  ;;  %v707_v62 = vpop.f32.mrb[6].mxu1 }
 0x100   :  { %v684_v63 = vpop.f32.mrb[7].mxu0  ;;  %v708_v0 = vpop.f32.mrb[7].mxu1 }
 0x101   :  { %615 = vst [vmem:[%s942_s3] sm:$0xff] %v614_v57   ;;  %654 = vst [vmem:[%s942_s3 + $0x20] sm:$0xff] %v634_v58   ;;  %v432_v1 = vadd.f32 %v682_v59, %v897_v35  ;;  %v440_v2 = vadd.f32 %v706_v60, %v897_v35  ;;  %v685_v3 = vadd.f32 %v684_v63, %v683_v61 }
 0x102   :  { %v709_v4 = vadd.f32 %v708_v0, %v707_v62 }
 0x103   :  { %v433_v5 = vadd.f32 %v685_v3, %v897_v35  ;;  %v448_v7 = vmax.f32 %v432_v1, 0.0  ;;  %v456_v8 = vmax.f32 %v440_v2, 0.0 }
 0x104   :  { %v441_v6 = vadd.f32 %v709_v4, %v897_v35 }
 0x105   :  { %v449_v9 = vmax.f32 %v433_v5, 0.0  ;;  %v686_v11 = vpop.f32.mrb[8].mxu0  ;;  %v710_v12 = vpop.f32.mrb[8].mxu1 }
 0x106   :  { %v457_v10 = vmax.f32 %v441_v6, 0.0  ;;  %v687_v13 = vpop.f32.mrb[9].mxu0  ;;  %v711_v14 = vpop.f32.mrb[9].mxu1 }
 0x107   :  { %v619_v15 = vpack.c.bf16 %v449_v9, %v448_v7  ;;  %v688_v17 = vadd.f32 %v687_v13, %v686_v11  ;;  %v712_v18 = vadd.f32 %v711_v14, %v710_v12  ;;  %v689_v19 = vpop.f32.mrb[10].mxu0  ;;  %v713_v20 = vpop.f32.mrb[10].mxu1 }
 0x108   :  { %v639_v16 = vpack.c.bf16 %v457_v10, %v456_v8  ;;  %v690_v21 = vpop.f32.mrb[11].mxu0  ;;  %v714_v22 = vpop.f32.mrb[11].mxu1 }
 0x109   :  { %651 = vst [vmem:[%s942_s3 + $0x8] sm:$0xff] %v619_v15   ;;  %v434_v23 = vadd.f32 %v688_v17, %v897_v35  ;;  %v442_v24 = vadd.f32 %v712_v18, %v897_v35  ;;  %v691_v25 = vadd.f32 %v690_v21, %v689_v19  ;;  %v715_v26 = vadd.f32 %v714_v22, %v713_v20 }
 0x10a   :  { %655 = vst [vmem:[%s942_s3 + $0x28] sm:$0xff] %v639_v16  }
 0x10b   :  { %v435_v27 = vadd.f32 %v691_v25, %v897_v35  ;;  %v443_v28 = vadd.f32 %v715_v26, %v897_v35  ;;  %v450_v29 = vmax.f32 %v434_v23, 0.0  ;;  %v458_v30 = vmax.f32 %v442_v24, 0.0 }
 0x10d   :  { %v451_v31 = vmax.f32 %v435_v27, 0.0  ;;  %v459_v32 = vmax.f32 %v443_v28, 0.0  ;;  %v692_v33 = vpop.f32.mrb[12].mxu0  ;;  %v716_v34 = vpop.f32.mrb[12].mxu1 }
 0x10e   :  { %v693_v36 = vpop.f32.mrb[13].mxu0  ;;  %v717_v37 = vpop.f32.mrb[13].mxu1 }
 0x10f   :  { %v624_v38 = vpack.c.bf16 %v451_v31, %v450_v29  ;;  %v644_v39 = vpack.c.bf16 %v459_v32, %v458_v30  ;;  %v694_v40 = vadd.f32 %v693_v36, %v692_v33  ;;  %v718_v41 = vadd.f32 %v717_v37, %v716_v34  ;;  %v695_v42 = vpop.f32.mrb[14].mxu0  ;;  %v719_v43 = vpop.f32.mrb[14].mxu1 }
 0x110   :  { %v696_v44 = vpop.f32.mrb[15].mxu0  ;;  %v720_v45 = vpop.f32.mrb[15].mxu1 }
 0x111   :  { %652 = vst [vmem:[%s942_s3 + $0x10] sm:$0xff] %v624_v38   ;;  %656 = vst [vmem:[%s942_s3 + $0x30] sm:$0xff] %v644_v39   ;;  %v436_v46 = vadd.f32 %v694_v40, %v897_v35  ;;  %v444_v47 = vadd.f32 %v718_v41, %v897_v35  ;;  %v697_v48 = vadd.f32 %v696_v44, %v695_v42 }
 0x112   :  { %v721_v49 = vadd.f32 %v720_v45, %v719_v43 }
 0x113   :  { %v437_v50 = vadd.f32 %v697_v48, %v897_v35  ;;  %v452_v52 = vmax.f32 %v436_v46, 0.0  ;;  %v460_v53 = vmax.f32 %v444_v47, 0.0 }
 0x114   :  { %v445_v51 = vadd.f32 %v721_v49, %v897_v35 }
 0x115   :  { %v453_v54 = vmax.f32 %v437_v50, 0.0 }
 0x116   :  { %v461_v55 = vmax.f32 %v445_v51, 0.0 }
 0x117   :  { %v629_v56 = vpack.c.bf16 %v453_v54, %v452_v52 }
 0x118   :  { %v649_v57 = vpack.c.bf16 %v461_v55, %v460_v53 }
 0x119   :  { %653 = vst [vmem:[%s942_s3 + $0x18] sm:$0xff] %v629_v56  }
 0x11a   :  { %657 = vst [vmem:[%s942_s3 + $0x38] sm:$0xff] %v649_v57  }

// kernel: _lambda_.22
= control target key start
LH: loop header
LB: loop body
LE: loop exit
PB: predicated region body
PF: predicated region fallthrough
CT: control target
= control target key end

     0   :  { %s339_s1 = inlined_call_operand.vmem [shape: bf16[128,128], index: 1, kind: input, shape index: {}]   ;;  %s340_s0 = inlined_call_operand.vmem [shape: bf16[32,128], index: 0, kind: input, shape index: {}]   ;;  %s341_s2 = inlined_call_operand.vmem [shape: f32[1,128], index: 2, kind: input, shape index: {}]   ;;  %s342_s3 = inlined_call_operand.vmem [shape: bf16[32,128], index: 3, kind: output, shape index: {}]  }
   0x1   :  { %v270_v0 = vld [vmem:[%s339_s1] sm:$0xff]   ;;  %v271_v1 = vld [vmem:[%s339_s1 + $0x8] sm:$0xff]   ;;  %v272_v2 = vld [vmem:[%s339_s1 + $0x10] sm:$0xff]  }
   0x2   :  { %250 = vmatprep.subr.bf16.mxu0 %v270_v0  ;;  %v273_v3 = vld [vmem:[%s339_s1 + $0x18] sm:$0xff]   ;;  %v278_v4 = vld [vmem:[%s340_s0] sm:$0xff]   ;;  %v275_v6 = vld [vmem:[%s339_s1 + $0x28] sm:$0xff]  }
   0x3   :  { %251 = vmatpush3.bf16.msra.mxu0 %v270_v0  ;;  %266 = vmatprep.mubr.bf16.mxu0 %v278_v4  ;;  %v274_v5 = vld [vmem:[%s339_s1 + $0x20] sm:$0xff]   ;;  %v276_v7 = vld [vmem:[%s339_s1 + $0x30] sm:$0xff]   ;;  %v277_v8 = vld [vmem:[%s339_s1 + $0x38] sm:$0xff]  }
   0x4   :  { %252 = vmatprep.subr.bf16.mxu0 %v271_v1  ;;  %v279_v9 = vld [vmem:[%s340_s0 + $0x8] sm:$0xff]   ;;  %v220_v10 = vld [vmem:[%s341_s2] ss:$0 sm:$0xff] }
   0x7   :  { %253 = vmatpush3.bf16.msra.mxu0 %v271_v1 }
   0x8   :  { %254 = vmatprep.subr.bf16.mxu0 %v272_v2 }
   0xb   :  { %255 = vmatpush3.bf16.msra.mxu0 %v272_v2 }
   0xc   :  { %256 = vmatprep.subr.bf16.mxu0 %v273_v3 }
   0xf   :  { %257 = vmatpush3.bf16.msra.mxu0 %v273_v3 }
  0x10   :  { %258 = vmatprep.subr.bf16.mxu0 %v274_v5 }
  0x13   :  { %259 = vmatpush3.bf16.msra.mxu0 %v274_v5 }
  0x14   :  { %260 = vmatprep.subr.bf16.mxu0 %v275_v6 }
  0x17   :  { %261 = vmatpush3.bf16.msra.mxu0 %v275_v6 }
  0x18   :  { %262 = vmatprep.subr.bf16.mxu0 %v276_v7 }
  0x1b   :  { %263 = vmatpush3.bf16.msra.mxu0 %v276_v7 }
  0x1c   :  { %264 = vmatprep.subr.bf16.mxu0 %v277_v8 }
  0x1f   :  { %265 = vmatpush3.bf16.msra.mxu0 %v277_v8 }
  0x22   :  { %267 = vmatmul.mubr.bf16.vlgmr.msra.gmra.mrb[0].mxu0 %v279_v9 }
  0xf5   :  { %v268_v11 = vpop.f32.mrb[0].mxu0 }
  0xf6   :  { %v180_v12 = vadd.f32 %v268_v11, %v220_v10  ;;  %v141_v13 = vpop.f32.mrb[1].mxu0 }
  0xf7   :  { %v178_v14 = vadd.f32 %v220_v10, %v141_v13  ;;  %v269_v15 = vpop.f32.mrb[2].mxu0 }
  0xf8   :  { %v181_v16 = vadd.f32 %v269_v15, %v220_v10  ;;  %v144_v17 = vpop.f32.mrb[3].mxu0  ;;  %v184_v19 = vmax.f32 %v180_v12, 0.0 }
  0xf9   :  { %v179_v18 = vadd.f32 %v220_v10, %v144_v17  ;;  %v182_v21 = vmax.f32 %v178_v14, 0.0 }
  0xfa   :  { %v185_v20 = vmax.f32 %v181_v16, 0.0 }
  0xfb   :  { %v183_v22 = vmax.f32 %v179_v18, 0.0 }
  0xfc   :  { %v237_v23 = vpack.c.bf16 %v185_v20, %v184_v19 }
  0xfd   :  { %v232_v24 = vpack.c.bf16 %v183_v22, %v182_v21 }
  0xfe   :  { %239 = vst [vmem:[%s342_s3 + $0x8] sm:$0xff] %v237_v23  }
  0xff   :  { %233 = vst [vmem:[%s342_s3] sm:$0xff] %v232_v24  }

// kernel: _lambda_.21
= control target key start
LH: loop header
LB: loop body
LE: loop exit
PB: predicated region body
PF: predicated region fallthrough
CT: control target
= control target key end

     0   :  { %vm45_vm0 = vcmask 1043456   ;;  %s368_s0 = inlined_call_operand.vmem [shape: bf16[9,32,128], index: 0, kind: input, shape index: {}]   ;;  %s369_s1 = inlined_call_operand.vmem [shape: bf16[32,128], index: 1, kind: output, shape index: {}]  }
   0x1   :  { %v9_v0 = vld [vmem:[%s368_s0] sm:$0xf]  ;;  %v13_v1 = vld [vmem:[%s368_s0 + $0x10] sm:$0xf]  ;;  %v10_v3 = vld [vmem:[%s368_s0 + $0x4] sm:$0xf] }
   0x2   :  { %v17_v2 = vld [vmem:[%s368_s0 + $0x20] sm:$0xf]  ;;  %v14_v4 = vld [vmem:[%s368_s0 + $0x14] sm:$0xf]  ;;  %v18_v5 = vld [vmem:[%s368_s0 + $0x24] sm:$0xf] }
   0x3   :  { %v21_v6 = vld [vmem:[%s368_s0 + $0x30] sm:$0xf]  ;;  %v48_v7 = vsel %vm45_vm0, %v9_v0, 4286644096  ;;  %v51_v8 = vsel %vm45_vm0, %v13_v1, 4286644096 }
   0x4   :  { %v55_v9 = vsel %vm45_vm0, %v17_v2, 4286644096  ;;  %v25_v10 = vld [vmem:[%s368_s0 + $0x40] sm:$0xf]  ;;  %v53_v11 = vmax.bf16 %v51_v8, %v48_v7  ;;  %v22_v12 = vld [vmem:[%s368_s0 + $0x34] sm:$0xf] }
   0x5   :  { %v29_v13 = vld [vmem:[%s368_s0 + $0x50] sm:$0xf]  ;;  %v59_v14 = vsel %vm45_vm0, %v21_v6, 4286644096  ;;  %v83_v16 = vsel %vm45_vm0, %v10_v3, 4286644096 }
   0x6   :  { %v57_v15 = vmax.bf16 %v55_v9, %v53_v11  ;;  %v86_v17 = vsel %vm45_vm0, %v14_v4, 4286644096  ;;  %v90_v18 = vsel %vm45_vm0, %v18_v5, 4286644096  ;;  %v26_v19 = vld [vmem:[%s368_s0 + $0x44] sm:$0xf] }
   0x7   :  { %v63_v20 = vsel %vm45_vm0, %v25_v10, 4286644096  ;;  %v88_v21 = vmax.bf16 %v86_v17, %v83_v16  ;;  %v30_v22 = vld [vmem:[%s368_s0 + $0x54] sm:$0xf]  ;;  %v33_v23 = vld [vmem:[%s368_s0 + $0x60] sm:$0xf] }
   0x8   :  { %v61_v24 = vmax.bf16 %v59_v14, %v57_v15  ;;  %v94_v25 = vsel %vm45_vm0, %v22_v12, 4286644096  ;;  %v34_v26 = vld [vmem:[%s368_s0 + $0x64] sm:$0xf]  ;;  %v67_v27 = vsel %vm45_vm0, %v29_v13, 4286644096 }
   0x9   :  { %v92_v28 = vmax.bf16 %v90_v18, %v88_v21  ;;  %v37_v29 = vld [vmem:[%s368_s0 + $0x70] sm:$0xf]  ;;  %v41_v30 = vld [vmem:[%s368_s0 + $0x80] sm:$0xf]  ;;  %v98_v32 = vsel %vm45_vm0, %v26_v19, 4286644096 }
   0xa   :  { %v65_v31 = vmax.bf16 %v63_v20, %v61_v24  ;;  %v38_v33 = vld [vmem:[%s368_s0 + $0x74] sm:$0xf]  ;;  %v71_v34 = vsel %vm45_vm0, %v33_v23, 4286644096  ;;  %v102_v36 = vsel %vm45_vm0, %v30_v22, 4286644096 }
   0xb   :  { %v96_v35 = vmax.bf16 %v94_v25, %v92_v28  ;;  %v42_v37 = vld [vmem:[%s368_s0 + $0x84] sm:$0xf]  ;;  %v11_v39 = vld [vmem:[%s368_s0 + $0x8] sm:$0xf]  ;;  %v15_v40 = vld [vmem:[%s368_s0 + $0x18] sm:$0xf] }
   0xc   :  { %v69_v38 = vmax.bf16 %v67_v27, %v65_v31  ;;  %v19_v41 = vld [vmem:[%s368_s0 + $0x28] sm:$0xf]  ;;  %v75_v42 = vsel %vm45_vm0, %v37_v29, 4286644096  ;;  %v79_v43 = vsel %vm45_vm0, %v41_v30, 4286644096 }
   0xd   :  { %v100_v44 = vmax.bf16 %v98_v32, %v96_v35  ;;  %v106_v45 = vsel %vm45_vm0, %v34_v26, 4286644096  ;;  %v12_v47 = vld [vmem:[%s368_s0 + $0xc] sm:$0xf]  ;;  %v23_v48 = vld [vmem:[%s368_s0 + $0x38] sm:$0xf] }
   0xe   :  { %v73_v46 = vmax.bf16 %v71_v34, %v69_v38  ;;  %v27_v49 = vld [vmem:[%s368_s0 + $0x48] sm:$0xf]  ;;  %v118_v51 = vsel %vm45_vm0, %v11_v39, 4286644096  ;;  %v121_v52 = vsel %vm45_vm0, %v15_v40, 4286644096 }
   0xf   :  { %v104_v50 = vmax.bf16 %v102_v36, %v100_v44  ;;  %v125_v53 = vsel %vm45_vm0, %v19_v41, 4286644096  ;;  %v110_v55 = vsel %vm45_vm0, %v38_v33, 4286644096  ;;  %v16_v56 = vld [vmem:[%s368_s0 + $0x1c] sm:$0xf]  ;;  %v123_v58 = vmax.bf16 %v121_v52, %v118_v51 }
  0x10   :  { %v77_v54 = vmax.bf16 %v75_v42, %v73_v46  ;;  %v20_v57 = vld [vmem:[%s368_s0 + $0x2c] sm:$0xf]  ;;  %v114_v60 = vsel %vm45_vm0, %v42_v37, 4286644096  ;;  %v24_v61 = vld [vmem:[%s368_s0 + $0x3c] sm:$0xf] }
  0x11   :  { %v108_v59 = vmax.bf16 %v106_v45, %v104_v50  ;;  %v129_v62 = vsel %vm45_vm0, %v23_v48, 4286644096  ;;  %v31_v63 = vld [vmem:[%s368_s0 + $0x58] sm:$0xf]  ;;  %v127_v0 = vmax.bf16 %v125_v53, %v123_v58  ;;  %v133_v1 = vsel %vm45_vm0, %v27_v49, 4286644096 }
  0x12   :  { %v153_v2 = vsel %vm45_vm0, %v12_v47, 4286644096  ;;  %v81_v3 = vmax.bf16 %v79_v43, %v77_v54  ;;  %v156_v5 = vsel %vm45_vm0, %v16_v56, 4286644096  ;;  %v160_v6 = vsel %vm45_vm0, %v20_v57, 4286644096 }
  0x13   :  { %v112_v4 = vmax.bf16 %v110_v55, %v108_v59  ;;  %v28_v7 = vld [vmem:[%s368_s0 + $0x4c] sm:$0xf]  ;;  %v35_v8 = vld [vmem:[%s368_s0 + $0x68] sm:$0xf]  ;;  %v131_v9 = vmax.bf16 %v129_v62, %v127_v0  ;;  %v158_v10 = vmax.bf16 %v156_v5, %v153_v2  ;;  %v137_v12 = vsel %vm45_vm0, %v31_v63, 4286644096 }
  0x14   :  { %v164_v13 = vsel %vm45_vm0, %v24_v61, 4286644096  ;;  %v32_v14 = vld [vmem:[%s368_s0 + $0x5c] sm:$0xf]  ;;  %v39_v15 = vld [vmem:[%s368_s0 + $0x78] sm:$0xf] }
  0x15   :  { %v116_v11 = vmax.bf16 %v114_v60, %v112_v4  ;;  %v135_v16 = vmax.bf16 %v133_v1, %v131_v9  ;;  %v162_v17 = vmax.bf16 %v160_v6, %v158_v10  ;;  %v141_v19 = vsel %vm45_vm0, %v35_v8, 4286644096  ;;  %v36_v21 = vld [vmem:[%s368_s0 + $0x6c] sm:$0xf]  ;;  %v40_v26 = vld [vmem:[%s368_s0 + $0x7c] sm:$0xf] }
  0x16   :  { %v168_v20 = vsel %vm45_vm0, %v28_v7, 4286644096  ;;  %v145_v24 = vsel %vm45_vm0, %v39_v15, 4286644096  ;;  %v172_v25 = vsel %vm45_vm0, %v32_v14, 4286644096 }
  0x17   :  { %v205_v18 = vcombine.low %v81_v3, %v116_v11  ;;  %v139_v22 = vmax.bf16 %v137_v12, %v135_v16  ;;  %v166_v23 = vmax.bf16 %v164_v13, %v162_v17  ;;  %v43_v27 = vld [vmem:[%s368_s0 + $0x88] sm:$0xf]  ;;  %v176_v30 = vsel %vm45_vm0, %v36_v21, 4286644096  ;;  %v44_v31 = vld [vmem:[%s368_s0 + $0x8c] sm:$0xf] }
  0x18   :  { %v149_v34 = vsel %vm45_vm0, %v43_v27, 4286644096  ;;  %v180_v35 = vsel %vm45_vm0, %v40_v26, 4286644096  ;;  %v184_v37 = vsel %vm45_vm0, %v44_v31, 4286644096 }
  0x19   :  { %199 = vst [vmem:[%s369_s1] sm:$0xff] %v205_v18   ;;  %v143_v28 = vmax.bf16 %v141_v19, %v139_v22  ;;  %v170_v29 = vmax.bf16 %v168_v20, %v166_v23 }
  0x1b   :  { %v147_v32 = vmax.bf16 %v145_v24, %v143_v28  ;;  %v174_v33 = vmax.bf16 %v172_v25, %v170_v29 }
  0x1d   :  { %v178_v36 = vmax.bf16 %v176_v30, %v174_v33  ;;  %v151_v38 = vmax.bf16 %v149_v34, %v147_v32 }
  0x1f   :  { %v182_v39 = vmax.bf16 %v180_v35, %v178_v36 }
  0x21   :  { %v186_v40 = vmax.bf16 %v184_v37, %v182_v39 }
  0x23   :  { %v206_v41 = vcombine.low %v151_v38, %v186_v40 }
  0x25   :  { %207 = vst [vmem:[%s369_s1 + $0x8] sm:$0xff] %v206_v41  }

// kernel: _lambda_.23
= control target key start
LH: loop header
LB: loop body
LE: loop exit
PB: predicated region body
PF: predicated region fallthrough
CT: control target
= control target key end

     0   :  { %s669_s12 = smov 0   ;;  %s671_s13 = smov 0   ;;  %s745_s0 = inlined_call_operand.vmem [shape: bf16[4,32,48], index: 0, kind: input, shape index: {}]   ;;  %s746_s1 = inlined_call_operand.vmem [shape: bf16[4,48,128], index: 1, kind: input, shape index: {}]   ;;  %s747_s2 = inlined_call_operand.vmem [shape: f32[4,1,128], index: 2, kind: input, shape index: {}]   ;;  %s748_s3 = inlined_call_operand.vmem [shape: bf16[32,512], index: 3, kind: output, shape index: {}]  }
   0x1   :  { %s673_s14 = smov 0   ;;  %s675_s15 = smov 0  }
   0x2   :  { %s677_s16 = smov 0  }
   0x3 LB: > { %s507_s17 = sadd.s32 4294967295, %s647_s16   ;;  %s25_s18 = sadd.s32 1, %s643_s15  ;;  %s647_s16 = sphi %s677_s16, %s13_s16   ;;  %s643_s15 = sphi %s675_s15, %s753_s15   ;;  %s639_s14 = sphi %s673_s14, %s752_s14   ;;  %s635_s13 = sphi %s671_s13, %s751_s13   ;;  %s631_s12 = sphi %s669_s12, %s750_s12  }
   0x4   : > { %p27_p0 = scmp.ge.s32.totalorder %s25_s18, 4  ;;  %s114_s19 = sadd.s32 1, %s635_s13 }
   0x5   : > { %p124_p1 = scmp.ne.s32.totalorder %s635_s13, %s631_s12  ;;  %p125_p2 = scmp.eq.s32.totalorder %s507_s17, 3 }
   0x6   : > { %s755_s18 = smov (%p27_p0, %s25_s18), 0  ;;  %p511_p4 = scmp.ge.s32.totalorder %s647_s16, 1 }
   0x7   : > { %p701_p3 = por %p125_p2, %p124_p1  ;;  %s110_s21 = ssub.s32 %s643_s15, %s755_s18 }
   0x8   : > { %p176_p5 = scmp.lt.s32.totalorder %s647_s16, 5  ;;  %p112_p6 = scmp.eq.s32.totalorder %s110_s21, 0 }
   0xa   : > { %p177_p7 = pnand %p511_p4, %p176_p5 }
   0xb   : > { %s710_s22 = scalar_select %p112_p6, %s635_s13, %s114_s19  }
   0xc   : > { %180 = sbr.rel (%p177_p7) target bundleno = 268 (0x10c), region = 32  ;;  %p212_p8 = scmp.lt.s32.totalorder (!%p177_p7), %s639_s14, 3  ;;  %vm276_vm0 = vcmask (!%p177_p7), 392192  }
   0xd   : > { %s208_s8 = sand.u32 (!%p177_p7), 1, %s631_s12  }
   0xe   : > { %s512_s9 = sshll.u32 (!%p177_p7), %s208_s8, 4 }
   0xf   : > { %s210_s10 = scalar_lea.vmem (!%p177_p7), [#allocation2], %s512_s9 }
  0x13   : > { %s213_s23 = scalar_select %p212_p8, %s639_s14, 3 }
  0x14   : > { %s529_s11 = sshll.u32 (%p701_p3), %s639_s14, 2 }
  0x15   : > { %s563_s24 = smul.u32 24, %s213_s23  ;;  %s532_s25 = sshll.u32 %s213_s23, 4 }
  0x16   : > { %s219_s28 = scalar_lea.vmem %s745_s0, %s532_s25  ;;  %s228_s7 = scalar_lea.vmem %s747_s2, %s213_s23 }
  0x17   : > { %s225_s4 = scalar_lea.vmem %s746_s1, %s563_s24  ;;  %v607_v0 = vld [vmem:[%s219_s28] sm:$0xff]   ;;  %v608_v4 = vld [vmem:[%s219_s28 + $0x8] sm:$0xff]   ;;  %s367_s19 = scalar_lea.vmem (%p701_p3), %s748_s3, %s529_s11 }
  0x18   : > { %v604_v1 = vld [vmem:[%s225_s4] sm:$0xff]   ;;  %v605_v2 = vld [vmem:[%s225_s4 + $0x8] sm:$0xff]   ;;  %559 = vmatprep.mubr.msk.bf16.mxu0 %vm276_vm0, %v607_v0  ;;  %v606_v3 = vld [vmem:[%s225_s4 + $0x10] sm:$0xff]  }
  0x19   : > { %553 = vmatprep.subr.bf16.mxu0 %v604_v1  ;;  %v516_v5 = vld [vmem:[%s228_s7] ss:$0 sm:$0xff] }
  0x1a   : > { %554 = vmatpush3.bf16.msra.mxu0 %v604_v1 }
  0x1b   : > { %555 = vmatprep.subr.bf16.mxu0 %v605_v2 }
  0x1e   : > { %556 = vmatpush3.bf16.msra.mxu0 %v605_v2 }
  0x1f   : > { %557 = vmatprep.subr.bf16.mxu0 %v606_v3 }
  0x22   : > { %558 = vmatpush3.bf16.msra.mxu0 %v606_v3 }
  0x25   : > { %560 = vmatmul.mubr.msk.bf16.vlgmr.msra.gmra.mrb[0].mxu0 %vm276_vm0, %v608_v4 }
  0xf8   : > { %v561_v6 = vpop.f32.mrb[0].mxu0 }
  0xf9   : > { %v326_v7 = vadd.f32 %v561_v6, %v516_v5  ;;  %v317_v8 = vpop.f32.mrb[1].mxu0 }
  0xfa   : > { %v318_v9 = vadd.f32 %v516_v5, %v317_v8  ;;  %v562_v10 = vpop.f32.mrb[2].mxu0 }
  0xfb   : > { %v329_v11 = vadd.f32 %v562_v10, %v516_v5  ;;  %v320_v12 = vpop.f32.mrb[3].mxu0  ;;  %v334_v14 = vmax.f32 %v326_v7, 0.0 }
  0xfc   : > { %v321_v13 = vadd.f32 %v516_v5, %v320_v12  ;;  %v332_v16 = vmax.f32 %v318_v9, 0.0  ;;  %362 = sbr.rel (!%p701_p3) target bundleno = 268 (0x10c), region = 36 }
  0xfd   : > { %v335_v15 = vmax.f32 %v329_v11, 0.0 }
  0xfe   : > { %v333_v17 = vmax.f32 %v321_v13, 0.0 }
  0xff   : > { %v545_v18 = vpack.c.bf16 %v335_v15, %v334_v14 }
 0x100   : > { %v540_v19 = vpack.c.bf16 %v333_v17, %v332_v16 }
 0x101   : > { %547 = vst [vmem:[%s210_s10 + $0x8] sm:$0xff] %v545_v18  }
 0x102   : > { %541 = vst [vmem:[%s210_s10] sm:$0xff] %v540_v19  }
 0x108   : > { %v387_v22 = vld [vmem:[%s210_s10 + $0x8] sm:$0xf]  ;;  %v389_v23 = vld [vmem:[%s210_s10 + $0xc] sm:$0xf] }
 0x109   : > { %v383_v20 = vld [vmem:[%s210_s10] sm:$0xf]  ;;  %v385_v21 = vld [vmem:[%s210_s10 + $0x4] sm:$0xf]  ;;  %388 = vst [vmem:[%s367_s19 + $0x20] sm:$0xf] %v387_v22 }
 0x10a   : > { %384 = vst [vmem:[%s367_s19] sm:$0xf] %v383_v20  ;;  %386 = vst [vmem:[%s367_s19 + $0x10] sm:$0xf] %v385_v21 }
 0x10b   : > { %390 = vst [vmem:[%s367_s19 + $0x30] sm:$0xf] %v389_v23 }
 0x10c PF: > { %s13_s16 = sadd.s32 1, %s647_s16   ;;  %s750_s12 = smov %s635_s13 }
 0x10d   : > { %p10_p9 = scmp.ge.s32.totalorder %s13_s16, 6   ;;  %s751_s13 = smov %s710_s22 }
 0x10e   : > { %s752_s14 = smov %s643_s15  ;;  %s753_s15 = smov %s755_s18 }
 0x10f   :  { %12 = sbr.rel (!%p10_p9) target bundleno = 3 (0x3), region = 109 }

// kernel: _lambda_.24
= control target key start
LH: loop header
LB: loop body
LE: loop exit
PB: predicated region body
PF: predicated region fallthrough
CT: control target
= control target key end

     0   :  { %s335_s1 = inlined_call_operand.vmem [shape: bf16[128,128], index: 1, kind: input, shape index: {}]   ;;  %s336_s0 = inlined_call_operand.vmem [shape: bf16[32,128], index: 0, kind: input, shape index: {}]   ;;  %s337_s2 = inlined_call_operand.vmem [shape: f32[1,128], index: 2, kind: input, shape index: {}]   ;;  %s338_s3 = inlined_call_operand.vmem [shape: bf16[32,128], index: 3, kind: output, shape index: {}]  }
   0x1   :  { %v266_v0 = vld [vmem:[%s335_s1] sm:$0xff]   ;;  %v267_v1 = vld [vmem:[%s335_s1 + $0x8] sm:$0xff]   ;;  %v268_v2 = vld [vmem:[%s335_s1 + $0x10] sm:$0xff]  }
   0x2   :  { %246 = vmatprep.subr.bf16.mxu0 %v266_v0  ;;  %v269_v3 = vld [vmem:[%s335_s1 + $0x18] sm:$0xff]   ;;  %v274_v4 = vld [vmem:[%s336_s0] sm:$0xff]   ;;  %v271_v6 = vld [vmem:[%s335_s1 + $0x28] sm:$0xff]  }
   0x3   :  { %247 = vmatpush3.bf16.msra.mxu0 %v266_v0  ;;  %262 = vmatprep.mubr.bf16.mxu0 %v274_v4  ;;  %v270_v5 = vld [vmem:[%s335_s1 + $0x20] sm:$0xff]   ;;  %v272_v7 = vld [vmem:[%s335_s1 + $0x30] sm:$0xff]   ;;  %v273_v8 = vld [vmem:[%s335_s1 + $0x38] sm:$0xff]  }
   0x4   :  { %248 = vmatprep.subr.bf16.mxu0 %v267_v1  ;;  %v275_v9 = vld [vmem:[%s336_s0 + $0x8] sm:$0xff]   ;;  %v216_v11 = vld [vmem:[%s337_s2] ss:$0 sm:$0xff] }
   0x7   :  { %249 = vmatpush3.bf16.msra.mxu0 %v267_v1 }
   0x8   :  { %250 = vmatprep.subr.bf16.mxu0 %v268_v2 }
   0xb   :  { %251 = vmatpush3.bf16.msra.mxu0 %v268_v2 }
   0xc   :  { %252 = vmatprep.subr.bf16.mxu0 %v269_v3 }
   0xf   :  { %253 = vmatpush3.bf16.msra.mxu0 %v269_v3 }
  0x10   :  { %254 = vmatprep.subr.bf16.mxu0 %v270_v5 }
  0x13   :  { %255 = vmatpush3.bf16.msra.mxu0 %v270_v5 }
  0x14   :  { %256 = vmatprep.subr.bf16.mxu0 %v271_v6 }
  0x17   :  { %257 = vmatpush3.bf16.msra.mxu0 %v271_v6 }
  0x18   :  { %258 = vmatprep.subr.bf16.mxu0 %v272_v7 }
  0x1b   :  { %259 = vmatpush3.bf16.msra.mxu0 %v272_v7 }
  0x1c   :  { %260 = vmatprep.subr.bf16.mxu0 %v273_v8 }
  0x1f   :  { %261 = vmatpush3.bf16.msra.mxu0 %v273_v8 }
  0x22   :  { %263 = vmatmul.mubr.bf16.vlgmr.msra.gmra.mrb[0].mxu0 %v275_v9 }
  0xf5   :  { %v264_v10 = vpop.f32.mrb[0].mxu0 }
  0xf6   :  { %v141_v12 = vpop.f32.mrb[1].mxu0  ;;  %v180_v14 = vadd.f32 %v264_v10, %v216_v11 }
  0xf7   :  { %v265_v13 = vpop.f32.mrb[2].mxu0  ;;  %v178_v17 = vadd.f32 %v216_v11, %v141_v12 }
  0xf8   :  { %v181_v15 = vadd.f32 %v265_v13, %v216_v11  ;;  %v144_v16 = vpop.f32.mrb[3].mxu0 }
  0xf9   :  { %v179_v18 = vadd.f32 %v216_v11, %v144_v16 }
  0xfa   :  { %v233_v19 = vpack.c.bf16 %v181_v15, %v180_v14 }
  0xfb   :  { %v228_v20 = vpack.c.bf16 %v179_v18, %v178_v17 }
  0xfc   :  { %235 = vst [vmem:[%s338_s3 + $0x8] sm:$0xff] %v233_v19  }
  0xfd   :  { %229 = vst [vmem:[%s338_s3] sm:$0xff] %v228_v20  }

// kernel: _lambda_.25
= control target key start
LH: loop header
LB: loop body
LE: loop exit
PB: predicated region body
PF: predicated region fallthrough
CT: control target
= control target key end

     0   :  { %s374_s1 = inlined_call_operand.vmem [shape: bf16[128,128], index: 1, kind: input, shape index: {}]   ;;  %s375_s0 = inlined_call_operand.vmem [shape: bf16[32,128], index: 0, kind: input, shape index: {}]   ;;  %s376_s3 = inlined_call_operand.vmem [shape: bf16[32,128], index: 3, kind: input, shape index: {}]   ;;  %s377_s2 = inlined_call_operand.vmem [shape: f32[1,128], index: 2, kind: input, shape index: {}]   ;;  %s378_s4 = inlined_call_operand.vmem [shape: bf16[32,128], index: 4, kind: output, shape index: {}]  }
   0x1   :  { %v294_v0 = vld [vmem:[%s374_s1] sm:$0xff]   ;;  %v295_v1 = vld [vmem:[%s374_s1 + $0x8] sm:$0xff]   ;;  %v296_v2 = vld [vmem:[%s374_s1 + $0x10] sm:$0xff]  }
   0x2   :  { %274 = vmatprep.subr.bf16.mxu0 %v294_v0  ;;  %v297_v3 = vld [vmem:[%s374_s1 + $0x18] sm:$0xff]   ;;  %v302_v4 = vld [vmem:[%s375_s0] sm:$0xff]   ;;  %v299_v6 = vld [vmem:[%s374_s1 + $0x28] sm:$0xff]  }
   0x3   :  { %275 = vmatpush3.bf16.msra.mxu0 %v294_v0  ;;  %290 = vmatprep.mubr.bf16.mxu0 %v302_v4  ;;  %v298_v5 = vld [vmem:[%s374_s1 + $0x20] sm:$0xff]   ;;  %v300_v7 = vld [vmem:[%s374_s1 + $0x30] sm:$0xff]   ;;  %v301_v8 = vld [vmem:[%s374_s1 + $0x38] sm:$0xff]  }
   0x4   :  { %276 = vmatprep.subr.bf16.mxu0 %v295_v1  ;;  %v303_v9 = vld [vmem:[%s375_s0 + $0x8] sm:$0xff]   ;;  %v245_v11 = vld [vmem:[%s376_s3] sm:$0xff]  }
   0x5   :  { %v262_v10 = vld [vmem:[%s376_s3 + $0x8] sm:$0xff]   ;;  %v235_v12 = vld [vmem:[%s377_s2] ss:$0 sm:$0xff]  ;;  %v246_v15 = vunpack.c.l.bf16 %v245_v11  ;;  %v247_v21 = vunpack.c.h.bf16 %v245_v11 }
   0x6   :  { %v250_v13 = vunpack.c.l.bf16 %v262_v10  ;;  %v251_v18 = vunpack.c.h.bf16 %v262_v10 }
   0x7   :  { %277 = vmatpush3.bf16.msra.mxu0 %v295_v1 }
   0x8   :  { %278 = vmatprep.subr.bf16.mxu0 %v296_v2 }
   0xb   :  { %279 = vmatpush3.bf16.msra.mxu0 %v296_v2 }
   0xc   :  { %280 = vmatprep.subr.bf16.mxu0 %v297_v3 }
   0xf   :  { %281 = vmatpush3.bf16.msra.mxu0 %v297_v3 }
  0x10   :  { %282 = vmatprep.subr.bf16.mxu0 %v298_v5 }
  0x13   :  { %283 = vmatpush3.bf16.msra.mxu0 %v298_v5 }
  0x14   :  { %284 = vmatprep.subr.bf16.mxu0 %v299_v6 }
  0x17   :  { %285 = vmatpush3.bf16.msra.mxu0 %v299_v6 }
  0x18   :  { %286 = vmatprep.subr.bf16.mxu0 %v300_v7 }
  0x1b   :  { %287 = vmatpush3.bf16.msra.mxu0 %v300_v7 }
  0x1c   :  { %288 = vmatprep.subr.bf16.mxu0 %v301_v8 }
  0x1f   :  { %289 = vmatpush3.bf16.msra.mxu0 %v301_v8 }
  0x22   :  { %291 = vmatmul.mubr.bf16.vlgmr.msra.gmra.mrb[0].mxu0 %v303_v9 }
  0xf5   :  { %v292_v14 = vpop.f32.mrb[0].mxu0 }
  0xf6   :  { %v183_v16 = vadd.f32 %v292_v14, %v235_v12  ;;  %v144_v17 = vpop.f32.mrb[1].mxu0 }
  0xf7   :  { %v181_v19 = vadd.f32 %v235_v12, %v144_v17  ;;  %v293_v20 = vpop.f32.mrb[2].mxu0 }
  0xf8   :  { %v195_v22 = vadd.f32 %v250_v13, %v183_v16  ;;  %v184_v23 = vadd.f32 %v293_v20, %v235_v12  ;;  %v147_v24 = vpop.f32.mrb[3].mxu0 }
  0xf9   :  { %v193_v25 = vadd.f32 %v246_v15, %v181_v19  ;;  %v182_v26 = vadd.f32 %v235_v12, %v147_v24 }
  0xfa   :  { %v196_v27 = vadd.f32 %v251_v18, %v184_v23  ;;  %v199_v29 = vmax.f32 %v195_v22, 0.0 }
  0xfb   :  { %v194_v28 = vadd.f32 %v247_v21, %v182_v26  ;;  %v197_v31 = vmax.f32 %v193_v25, 0.0 }
  0xfc   :  { %v200_v30 = vmax.f32 %v196_v27, 0.0 }
  0xfd   :  { %v198_v32 = vmax.f32 %v194_v28, 0.0 }
  0xfe   :  { %v260_v33 = vpack.c.bf16 %v200_v30, %v199_v29 }
  0xff   :  { %v255_v34 = vpack.c.bf16 %v198_v32, %v197_v31 }
 0x100   :  { %263 = vst [vmem:[%s378_s4 + $0x8] sm:$0xff] %v260_v33  }
 0x101   :  { %256 = vst [vmem:[%s378_s4] sm:$0xff] %v255_v34  }

// kernel: _lambda_.27
= control target key start
LH: loop header
LB: loop body
LE: loop exit
PB: predicated region body
PF: predicated region fallthrough
CT: control target
= control target key end

     0   :  { %s647_s12 = smov 0   ;;  %s649_s13 = smov 0   ;;  %s723_s0 = inlined_call_operand.vmem [shape: bf16[4,16,80], index: 0, kind: input, shape index: {}]   ;;  %s724_s1 = inlined_call_operand.vmem [shape: bf16[4,80,128], index: 1, kind: input, shape index: {}]   ;;  %s725_s2 = inlined_call_operand.vmem [shape: f32[4,1,128], index: 2, kind: input, shape index: {}]   ;;  %s726_s3 = inlined_call_operand.vmem [shape: bf16[16,512], index: 3, kind: output, shape index: {}]  }
   0x1   :  { %s651_s14 = smov 0   ;;  %s653_s15 = smov 0  }
   0x2   :  { %s655_s16 = smov 0  }
   0x3 LB: > { %s485_s17 = sadd.s32 4294967295, %s623_s16   ;;  %s25_s18 = sadd.s32 1, %s619_s15  ;;  %s623_s16 = sphi %s655_s16, %s13_s16   ;;  %s619_s15 = sphi %s653_s15, %s731_s15   ;;  %s615_s14 = sphi %s651_s14, %s730_s14   ;;  %s611_s13 = sphi %s649_s13, %s729_s13   ;;  %s607_s12 = sphi %s647_s12, %s728_s12  }
   0x4   : > { %p27_p0 = scmp.ge.s32.totalorder %s25_s18, 4  ;;  %s114_s19 = sadd.s32 1, %s611_s13 }
   0x5   : > { %p124_p1 = scmp.ne.s32.totalorder %s611_s13, %s607_s12  ;;  %p125_p2 = scmp.eq.s32.totalorder %s485_s17, 3 }
   0x6   : > { %s733_s18 = smov (%p27_p0, %s25_s18), 0  ;;  %p489_p4 = scmp.ge.s32.totalorder %s623_s16, 1 }
   0x7   : > { %p679_p3 = por %p125_p2, %p124_p1  ;;  %s110_s21 = ssub.s32 %s619_s15, %s733_s18 }
   0x8   : > { %p176_p5 = scmp.lt.s32.totalorder %s623_s16, 5  ;;  %p112_p6 = scmp.eq.s32.totalorder %s110_s21, 0 }
   0xa   : > { %p177_p7 = pnand %p489_p4, %p176_p5 }
   0xb   : > { %s688_s22 = scalar_select %p112_p6, %s611_s13, %s114_s19  }
   0xc   : > { %180 = sbr.rel (%p177_p7) target bundleno = 273 (0x111), region = 32  ;;  %p212_p8 = scmp.lt.s32.totalorder (!%p177_p7), %s615_s14, 3  ;;  %v625_v0 = vmov (!%p177_p7), 0.0   ;;  %vm626_vm0 = vmmov (!%p177_p7), 0   ;;  %vm285_vm1 = vcmask (!%p177_p7), 654336  }
   0xd   : > { %522 = vmatprep.subr.bf16.mxu0 (!%p177_p7), %v625_v0  ;;  %532 = vmatprep.mubr.msk.bf16.mxu0 (!%p177_p7), %vm626_vm0, %v625_v0  ;;  %s208_s8 = sand.u32 (!%p177_p7), 1, %s607_s12  }
   0xe   : > { %s490_s9 = sshll.u32 (!%p177_p7), %s208_s8, 3 }
   0xf   : > { %s210_s10 = scalar_lea.vmem (!%p177_p7), [#allocation2], %s490_s9 }
  0x13   : > { %s213_s23 = scalar_select %p212_p8, %s615_s14, 3 }
  0x14   : > { %s505_s11 = sshll.u32 (%p679_p3), %s615_s14, 2 }
  0x15   : > { %s536_s24 = smul.u32 40, %s213_s23  ;;  %s508_s25 = sshll.u32 %s213_s23, 3 }
  0x16   : > { %s219_s28 = scalar_lea.vmem %s723_s0, %s508_s25  ;;  %s228_s7 = scalar_lea.vmem %s725_s2, %s213_s23 }
  0x17   : > { %s225_s4 = scalar_lea.vmem %s724_s1, %s536_s24  ;;  %v584_v6 = vld [vmem:[%s219_s28] sm:$0xff]   ;;  %s353_s19 = scalar_lea.vmem (%p679_p3), %s726_s3, %s505_s11 }
  0x18   : > { %v579_v1 = vld [vmem:[%s225_s4] sm:$0xff]   ;;  %v580_v2 = vld [vmem:[%s225_s4 + $0x8] sm:$0xff]   ;;  %v581_v3 = vld [vmem:[%s225_s4 + $0x10] sm:$0xff]  }
  0x19   : > { %523 = vmatpush3.bf16.msra.mxu0 %v579_v1  ;;  %v582_v4 = vld [vmem:[%s225_s4 + $0x18] sm:$0xff]   ;;  %v583_v5 = vld [vmem:[%s225_s4 + $0x20] sm:$0xff]  }
  0x1a   : > { %524 = vmatprep.subr.bf16.mxu0 %v625_v0  ;;  %v494_v7 = vld [vmem:[%s228_s7] ss:$0 sm:$0xff] }
  0x1d   : > { %525 = vmatpush3.bf16.msra.mxu0 %v580_v2 }
  0x1e   : > { %526 = vmatprep.subr.bf16.mxu0 %v625_v0 }
  0x21   : > { %527 = vmatpush3.bf16.msra.mxu0 %v581_v3 }
  0x22   : > { %528 = vmatprep.subr.bf16.mxu0 %v625_v0 }
  0x25   : > { %529 = vmatpush3.bf16.msra.mxu0 %v582_v4 }
  0x26   : > { %530 = vmatprep.subr.bf16.mxu0 %v625_v0 }
  0x29   : > { %531 = vmatpush3.bf16.msra.mxu0 %v583_v5 }
  0x2c   : > { %533 = vmatmul.mubr.msk.bf16.vlgmr.msra.gmra.mrb[0].mxu0 %vm285_vm1, %v584_v6 }
  0xff   : > { %v323_v8 = vpop.f32.mrb[0].mxu0 }
 0x100   : > { %v324_v9 = vadd.f32 %v494_v7, %v323_v8  ;;  %v534_v10 = vpop.f32.mrb[1].mxu0 }
 0x101   : > { %v326_v11 = vpop.f32.mrb[2].mxu0 }
 0x102   : > { %v327_v12 = vadd.f32 %v494_v7, %v326_v11  ;;  %v535_v13 = vpop.f32.mrb[3].mxu0  ;;  %v330_v14 = vmax.f32 %v324_v9, 0.0  ;;  %348 = sbr.rel (!%p679_p3) target bundleno = 273 (0x111), region = 36 }
 0x104   : > { %v331_v15 = vmax.f32 %v327_v12, 0.0 }
 0x106   : > { %v514_v16 = vpack.c.bf16 %v331_v15, %v330_v14 }
 0x108   : > { %515 = vst [vmem:[%s210_s10] sm:$0xff] %v514_v16  }
 0x10f   : > { %v369_v17 = vld [vmem:[%s210_s10] sm:$0xf]  ;;  %v371_v18 = vld [vmem:[%s210_s10 + $0x4] sm:$0xf] }
 0x110   : > { %370 = vst [vmem:[%s353_s19] sm:$0xf] %v369_v17  ;;  %372 = vst [vmem:[%s353_s19 + $0x10] sm:$0xf] %v371_v18 }
 0x111 PF: > { %s13_s16 = sadd.s32 1, %s623_s16   ;;  %s728_s12 = smov %s611_s13 }
 0x112   : > { %p10_p9 = scmp.ge.s32.totalorder %s13_s16, 6   ;;  %s729_s13 = smov %s688_s22 }
 0x113   : > { %s730_s14 = smov %s619_s15  ;;  %s731_s15 = smov %s733_s18 }
 0x114   :  { %12 = sbr.rel (!%p10_p9) target bundleno = 3 (0x3), region = 109 }

// kernel: _lambda_.28
= control target key start
LH: loop header
LB: loop body
LE: loop exit
PB: predicated region body
PF: predicated region fallthrough
CT: control target
= control target key end

     0   :  { %v227_v0 = vmov 0.0   ;;  %vm228_vm0 = vmmov 0   ;;  %s282_s1 = inlined_call_operand.vmem [shape: bf16[128,128], index: 1, kind: input, shape index: {}]   ;;  %s283_s0 = inlined_call_operand.vmem [shape: bf16[16,128], index: 0, kind: input, shape index: {}]   ;;  %s284_s2 = inlined_call_operand.vmem [shape: f32[1,128], index: 2, kind: input, shape index: {}]   ;;  %s285_s3 = inlined_call_operand.vmem [shape: bf16[16,128], index: 3, kind: output, shape index: {}]  }
   0x1   :  { %196 = vmatprep.subr.bf16.mxu0 %v227_v0  ;;  %v218_v1 = vld [vmem:[%s282_s1] sm:$0xff]   ;;  %212 = vmatprep.mubr.msk.bf16.mxu0 %vm228_vm0, %v227_v0  ;;  %v219_v2 = vld [vmem:[%s282_s1 + $0x8] sm:$0xff]   ;;  %v220_v3 = vld [vmem:[%s282_s1 + $0x10] sm:$0xff]  }
   0x2   :  { %197 = vmatpush3.bf16.msra.mxu0 %v218_v1  ;;  %v221_v4 = vld [vmem:[%s282_s1 + $0x18] sm:$0xff]   ;;  %v222_v5 = vld [vmem:[%s282_s1 + $0x20] sm:$0xff]   ;;  %v223_v6 = vld [vmem:[%s282_s1 + $0x28] sm:$0xff]  }
   0x3   :  { %198 = vmatprep.subr.bf16.mxu0 %v227_v0  ;;  %v224_v7 = vld [vmem:[%s282_s1 + $0x30] sm:$0xff]   ;;  %v225_v8 = vld [vmem:[%s282_s1 + $0x38] sm:$0xff]   ;;  %v226_v9 = vld [vmem:[%s283_s0] sm:$0xff]  }
   0x4   :  { %v177_v11 = vld [vmem:[%s284_s2] ss:$0 sm:$0xff] }
   0x6   :  { %199 = vmatpush3.bf16.msra.mxu0 %v219_v2 }
   0x7   :  { %200 = vmatprep.subr.bf16.mxu0 %v227_v0 }
   0xa   :  { %201 = vmatpush3.bf16.msra.mxu0 %v220_v3 }
   0xb   :  { %202 = vmatprep.subr.bf16.mxu0 %v227_v0 }
   0xe   :  { %203 = vmatpush3.bf16.msra.mxu0 %v221_v4 }
   0xf   :  { %204 = vmatprep.subr.bf16.mxu0 %v227_v0 }
  0x12   :  { %205 = vmatpush3.bf16.msra.mxu0 %v222_v5 }
  0x13   :  { %206 = vmatprep.subr.bf16.mxu0 %v227_v0 }
  0x16   :  { %207 = vmatpush3.bf16.msra.mxu0 %v223_v6 }
  0x17   :  { %208 = vmatprep.subr.bf16.mxu0 %v227_v0 }
  0x1a   :  { %209 = vmatpush3.bf16.msra.mxu0 %v224_v7 }
  0x1b   :  { %210 = vmatprep.subr.bf16.mxu0 %v227_v0 }
  0x1e   :  { %211 = vmatpush3.bf16.msra.mxu0 %v225_v8 }
  0x21   :  { %213 = vmatmul.mubr.bf16.vlgmr.msra.gmra.mrb[0].mxu0 %v226_v9 }
  0xf4   :  { %v129_v10 = vpop.f32.mrb[0].mxu0 }
  0xf5   :  { %v214_v12 = vpop.f32.mrb[1].mxu0  ;;  %v152_v14 = vadd.f32 %v177_v11, %v129_v10 }
  0xf6   :  { %v132_v13 = vpop.f32.mrb[2].mxu0 }
  0xf7   :  { %v153_v15 = vadd.f32 %v177_v11, %v132_v13  ;;  %v215_v16 = vpop.f32.mrb[3].mxu0 }
  0xf9   :  { %v185_v17 = vpack.c.bf16 %v153_v15, %v152_v14 }
  0xfb   :  { %186 = vst [vmem:[%s285_s3] sm:$0xff] %v185_v17  }

// kernel: _lambda_.29
= control target key start
LH: loop header
LB: loop body
LE: loop exit
PB: predicated region body
PF: predicated region fallthrough
CT: control target
= control target key end

     0   :  { %v242_v0 = vmov 0.0   ;;  %vm243_vm0 = vmmov 0   ;;  %s305_s1 = inlined_call_operand.vmem [shape: bf16[128,128], index: 1, kind: input, shape index: {}]   ;;  %s306_s0 = inlined_call_operand.vmem [shape: bf16[16,128], index: 0, kind: input, shape index: {}]   ;;  %s307_s3 = inlined_call_operand.vmem [shape: bf16[16,128], index: 3, kind: input, shape index: {}]   ;;  %s308_s2 = inlined_call_operand.vmem [shape: f32[1,128], index: 2, kind: input, shape index: {}]   ;;  %s309_s4 = inlined_call_operand.vmem [shape: bf16[16,128], index: 4, kind: output, shape index: {}]  }
   0x1   :  { %211 = vmatprep.subr.bf16.mxu0 %v242_v0  ;;  %v233_v1 = vld [vmem:[%s305_s1] sm:$0xff]   ;;  %227 = vmatprep.mubr.msk.bf16.mxu0 %vm243_vm0, %v242_v0  ;;  %v234_v2 = vld [vmem:[%s305_s1 + $0x8] sm:$0xff]   ;;  %v235_v3 = vld [vmem:[%s305_s1 + $0x10] sm:$0xff]  }
   0x2   :  { %212 = vmatpush3.bf16.msra.mxu0 %v233_v1  ;;  %v236_v4 = vld [vmem:[%s305_s1 + $0x18] sm:$0xff]   ;;  %v237_v5 = vld [vmem:[%s305_s1 + $0x20] sm:$0xff]   ;;  %v238_v6 = vld [vmem:[%s305_s1 + $0x28] sm:$0xff]  }
   0x3   :  { %213 = vmatprep.subr.bf16.mxu0 %v242_v0  ;;  %v239_v7 = vld [vmem:[%s305_s1 + $0x30] sm:$0xff]   ;;  %v240_v8 = vld [vmem:[%s305_s1 + $0x38] sm:$0xff]   ;;  %v241_v9 = vld [vmem:[%s306_s0] sm:$0xff]  }
   0x4   :  { %v194_v10 = vld [vmem:[%s307_s3] sm:$0xff]  }
   0x5   :  { %v188_v11 = vld [vmem:[%s308_s2] ss:$0 sm:$0xff]  ;;  %v195_v12 = vunpack.c.l.bf16 %v194_v10  ;;  %v196_v16 = vunpack.c.h.bf16 %v194_v10 }
   0x6   :  { %214 = vmatpush3.bf16.msra.mxu0 %v234_v2 }
   0x7   :  { %215 = vmatprep.subr.bf16.mxu0 %v242_v0 }
   0xa   :  { %216 = vmatpush3.bf16.msra.mxu0 %v235_v3 }
   0xb   :  { %217 = vmatprep.subr.bf16.mxu0 %v242_v0 }
   0xe   :  { %218 = vmatpush3.bf16.msra.mxu0 %v236_v4 }
   0xf   :  { %219 = vmatprep.subr.bf16.mxu0 %v242_v0 }
  0x12   :  { %220 = vmatpush3.bf16.msra.mxu0 %v237_v5 }
  0x13   :  { %221 = vmatprep.subr.bf16.mxu0 %v242_v0 }
  0x16   :  { %222 = vmatpush3.bf16.msra.mxu0 %v238_v6 }
  0x17   :  { %223 = vmatprep.subr.bf16.mxu0 %v242_v0 }
  0x1a   :  { %224 = vmatpush3.bf16.msra.mxu0 %v239_v7 }
  0x1b   :  { %225 = vmatprep.subr.bf16.mxu0 %v242_v0 }
  0x1e   :  { %226 = vmatpush3.bf16.msra.mxu0 %v240_v8 }
  0x21   :  { %228 = vmatmul.mubr.bf16.vlgmr.msra.gmra.mrb[0].mxu0 %v241_v9 }
  0xf4   :  { %v132_v13 = vpop.f32.mrb[0].mxu0 }
  0xf5   :  { %v155_v14 = vadd.f32 %v188_v11, %v132_v13  ;;  %v229_v15 = vpop.f32.mrb[1].mxu0 }
  0xf6   :  { %v135_v17 = vpop.f32.mrb[2].mxu0 }
  0xf7   :  { %v161_v18 = vadd.f32 %v195_v12, %v155_v14  ;;  %v156_v19 = vadd.f32 %v188_v11, %v135_v17  ;;  %v230_v20 = vpop.f32.mrb[3].mxu0 }
  0xf9   :  { %v162_v21 = vadd.f32 %v196_v16, %v156_v19  ;;  %v163_v22 = vmax.f32 %v161_v18, 0.0 }
  0xfb   :  { %v164_v23 = vmax.f32 %v162_v21, 0.0 }
  0xfd   :  { %v200_v24 = vpack.c.bf16 %v164_v23, %v163_v22 }
  0xff   :  { %201 = vst [vmem:[%s309_s4] sm:$0xff] %v200_v24  }

// kernel: _lambda_.30
= control target key start
LH: loop header
LB: loop body
LE: loop exit
PB: predicated region body
PF: predicated region fallthrough
CT: control target
= control target key end

     0   :  { %v229_v0 = vmov 0.0   ;;  %vm230_vm0 = vmmov 0   ;;  %s284_s1 = inlined_call_operand.vmem [shape: bf16[128,128], index: 1, kind: input, shape index: {}]   ;;  %s285_s0 = inlined_call_operand.vmem [shape: bf16[16,128], index: 0, kind: input, shape index: {}]   ;;  %s286_s2 = inlined_call_operand.vmem [shape: f32[1,128], index: 2, kind: input, shape index: {}]   ;;  %s287_s3 = inlined_call_operand.vmem [shape: bf16[16,128], index: 3, kind: output, shape index: {}]  }
   0x1   :  { %198 = vmatprep.subr.bf16.mxu0 %v229_v0  ;;  %v220_v1 = vld [vmem:[%s284_s1] sm:$0xff]   ;;  %214 = vmatprep.mubr.msk.bf16.mxu0 %vm230_vm0, %v229_v0  ;;  %v221_v2 = vld [vmem:[%s284_s1 + $0x8] sm:$0xff]   ;;  %v222_v3 = vld [vmem:[%s284_s1 + $0x10] sm:$0xff]  }
   0x2   :  { %199 = vmatpush3.bf16.msra.mxu0 %v220_v1  ;;  %v223_v4 = vld [vmem:[%s284_s1 + $0x18] sm:$0xff]   ;;  %v224_v5 = vld [vmem:[%s284_s1 + $0x20] sm:$0xff]   ;;  %v225_v6 = vld [vmem:[%s284_s1 + $0x28] sm:$0xff]  }
   0x3   :  { %200 = vmatprep.subr.bf16.mxu0 %v229_v0  ;;  %v226_v7 = vld [vmem:[%s284_s1 + $0x30] sm:$0xff]   ;;  %v227_v8 = vld [vmem:[%s284_s1 + $0x38] sm:$0xff]   ;;  %v228_v9 = vld [vmem:[%s285_s0] sm:$0xff]  }
   0x4   :  { %v179_v10 = vld [vmem:[%s286_s2] ss:$0 sm:$0xff] }
   0x6   :  { %201 = vmatpush3.bf16.msra.mxu0 %v221_v2 }
   0x7   :  { %202 = vmatprep.subr.bf16.mxu0 %v229_v0 }
   0xa   :  { %203 = vmatpush3.bf16.msra.mxu0 %v222_v3 }
   0xb   :  { %204 = vmatprep.subr.bf16.mxu0 %v229_v0 }
   0xe   :  { %205 = vmatpush3.bf16.msra.mxu0 %v223_v4 }
   0xf   :  { %206 = vmatprep.subr.bf16.mxu0 %v229_v0 }
  0x12   :  { %207 = vmatpush3.bf16.msra.mxu0 %v224_v5 }
  0x13   :  { %208 = vmatprep.subr.bf16.mxu0 %v229_v0 }
  0x16   :  { %209 = vmatpush3.bf16.msra.mxu0 %v225_v6 }
  0x17   :  { %210 = vmatprep.subr.bf16.mxu0 %v229_v0 }
  0x1a   :  { %211 = vmatpush3.bf16.msra.mxu0 %v226_v7 }
  0x1b   :  { %212 = vmatprep.subr.bf16.mxu0 %v229_v0 }
  0x1e   :  { %213 = vmatpush3.bf16.msra.mxu0 %v227_v8 }
  0x21   :  { %215 = vmatmul.mubr.bf16.vlgmr.msra.gmra.mrb[0].mxu0 %v228_v9 }
  0xf4   :  { %v129_v11 = vpop.f32.mrb[0].mxu0 }
  0xf5   :  { %v152_v12 = vadd.f32 %v179_v10, %v129_v11  ;;  %v216_v13 = vpop.f32.mrb[1].mxu0 }
  0xf6   :  { %v132_v14 = vpop.f32.mrb[2].mxu0 }
  0xf7   :  { %v153_v15 = vadd.f32 %v179_v10, %v132_v14  ;;  %v217_v16 = vpop.f32.mrb[3].mxu0  ;;  %v154_v17 = vmax.f32 %v152_v12, 0.0 }
  0xf9   :  { %v155_v18 = vmax.f32 %v153_v15, 0.0 }
  0xfb   :  { %v187_v19 = vpack.c.bf16 %v155_v18, %v154_v17 }
  0xfd   :  { %188 = vst [vmem:[%s287_s3] sm:$0xff] %v187_v19  }

// kernel: _lambda_.31
= control target key start
LH: loop header
LB: loop body
LE: loop exit
PB: predicated region body
PF: predicated region fallthrough
CT: control target
= control target key end

     0   :  { %s678_s12 = smov 0   ;;  %s680_s13 = smov 0   ;;  %s759_s0 = inlined_call_operand.vmem [shape: bf16[4,16,144], index: 0, kind: input, shape index: {}]   ;;  %s760_s1 = inlined_call_operand.vmem [shape: bf16[4,144,128], index: 1, kind: input, shape index: {}]   ;;  %s761_s2 = inlined_call_operand.vmem [shape: f32[4,1,128], index: 2, kind: input, shape index: {}]   ;;  %s762_s3 = inlined_call_operand.vmem [shape: bf16[16,512], index: 3, kind: output, shape index: {}]  }
   0x1   :  { %s682_s14 = smov 0   ;;  %s684_s15 = smov 0  }
   0x2   :  { %s686_s16 = smov 0  }
   0x3 LB: > { %s527_s17 = sadd.s32 4294967295, %s655_s16   ;;  %s25_s18 = sadd.s32 1, %s651_s15  ;;  %s655_s16 = sphi %s686_s16, %s13_s16   ;;  %s651_s15 = sphi %s684_s15, %s767_s15   ;;  %s647_s14 = sphi %s682_s14, %s766_s14   ;;  %s643_s13 = sphi %s680_s13, %s765_s13   ;;  %s639_s12 = sphi %s678_s12, %s764_s12  }
   0x4   : > { %p27_p0 = scmp.ge.s32.totalorder %s25_s18, 4  ;;  %s114_s19 = sadd.s32 1, %s643_s13 }
   0x5   : > { %p124_p1 = scmp.ne.s32.totalorder %s643_s13, %s639_s12  ;;  %p125_p2 = scmp.eq.s32.totalorder %s527_s17, 3 }
   0x6   : > { %s769_s18 = smov (%p27_p0, %s25_s18), 0  ;;  %p531_p4 = scmp.ge.s32.totalorder %s655_s16, 1 }
   0x7   : > { %p710_p3 = por %p125_p2, %p124_p1  ;;  %s110_s21 = ssub.s32 %s651_s15, %s769_s18 }
   0x8   : > { %p177_p5 = scmp.lt.s32.totalorder %s655_s16, 5  ;;  %p112_p6 = scmp.eq.s32.totalorder %s110_s21, 0 }
   0xa   : > { %p178_p7 = pnand %p531_p4, %p177_p5 }
   0xb   : > { %s719_s22 = scalar_select %p112_p6, %s643_s13, %s114_s19  }
   0xc   : > { %181 = sbr.rel (%p178_p7) target bundleno = 289 (0x121), region = 32  ;;  %p214_p8 = scmp.lt.s32.totalorder (!%p178_p7), %s647_s14, 3  ;;  %v657_v0 = vmov (!%p178_p7), 0   ;;  %vm324_vm0 = vcmask (!%p178_p7), 130048  }
   0xd   : > { %328 = vmatprep.subr.bf16.mxu0 (!%p178_p7), %v657_v0  ;;  %s210_s8 = sand.u32 (!%p178_p7), 1, %s639_s12  }
   0xe   : > { %s532_s9 = sshll.u32 (!%p178_p7), %s210_s8, 3 }
   0xf   : > { %s212_s10 = scalar_lea.vmem (!%p178_p7), [#allocation2], %s532_s9 }
  0x13   : > { %s723_s23 = scalar_select %p214_p8, %s647_s14, 3 }
  0x14   : > { %s552_s11 = sshll.u32 (%p710_p3), %s647_s14, 2 }
  0x15   : > { %s563_s24 = smul.u32 72, %s723_s23  ;;  %s555_s25 = sshll.u32 %s723_s23, 4 }
  0x16   : > { %s222_s28 = scalar_lea.vmem %s759_s0, %s555_s25  ;;  %s231_s7 = scalar_lea.vmem %s761_s2, %s723_s23 }
  0x17   : > { %s228_s4 = scalar_lea.vmem %s760_s1, %s563_s24  ;;  %v616_v4 = vld [vmem:[%s222_s28 + $0x4] ss:$8 sps:$4 sm:$0xff]   ;;  %v614_v11 = vld [vmem:[%s222_s28] ss:$8 sps:$4 sm:$0xff]   ;;  %s392_s19 = scalar_lea.vmem (%p710_p3), %s762_s3, %s552_s11 }
  0x18   : > { %v605_v1 = vld [vmem:[%s228_s4] sm:$0xff]   ;;  %v606_v2 = vld [vmem:[%s228_s4 + $0x8] sm:$0xff]   ;;  %v607_v3 = vld [vmem:[%s228_s4 + $0x10] sm:$0xff]   ;;  %548 = vmatprep.mubr.msk.bf16.mxu0 %vm324_vm0, %v616_v4 }
  0x19   : > { %329 = vmatpush1.bf16.msra.mxu0 %v605_v1  ;;  %v608_v5 = vld [vmem:[%s228_s4 + $0x18] sm:$0xff]   ;;  %v609_v6 = vld [vmem:[%s228_s4 + $0x20] sm:$0xff]   ;;  %v610_v7 = vld [vmem:[%s228_s4 + $0x28] sm:$0xff]  }
  0x1a   : > { %330 = vmatprep.subr.bf16.mxu0 %v657_v0  ;;  %v611_v8 = vld [vmem:[%s228_s4 + $0x30] sm:$0xff]   ;;  %v612_v9 = vld [vmem:[%s228_s4 + $0x38] sm:$0xff]   ;;  %v613_v10 = vld [vmem:[%s228_s4 + $0x40] sm:$0xff]  }
  0x1b   : > { %v536_v12 = vld [vmem:[%s231_s7] ss:$0 sm:$0xff] }
  0x1d   : > { %331 = vmatpush1.bf16.msra.mxu0 %v606_v2 }
  0x1e   : > { %332 = vmatprep.subr.bf16.mxu0 %v657_v0 }
  0x21   : > { %333 = vmatpush1.bf16.msra.mxu0 %v607_v3 }
  0x22   : > { %334 = vmatprep.subr.bf16.mxu0 %v657_v0 }
  0x25   : > { %335 = vmatpush1.bf16.msra.mxu0 %v608_v5 }
  0x26   : > { %336 = vmatprep.subr.bf16.mxu0 %v657_v0 }
  0x29   : > { %337 = vmatpush1.bf16.msra.mxu0 %v609_v6 }
  0x2a   : > { %338 = vmatprep.subr.bf16.mxu0 %v657_v0 }
  0x2d   : > { %339 = vmatpush1.bf16.msra.mxu0 %v610_v7 }
  0x2e   : > { %340 = vmatprep.subr.bf16.mxu0 %v657_v0 }
  0x31   : > { %341 = vmatpush1.bf16.msra.mxu0 %v611_v8 }
  0x32   : > { %342 = vmatprep.subr.bf16.mxu0 %v657_v0 }
  0x35   : > { %343 = vmatpush1.bf16.msra.mxu0 %v612_v9 }
  0x36   : > { %344 = vmatprep.subr.bf16.mxu0 %v657_v0 }
  0x39   : > { %345 = vmatpush1.bf16.msra.mxu0 %v613_v10 }
  0x3c   : > { %361 = vmatmul.mubr.bf16.vlgmr.msra.gmra.mrb[0].mxu0 %v614_v11 }
 0x10f   : > { %v362_v13 = vpop.f32.mrb[0].mxu0 }
 0x110   : > { %v363_v14 = vadd.f32 %v536_v12, %v362_v13  ;;  %v364_v15 = vpop.f32.mrb[1].mxu0 }
 0x111   : > { %v365_v16 = vpop.f32.mrb[2].mxu0 }
 0x112   : > { %v366_v17 = vadd.f32 %v536_v12, %v365_v16  ;;  %v367_v18 = vpop.f32.mrb[3].mxu0  ;;  %v369_v19 = vmax.f32 %v363_v14, 0.0  ;;  %387 = sbr.rel (!%p710_p3) target bundleno = 289 (0x121), region = 36 }
 0x114   : > { %v370_v20 = vmax.f32 %v366_v17, 0.0 }
 0x116   : > { %v561_v21 = vpack.c.bf16 %v370_v20, %v369_v19 }
 0x118   : > { %562 = vst [vmem:[%s212_s10] sm:$0xff] %v561_v21  }
 0x11f   : > { %v408_v22 = vld [vmem:[%s212_s10] sm:$0xf]  ;;  %v410_v23 = vld [vmem:[%s212_s10 + $0x4] sm:$0xf] }
 0x120   : > { %409 = vst [vmem:[%s392_s19] sm:$0xf] %v408_v22  ;;  %411 = vst [vmem:[%s392_s19 + $0x10] sm:$0xf] %v410_v23 }
 0x121 PF: > { %s13_s16 = sadd.s32 1, %s655_s16   ;;  %s764_s12 = smov %s643_s13 }
 0x122   : > { %p10_p9 = scmp.ge.s32.totalorder %s13_s16, 6   ;;  %s765_s13 = smov %s719_s22 }
 0x123   : > { %s766_s14 = smov %s651_s15  ;;  %s767_s15 = smov %s769_s18 }
 0x124   :  { %12 = sbr.rel (!%p10_p9) target bundleno = 3 (0x3), region = 109 }

// kernel: _lambda_.32
= control target key start
LH: loop header
LB: loop body
LE: loop exit
PB: predicated region body
PF: predicated region fallthrough
CT: control target
= control target key end

     0   :  { %v270_v1 = vmov 0   ;;  %v191_v18 = vlaneseq  ;;  %s351_s1 = inlined_call_operand.vmem [shape: bf16[128,256], index: 1, kind: input, shape index: {}]   ;;  %s352_s0 = inlined_call_operand.vmem [shape: bf16[16,128], index: 0, kind: input, shape index: {}]   ;;  %s353_s2 = inlined_call_operand.vmem [shape: f32[1,256], index: 2, kind: input, shape index: {}]   ;;  %s354_s3 = inlined_call_operand.vmem [shape: bf16[16,256], index: 3, kind: output, shape index: {}]  }
   0x1   :  { %v245_v0 = vld [vmem:[%s351_s1 + $0x4] ss:$8 sps:$4 sm:$0xff]   ;;  %163 = vmatprep.mubr.bf16.mxu0 %v270_v1  ;;  %v247_v2 = vld [vmem:[%s351_s1] ss:$8 sps:$4 sm:$0xff]   ;;  %v248_v3 = vld [vmem:[%s351_s1 + $0x14] ss:$8 sps:$4 sm:$0xff]  }
   0x2   :  { %131 = vmatprep.subr.bf16.mxu0 %v245_v0  ;;  %v250_v4 = vld [vmem:[%s351_s1 + $0x10] ss:$8 sps:$4 sm:$0xff]   ;;  %v251_v5 = vld [vmem:[%s351_s1 + $0x24] ss:$8 sps:$4 sm:$0xff]   ;;  %v253_v6 = vld [vmem:[%s351_s1 + $0x20] ss:$8 sps:$4 sm:$0xff]  }
   0x3   :  { %132 = vmatpush1.bf16.msra.mxu0 %v247_v2  ;;  %v254_v7 = vld [vmem:[%s351_s1 + $0x34] ss:$8 sps:$4 sm:$0xff]   ;;  %v256_v8 = vld [vmem:[%s351_s1 + $0x30] ss:$8 sps:$4 sm:$0xff]   ;;  %v257_v9 = vld [vmem:[%s351_s1 + $0x44] ss:$8 sps:$4 sm:$0xff]  }
   0x4   :  { %133 = vmatprep.subr.bf16.mxu0 %v248_v3  ;;  %v259_v10 = vld [vmem:[%s351_s1 + $0x40] ss:$8 sps:$4 sm:$0xff]   ;;  %v260_v11 = vld [vmem:[%s351_s1 + $0x54] ss:$8 sps:$4 sm:$0xff]   ;;  %v262_v12 = vld [vmem:[%s351_s1 + $0x50] ss:$8 sps:$4 sm:$0xff]  }
   0x5   :  { %v263_v13 = vld [vmem:[%s351_s1 + $0x64] ss:$8 sps:$4 sm:$0xff]   ;;  %v265_v14 = vld [vmem:[%s351_s1 + $0x60] ss:$8 sps:$4 sm:$0xff]   ;;  %v266_v15 = vld [vmem:[%s351_s1 + $0x74] ss:$8 sps:$4 sm:$0xff]  }
   0x6   :  { %v268_v16 = vld [vmem:[%s351_s1 + $0x70] ss:$8 sps:$4 sm:$0xff]   ;;  %v269_v17 = vld [vmem:[%s352_s0] sm:$0xff]   ;;  %v192_v19 = vshrl.u32 %v191_v18, 7 }
   0x7   :  { %134 = vmatpush1.bf16.msra.mxu0 %v250_v4  ;;  %v189_v21 = vld [vmem:[%s353_s2] sm:$0x3] }
   0x8   :  { %135 = vmatprep.subr.bf16.mxu0 %v251_v5  ;;  %v193_v20 = vsub.s32 0, %v192_v19  ;;  %v197_v22 = vsub.s32 1, %v192_v19 }
   0xa   :  { %v194_v23 = vrot.slane %v189_v21, %v193_v20  ;;  %v198_v24 = vrot.slane %v189_v21, %v197_v22 }
   0xb   :  { %136 = vmatpush1.bf16.msra.mxu0 %v253_v6 }
   0xc   :  { %137 = vmatprep.subr.bf16.mxu0 %v254_v7 }
   0xf   :  { %138 = vmatpush1.bf16.msra.mxu0 %v256_v8 }
  0x10   :  { %139 = vmatprep.subr.bf16.mxu0 %v257_v9 }
  0x13   :  { %140 = vmatpush1.bf16.msra.mxu0 %v259_v10 }
  0x14   :  { %141 = vmatprep.subr.bf16.mxu0 %v260_v11 }
  0x17   :  { %142 = vmatpush1.bf16.msra.mxu0 %v262_v12 }
  0x18   :  { %143 = vmatprep.subr.bf16.mxu0 %v263_v13 }
  0x1b   :  { %144 = vmatpush1.bf16.msra.mxu0 %v265_v14 }
  0x1c   :  { %145 = vmatprep.subr.bf16.mxu0 %v266_v15 }
  0x1f   :  { %146 = vmatpush1.bf16.msra.mxu0 %v268_v16 }
  0x22   :  { %164 = vmatmul.mubr.bf16.vlgmr.msra.gmra.mrb[0].mxu0 %v269_v17 }
  0xf5   :  { %v165_v25 = vpop.f32.mrb[0].mxu0 }
  0xf6   :  { %v201_v26 = vadd.f32 %v194_v23, %v165_v25  ;;  %v167_v27 = vpop.f32.mrb[1].mxu0 }
  0xf7   :  { %v202_v28 = vadd.f32 %v198_v24, %v167_v27  ;;  %v169_v29 = vpop.f32.mrb[2].mxu0 }
  0xf8   :  { %v203_v30 = vadd.f32 %v194_v23, %v169_v29  ;;  %v171_v31 = vpop.f32.mrb[3].mxu0 }
  0xf9   :  { %v242_v32 = vpack.c.bf16 %v202_v28, %v201_v26  ;;  %v204_v33 = vadd.f32 %v198_v24, %v171_v31 }
  0xfb   :  { %217 = vst [vmem:[%s354_s3] sm:$0xff] %v242_v32  ;;  %v243_v34 = vpack.c.bf16 %v204_v33, %v203_v30 }
  0xfd   :  { %218 = vst [vmem:[%s354_s3 + $0x8] sm:$0xff] %v243_v34 }

// kernel: _lambda_.33
= control target key start
LH: loop header
LB: loop body
LE: loop exit
PB: predicated region body
PF: predicated region fallthrough
CT: control target
= control target key end

     0   :  { %v287_v1 = vmov 0   ;;  %v194_v18 = vlaneseq  ;;  %s379_s1 = inlined_call_operand.vmem [shape: bf16[128,256], index: 1, kind: input, shape index: {}]   ;;  %s380_s0 = inlined_call_operand.vmem [shape: bf16[16,128], index: 0, kind: input, shape index: {}]   ;;  %s381_s2 = inlined_call_operand.vmem [shape: f32[1,256], index: 2, kind: input, shape index: {}]   ;;  %s382_s3 = inlined_call_operand.vmem [shape: bf16[16,256], index: 3, kind: input, shape index: {}]   ;;  %s383_s4 = inlined_call_operand.vmem [shape: bf16[16,256], index: 4, kind: output, shape index: {}]  }
   0x1   :  { %v262_v0 = vld [vmem:[%s379_s1 + $0x4] ss:$8 sps:$4 sm:$0xff]   ;;  %166 = vmatprep.mubr.bf16.mxu0 %v287_v1  ;;  %v264_v2 = vld [vmem:[%s379_s1] ss:$8 sps:$4 sm:$0xff]   ;;  %v265_v3 = vld [vmem:[%s379_s1 + $0x14] ss:$8 sps:$4 sm:$0xff]  }
   0x2   :  { %134 = vmatprep.subr.bf16.mxu0 %v262_v0  ;;  %v267_v4 = vld [vmem:[%s379_s1 + $0x10] ss:$8 sps:$4 sm:$0xff]   ;;  %v268_v5 = vld [vmem:[%s379_s1 + $0x24] ss:$8 sps:$4 sm:$0xff]   ;;  %v270_v6 = vld [vmem:[%s379_s1 + $0x20] ss:$8 sps:$4 sm:$0xff]  }
   0x3   :  { %135 = vmatpush1.bf16.msra.mxu0 %v264_v2  ;;  %v271_v7 = vld [vmem:[%s379_s1 + $0x34] ss:$8 sps:$4 sm:$0xff]   ;;  %v273_v8 = vld [vmem:[%s379_s1 + $0x30] ss:$8 sps:$4 sm:$0xff]   ;;  %v274_v9 = vld [vmem:[%s379_s1 + $0x44] ss:$8 sps:$4 sm:$0xff]  }
   0x4   :  { %136 = vmatprep.subr.bf16.mxu0 %v265_v3  ;;  %v276_v10 = vld [vmem:[%s379_s1 + $0x40] ss:$8 sps:$4 sm:$0xff]   ;;  %v277_v11 = vld [vmem:[%s379_s1 + $0x54] ss:$8 sps:$4 sm:$0xff]   ;;  %v279_v12 = vld [vmem:[%s379_s1 + $0x50] ss:$8 sps:$4 sm:$0xff]  }
   0x5   :  { %v280_v13 = vld [vmem:[%s379_s1 + $0x64] ss:$8 sps:$4 sm:$0xff]   ;;  %v282_v14 = vld [vmem:[%s379_s1 + $0x60] ss:$8 sps:$4 sm:$0xff]   ;;  %v283_v15 = vld [vmem:[%s379_s1 + $0x74] ss:$8 sps:$4 sm:$0xff]  }
   0x6   :  { %v285_v16 = vld [vmem:[%s379_s1 + $0x70] ss:$8 sps:$4 sm:$0xff]   ;;  %v286_v17 = vld [vmem:[%s380_s0] sm:$0xff]   ;;  %v195_v19 = vshrl.u32 %v194_v18, 7  ;;  %v209_v26 = vld [vmem:[%s382_s3 + $0x8] sm:$0xff] }
   0x7   :  { %137 = vmatpush1.bf16.msra.mxu0 %v267_v4  ;;  %v192_v21 = vld [vmem:[%s381_s2] sm:$0x3]  ;;  %v212_v32 = vunpack.c.l.bf16 %v209_v26  ;;  %v213_v35 = vunpack.c.h.bf16 %v209_v26 }
   0x8   :  { %138 = vmatprep.subr.bf16.mxu0 %v268_v5  ;;  %v196_v20 = vsub.s32 0, %v195_v19  ;;  %v200_v22 = vsub.s32 1, %v195_v19  ;;  %v208_v23 = vld [vmem:[%s382_s3] sm:$0xff] }
   0x9   :  { %v210_v27 = vunpack.c.l.bf16 %v208_v23  ;;  %v211_v29 = vunpack.c.h.bf16 %v208_v23 }
   0xa   :  { %v197_v24 = vrot.slane %v192_v21, %v196_v20  ;;  %v201_v25 = vrot.slane %v192_v21, %v200_v22 }
   0xb   :  { %139 = vmatpush1.bf16.msra.mxu0 %v270_v6 }
   0xc   :  { %140 = vmatprep.subr.bf16.mxu0 %v271_v7 }
   0xf   :  { %141 = vmatpush1.bf16.msra.mxu0 %v273_v8 }
  0x10   :  { %142 = vmatprep.subr.bf16.mxu0 %v274_v9 }
  0x13   :  { %143 = vmatpush1.bf16.msra.mxu0 %v276_v10 }
  0x14   :  { %144 = vmatprep.subr.bf16.mxu0 %v277_v11 }
  0x17   :  { %145 = vmatpush1.bf16.msra.mxu0 %v279_v12 }
  0x18   :  { %146 = vmatprep.subr.bf16.mxu0 %v280_v13 }
  0x1b   :  { %147 = vmatpush1.bf16.msra.mxu0 %v282_v14 }
  0x1c   :  { %148 = vmatprep.subr.bf16.mxu0 %v283_v15 }
  0x1f   :  { %149 = vmatpush1.bf16.msra.mxu0 %v285_v16 }
  0x22   :  { %167 = vmatmul.mubr.bf16.vlgmr.msra.gmra.mrb[0].mxu0 %v286_v17 }
  0xf5   :  { %v168_v28 = vpop.f32.mrb[0].mxu0 }
  0xf6   :  { %v204_v30 = vadd.f32 %v197_v24, %v168_v28  ;;  %v170_v31 = vpop.f32.mrb[1].mxu0 }
  0xf7   :  { %v205_v33 = vadd.f32 %v201_v25, %v170_v31  ;;  %v172_v34 = vpop.f32.mrb[2].mxu0 }
  0xf8   :  { %v214_v36 = vadd.f32 %v210_v27, %v204_v30  ;;  %v206_v37 = vadd.f32 %v197_v24, %v172_v34  ;;  %v174_v38 = vpop.f32.mrb[3].mxu0 }
  0xf9   :  { %v215_v39 = vadd.f32 %v211_v29, %v205_v33  ;;  %v207_v40 = vadd.f32 %v201_v25, %v174_v38 }
  0xfa   :  { %v218_v41 = vmax.f32 %v214_v36, 0.0  ;;  %v216_v42 = vadd.f32 %v212_v32, %v206_v37 }
  0xfb   :  { %v219_v43 = vmax.f32 %v215_v39, 0.0  ;;  %v217_v44 = vadd.f32 %v213_v35, %v207_v40 }
  0xfc   :  { %v220_v45 = vmax.f32 %v216_v42, 0.0 }
  0xfd   :  { %v259_v46 = vpack.c.bf16 %v219_v43, %v218_v41  ;;  %v221_v47 = vmax.f32 %v217_v44, 0.0 }
  0xff   :  { %234 = vst [vmem:[%s383_s4] sm:$0xff] %v259_v46  ;;  %v260_v48 = vpack.c.bf16 %v221_v47, %v220_v45 }
 0x101   :  { %235 = vst [vmem:[%s383_s4 + $0x8] sm:$0xff] %v260_v48 }

// kernel: _lambda_.34
= control target key start
LH: loop header
LB: loop body
LE: loop exit
PB: predicated region body
PF: predicated region fallthrough
CT: control target
= control target key end

     0   :  { %s387_s1 = inlined_call_operand.vmem [shape: bf16[256,128], index: 1, kind: input, shape index: {}]   ;;  %s388_s0 = inlined_call_operand.vmem [shape: bf16[16,256], index: 0, kind: input, shape index: {}]   ;;  %s389_s2 = inlined_call_operand.vmem [shape: f32[1,128], index: 2, kind: input, shape index: {}]   ;;  %s390_s3 = inlined_call_operand.vmem [shape: bf16[16,128], index: 3, kind: output, shape index: {}]  }
   0x1   :  { %v288_v0 = vld [vmem:[%s387_s1 + $0x40] sm:$0xff]   ;;  %v290_v2 = vld [vmem:[%s387_s1 + $0x48] sm:$0xff]   ;;  %v292_v4 = vld [vmem:[%s387_s1 + $0x50] sm:$0xff]  }
   0x2   :  { %v289_v1 = vld [vmem:[%s387_s1] sm:$0xff]   ;;  %266 = vmatprep.subr.bf16.mxu0 %v288_v0  ;;  %v291_v3 = vld [vmem:[%s387_s1 + $0x8] sm:$0xff]   ;;  %v293_v5 = vld [vmem:[%s387_s1 + $0x10] sm:$0xff]  }
   0x3   :  { %267 = vmatpush3.bf16.msra.mxu0 %v289_v1  ;;  %v294_v6 = vld [vmem:[%s387_s1 + $0x58] sm:$0xff]   ;;  %v296_v8 = vld [vmem:[%s387_s1 + $0x60] sm:$0xff]   ;;  %v298_v10 = vld [vmem:[%s387_s1 + $0x68] sm:$0xff]  }
   0x4   :  { %268 = vmatprep.subr.bf16.mxu0 %v290_v2  ;;  %v295_v7 = vld [vmem:[%s387_s1 + $0x18] sm:$0xff]   ;;  %v297_v9 = vld [vmem:[%s387_s1 + $0x20] sm:$0xff]   ;;  %v299_v12 = vld [vmem:[%s387_s1 + $0x28] sm:$0xff]  }
   0x5   :  { %v306_v11 = vld [vmem:[%s388_s0 + $0x4] ss:$8 sps:$4 sm:$0xff]   ;;  %v300_v13 = vld [vmem:[%s387_s1 + $0x70] sm:$0xff]   ;;  %v302_v15 = vld [vmem:[%s387_s1 + $0x78] sm:$0xff]  }
   0x6   :  { %195 = vmatprep.mubr.bf16.mxu0 %v306_v11  ;;  %v301_v14 = vld [vmem:[%s387_s1 + $0x30] sm:$0xff]   ;;  %v303_v16 = vld [vmem:[%s387_s1 + $0x38] sm:$0xff]   ;;  %v304_v17 = vld [vmem:[%s388_s0] ss:$8 sps:$4 sm:$0xff]  }
   0x7   :  { %269 = vmatpush3.bf16.msra.mxu0 %v291_v3  ;;  %v256_v20 = vld [vmem:[%s389_s2] ss:$0 sm:$0xff] }
   0x8   :  { %270 = vmatprep.subr.bf16.mxu0 %v292_v4 }
   0xb   :  { %271 = vmatpush3.bf16.msra.mxu0 %v293_v5 }
   0xc   :  { %272 = vmatprep.subr.bf16.mxu0 %v294_v6 }
   0xf   :  { %273 = vmatpush3.bf16.msra.mxu0 %v295_v7 }
  0x10   :  { %274 = vmatprep.subr.bf16.mxu0 %v296_v8 }
  0x13   :  { %275 = vmatpush3.bf16.msra.mxu0 %v297_v9 }
  0x14   :  { %276 = vmatprep.subr.bf16.mxu0 %v298_v10 }
  0x17   :  { %277 = vmatpush3.bf16.msra.mxu0 %v299_v12 }
  0x18   :  { %278 = vmatprep.subr.bf16.mxu0 %v300_v13 }
  0x1b   :  { %279 = vmatpush3.bf16.msra.mxu0 %v301_v14 }
  0x1c   :  { %280 = vmatprep.subr.bf16.mxu0 %v302_v15 }
  0x1f   :  { %281 = vmatpush3.bf16.msra.mxu0 %v303_v16 }
  0x22   :  { %196 = vmatmul.mubr.bf16.vlgmr.msra.gmra.mrb[0].mxu0 %v304_v17 }
  0xf5   :  { %v282_v18 = vpop.f32.mrb[0].mxu0 }
  0xf6   :  { %v283_v19 = vpop.f32.mrb[1].mxu0 }
  0xf7   :  { %v284_v21 = vadd.f32 %v283_v19, %v282_v18  ;;  %v285_v22 = vpop.f32.mrb[2].mxu0 }
  0xf8   :  { %v286_v23 = vpop.f32.mrb[3].mxu0 }
  0xf9   :  { %v220_v24 = vadd.f32 %v284_v21, %v256_v20  ;;  %v287_v25 = vadd.f32 %v286_v23, %v285_v22 }
  0xfb   :  { %v221_v26 = vadd.f32 %v287_v25, %v256_v20  ;;  %v222_v27 = vmax.f32 %v220_v24, 0.0 }
  0xfd   :  { %v223_v28 = vmax.f32 %v221_v26, 0.0 }
  0xff   :  { %v264_v29 = vpack.c.bf16 %v223_v28, %v222_v27 }
 0x101   :  { %265 = vst [vmem:[%s390_s3] sm:$0xff] %v264_v29  }

// kernel: _lambda_.36
= control target key start
LH: loop header
LB: loop body
LE: loop exit
PB: predicated region body
PF: predicated region fallthrough
CT: control target
= control target key end

     0   :  { %s1011_s1 = inlined_call_operand.vmem [shape: bf16[256,512], index: 1, kind: input, shape index: {}]   ;;  %s1012_s0 = inlined_call_operand.vmem [shape: bf16[16,256], index: 0, kind: input, shape index: {}]   ;;  %s1013_s2 = inlined_call_operand.vmem [shape: f32[1,512], index: 2, kind: input, shape index: {}]   ;;  %s1014_s3 = inlined_call_operand.vmem [shape: bf16[16,512], index: 3, kind: output, shape index: {}]  }
   0x1   :  { %v679_v0 = vld [vmem:[%s1011_s1 + $0x4] ss:$16 sps:$4 sm:$0xff]   ;;  %v681_v1 = vld [vmem:[%s1011_s1 + $0xc] ss:$16 sps:$4 sm:$0xff]   ;;  %v683_v2 = vld [vmem:[%s1011_s1] ss:$16 sps:$4 sm:$0xff]  }
   0x2   :  { %430 = vmatprep.subr.bf16.mxu0 %v679_v0  ;;  %v684_v3 = vld [vmem:[%s1011_s1 + $0x8] ss:$16 sps:$4 sm:$0xff]   ;;  %473 = vmatprep.subr.bf16.mxu1 %v681_v1  ;;  %v685_v4 = vld [vmem:[%s1011_s1 + $0x24] ss:$16 sps:$4 sm:$0xff]   ;;  %v687_v5 = vld [vmem:[%s1011_s1 + $0x2c] ss:$16 sps:$4 sm:$0xff]  }
   0x3   :  { %431 = vmatpush1.bf16.msra.mxu0 %v683_v2  ;;  %474 = vmatpush1.bf16.msra.mxu1 %v684_v3  ;;  %v689_v6 = vld [vmem:[%s1011_s1 + $0x20] ss:$16 sps:$4 sm:$0xff]   ;;  %v690_v7 = vld [vmem:[%s1011_s1 + $0x28] ss:$16 sps:$4 sm:$0xff]   ;;  %v691_v8 = vld [vmem:[%s1011_s1 + $0x44] ss:$16 sps:$4 sm:$0xff]   ;;  %v545_v2 = vlaneseq }
   0x4   :  { %432 = vmatprep.subr.bf16.mxu0 %v685_v4  ;;  %475 = vmatprep.subr.bf16.mxu1 %v687_v5  ;;  %v693_v9 = vld [vmem:[%s1011_s1 + $0x4c] ss:$16 sps:$4 sm:$0xff]   ;;  %v695_v10 = vld [vmem:[%s1011_s1 + $0x40] ss:$16 sps:$4 sm:$0xff]   ;;  %v696_v11 = vld [vmem:[%s1011_s1 + $0x48] ss:$16 sps:$4 sm:$0xff]  }
   0x5   :  { %v697_v12 = vld [vmem:[%s1011_s1 + $0x64] ss:$16 sps:$4 sm:$0xff]   ;;  %v699_v13 = vld [vmem:[%s1011_s1 + $0x6c] ss:$16 sps:$4 sm:$0xff]   ;;  %v701_v14 = vld [vmem:[%s1011_s1 + $0x60] ss:$16 sps:$4 sm:$0xff]  }
   0x6   :  { %v702_v15 = vld [vmem:[%s1011_s1 + $0x68] ss:$16 sps:$4 sm:$0xff]   ;;  %v703_v16 = vld [vmem:[%s1011_s1 + $0x84] ss:$16 sps:$4 sm:$0xff]   ;;  %v705_v17 = vld [vmem:[%s1011_s1 + $0x8c] ss:$16 sps:$4 sm:$0xff]  }
   0x7   :  { %433 = vmatpush1.bf16.msra.mxu0 %v689_v6  ;;  %476 = vmatpush1.bf16.msra.mxu1 %v690_v7  ;;  %v707_v18 = vld [vmem:[%s1011_s1 + $0x80] ss:$16 sps:$4 sm:$0xff]   ;;  %v708_v19 = vld [vmem:[%s1011_s1 + $0x88] ss:$16 sps:$4 sm:$0xff]   ;;  %v709_v20 = vld [vmem:[%s1011_s1 + $0xa4] ss:$16 sps:$4 sm:$0xff]  }
   0x8   :  { %434 = vmatprep.subr.bf16.mxu0 %v691_v8  ;;  %477 = vmatprep.subr.bf16.mxu1 %v693_v9  ;;  %v711_v21 = vld [vmem:[%s1011_s1 + $0xac] ss:$16 sps:$4 sm:$0xff]   ;;  %v713_v22 = vld [vmem:[%s1011_s1 + $0xa0] ss:$16 sps:$4 sm:$0xff]   ;;  %v714_v23 = vld [vmem:[%s1011_s1 + $0xa8] ss:$16 sps:$4 sm:$0xff]  }
   0x9   :  { %v715_v24 = vld [vmem:[%s1011_s1 + $0xc4] ss:$16 sps:$4 sm:$0xff]   ;;  %v717_v25 = vld [vmem:[%s1011_s1 + $0xcc] ss:$16 sps:$4 sm:$0xff]   ;;  %v719_v26 = vld [vmem:[%s1011_s1 + $0xc0] ss:$16 sps:$4 sm:$0xff]  }
   0xa   :  { %v720_v27 = vld [vmem:[%s1011_s1 + $0xc8] ss:$16 sps:$4 sm:$0xff]   ;;  %v721_v28 = vld [vmem:[%s1011_s1 + $0xe4] ss:$16 sps:$4 sm:$0xff]   ;;  %v723_v29 = vld [vmem:[%s1011_s1 + $0xec] ss:$16 sps:$4 sm:$0xff]  }
   0xb   :  { %435 = vmatpush1.bf16.msra.mxu0 %v695_v10  ;;  %478 = vmatpush1.bf16.msra.mxu1 %v696_v11  ;;  %v725_v30 = vld [vmem:[%s1011_s1 + $0xe0] ss:$16 sps:$4 sm:$0xff]   ;;  %v726_v31 = vld [vmem:[%s1011_s1 + $0xe8] ss:$16 sps:$4 sm:$0xff]   ;;  %v727_v32 = vld [vmem:[%s1011_s1 + $0x104] ss:$16 sps:$4 sm:$0xff]  }
   0xc   :  { %436 = vmatprep.subr.bf16.mxu0 %v697_v12  ;;  %479 = vmatprep.subr.bf16.mxu1 %v699_v13  ;;  %v729_v33 = vld [vmem:[%s1011_s1 + $0x10c] ss:$16 sps:$4 sm:$0xff]   ;;  %v731_v34 = vld [vmem:[%s1011_s1 + $0x100] ss:$16 sps:$4 sm:$0xff]   ;;  %v732_v35 = vld [vmem:[%s1011_s1 + $0x108] ss:$16 sps:$4 sm:$0xff]  }
   0xd   :  { %v733_v36 = vld [vmem:[%s1011_s1 + $0x124] ss:$16 sps:$4 sm:$0xff]   ;;  %v735_v37 = vld [vmem:[%s1011_s1 + $0x12c] ss:$16 sps:$4 sm:$0xff]   ;;  %v737_v38 = vld [vmem:[%s1011_s1 + $0x120] ss:$16 sps:$4 sm:$0xff]  }
   0xe   :  { %v738_v39 = vld [vmem:[%s1011_s1 + $0x128] ss:$16 sps:$4 sm:$0xff]   ;;  %v739_v40 = vld [vmem:[%s1011_s1 + $0x144] ss:$16 sps:$4 sm:$0xff]   ;;  %v741_v41 = vld [vmem:[%s1011_s1 + $0x14c] ss:$16 sps:$4 sm:$0xff]  }
   0xf   :  { %437 = vmatpush1.bf16.msra.mxu0 %v701_v14  ;;  %480 = vmatpush1.bf16.msra.mxu1 %v702_v15  ;;  %v743_v42 = vld [vmem:[%s1011_s1 + $0x140] ss:$16 sps:$4 sm:$0xff]   ;;  %v744_v43 = vld [vmem:[%s1011_s1 + $0x148] ss:$16 sps:$4 sm:$0xff]   ;;  %v745_v44 = vld [vmem:[%s1011_s1 + $0x164] ss:$16 sps:$4 sm:$0xff]  }
  0x10   :  { %438 = vmatprep.subr.bf16.mxu0 %v703_v16  ;;  %481 = vmatprep.subr.bf16.mxu1 %v705_v17  ;;  %v747_v45 = vld [vmem:[%s1011_s1 + $0x16c] ss:$16 sps:$4 sm:$0xff]   ;;  %v749_v47 = vld [vmem:[%s1011_s1 + $0x160] ss:$16 sps:$4 sm:$0xff]   ;;  %v750_v48 = vld [vmem:[%s1011_s1 + $0x168] ss:$16 sps:$4 sm:$0xff]  }
  0x11   :  { %v777_v46 = vld [vmem:[%s1012_s0 + $0x4] ss:$8 sps:$4 sm:$0xff]   ;;  %v755_v51 = vld [vmem:[%s1011_s1 + $0x180] ss:$16 sps:$4 sm:$0xff]   ;;  %v756_v52 = vld [vmem:[%s1011_s1 + $0x188] ss:$16 sps:$4 sm:$0xff]  }
  0x12   :  { %v751_v49 = vld [vmem:[%s1011_s1 + $0x184] ss:$16 sps:$4 sm:$0xff]   ;;  %v753_v50 = vld [vmem:[%s1011_s1 + $0x18c] ss:$16 sps:$4 sm:$0xff]   ;;  %462 = vmatprep.mubr.bf16.mxu0 %v777_v46  ;;  %505 = vmatprep.mubr.bf16.mxu1 %v777_v46  ;;  %v761_v55 = vld [vmem:[%s1011_s1 + $0x1a0] ss:$16 sps:$4 sm:$0xff]  }
  0x13   :  { %439 = vmatpush1.bf16.msra.mxu0 %v707_v18  ;;  %482 = vmatpush1.bf16.msra.mxu1 %v708_v19  ;;  %v757_v53 = vld [vmem:[%s1011_s1 + $0x1a4] ss:$16 sps:$4 sm:$0xff]   ;;  %v759_v54 = vld [vmem:[%s1011_s1 + $0x1ac] ss:$16 sps:$4 sm:$0xff]   ;;  %v762_v56 = vld [vmem:[%s1011_s1 + $0x1a8] ss:$16 sps:$4 sm:$0xff]  }
  0x14   :  { %440 = vmatprep.subr.bf16.mxu0 %v709_v20  ;;  %483 = vmatprep.subr.bf16.mxu1 %v711_v21  ;;  %v763_v57 = vld [vmem:[%s1011_s1 + $0x1c4] ss:$16 sps:$4 sm:$0xff]   ;;  %v765_v58 = vld [vmem:[%s1011_s1 + $0x1cc] ss:$16 sps:$4 sm:$0xff]   ;;  %v767_v59 = vld [vmem:[%s1011_s1 + $0x1c0] ss:$16 sps:$4 sm:$0xff]  }
  0x15   :  { %v768_v60 = vld [vmem:[%s1011_s1 + $0x1c8] ss:$16 sps:$4 sm:$0xff]   ;;  %v769_v61 = vld [vmem:[%s1011_s1 + $0x1e4] ss:$16 sps:$4 sm:$0xff]   ;;  %v771_v62 = vld [vmem:[%s1011_s1 + $0x1ec] ss:$16 sps:$4 sm:$0xff]  }
  0x16   :  { %v773_v63 = vld [vmem:[%s1011_s1 + $0x1e0] ss:$16 sps:$4 sm:$0xff]   ;;  %v774_v0 = vld [vmem:[%s1011_s1 + $0x1e8] ss:$16 sps:$4 sm:$0xff]   ;;  %v546_v3 = vshrl.u32 %v545_v2, 7 }
  0x17   :  { %441 = vmatpush1.bf16.msra.mxu0 %v713_v22  ;;  %484 = vmatpush1.bf16.msra.mxu1 %v714_v23  ;;  %v775_v1 = vld [vmem:[%s1012_s0] ss:$8 sps:$4 sm:$0xff]  }
  0x18   :  { %442 = vmatprep.subr.bf16.mxu0 %v715_v24  ;;  %485 = vmatprep.subr.bf16.mxu1 %v717_v25  ;;  %v547_v4 = vsub.s32 0, %v546_v3  ;;  %v555_v5 = vsub.s32 2, %v546_v3  ;;  %v543_v6 = vld [vmem:[%s1013_s2] sm:$0xf]  ;;  %v551_v7 = vsub.s32 1, %v546_v3  ;;  %v559_v8 = vsub.s32 3, %v546_v3 }
  0x1a   :  { %v548_v9 = vrot.slane %v543_v6, %v547_v4  ;;  %v556_v10 = vrot.slane %v543_v6, %v555_v5  ;;  %v552_v11 = vrot.slane %v543_v6, %v551_v7  ;;  %v560_v12 = vrot.slane %v543_v6, %v559_v8 }
  0x1b   :  { %443 = vmatpush1.bf16.msra.mxu0 %v719_v26  ;;  %486 = vmatpush1.bf16.msra.mxu1 %v720_v27 }
  0x1c   :  { %444 = vmatprep.subr.bf16.mxu0 %v721_v28  ;;  %487 = vmatprep.subr.bf16.mxu1 %v723_v29 }
  0x1f   :  { %445 = vmatpush1.bf16.msra.mxu0 %v725_v30  ;;  %488 = vmatpush1.bf16.msra.mxu1 %v726_v31 }
  0x20   :  { %446 = vmatprep.subr.bf16.mxu0 %v727_v32  ;;  %489 = vmatprep.subr.bf16.mxu1 %v729_v33 }
  0x23   :  { %447 = vmatpush1.bf16.msra.mxu0 %v731_v34  ;;  %490 = vmatpush1.bf16.msra.mxu1 %v732_v35 }
  0x24   :  { %448 = vmatprep.subr.bf16.mxu0 %v733_v36  ;;  %491 = vmatprep.subr.bf16.mxu1 %v735_v37 }
  0x27   :  { %449 = vmatpush1.bf16.msra.mxu0 %v737_v38  ;;  %492 = vmatpush1.bf16.msra.mxu1 %v738_v39 }
  0x28   :  { %450 = vmatprep.subr.bf16.mxu0 %v739_v40  ;;  %493 = vmatprep.subr.bf16.mxu1 %v741_v41 }
  0x2b   :  { %451 = vmatpush1.bf16.msra.mxu0 %v743_v42  ;;  %494 = vmatpush1.bf16.msra.mxu1 %v744_v43 }
  0x2c   :  { %452 = vmatprep.subr.bf16.mxu0 %v745_v44  ;;  %495 = vmatprep.subr.bf16.mxu1 %v747_v45 }
  0x2f   :  { %453 = vmatpush1.bf16.msra.mxu0 %v749_v47  ;;  %496 = vmatpush1.bf16.msra.mxu1 %v750_v48 }
  0x30   :  { %454 = vmatprep.subr.bf16.mxu0 %v751_v49  ;;  %497 = vmatprep.subr.bf16.mxu1 %v753_v50 }
  0x33   :  { %455 = vmatpush1.bf16.msra.mxu0 %v755_v51  ;;  %498 = vmatpush1.bf16.msra.mxu1 %v756_v52 }
  0x34   :  { %456 = vmatprep.subr.bf16.mxu0 %v757_v53  ;;  %499 = vmatprep.subr.bf16.mxu1 %v759_v54 }
  0x37   :  { %457 = vmatpush1.bf16.msra.mxu0 %v761_v55  ;;  %500 = vmatpush1.bf16.msra.mxu1 %v762_v56 }
  0x38   :  { %458 = vmatprep.subr.bf16.mxu0 %v763_v57  ;;  %501 = vmatprep.subr.bf16.mxu1 %v765_v58 }
  0x3b   :  { %459 = vmatpush1.bf16.msra.mxu0 %v767_v59  ;;  %502 = vmatpush1.bf16.msra.mxu1 %v768_v60 }
  0x3c   :  { %460 = vmatprep.subr.bf16.mxu0 %v769_v61  ;;  %503 = vmatprep.subr.bf16.mxu1 %v771_v62 }
  0x3f   :  { %461 = vmatpush1.bf16.msra.mxu0 %v773_v63  ;;  %504 = vmatpush1.bf16.msra.mxu1 %v774_v0 }
  0x42   :  { %463 = vmatmul.mubr.bf16.vlgmr.msra.gmra.mrb[0].mxu0 %v775_v1  ;;  %506 = vmatmul.mubr.bf16.vlgmr.msra.gmra.mrb[0].mxu1 %v775_v1 }
 0x115   :  { %v464_v13 = vpop.f32.mrb[0].mxu0  ;;  %v507_v14 = vpop.f32.mrb[0].mxu1 }
 0x116   :  { %v565_v15 = vadd.f32 %v548_v9, %v464_v13  ;;  %v567_v16 = vadd.f32 %v556_v10, %v507_v14  ;;  %v466_v17 = vpop.f32.mrb[1].mxu0  ;;  %v509_v18 = vpop.f32.mrb[1].mxu1 }
 0x117   :  { %v566_v19 = vadd.f32 %v552_v11, %v466_v17  ;;  %v568_v20 = vadd.f32 %v560_v12, %v509_v18  ;;  %v468_v21 = vpop.f32.mrb[2].mxu0  ;;  %v511_v22 = vpop.f32.mrb[2].mxu1 }
 0x118   :  { %v569_v23 = vadd.f32 %v548_v9, %v468_v21  ;;  %v571_v24 = vadd.f32 %v556_v10, %v511_v22  ;;  %v470_v25 = vpop.f32.mrb[3].mxu0  ;;  %v513_v26 = vpop.f32.mrb[3].mxu1 }
 0x119   :  { %v675_v27 = vpack.c.bf16 %v566_v19, %v565_v15  ;;  %v676_v28 = vpack.c.bf16 %v568_v20, %v567_v16  ;;  %v570_v29 = vadd.f32 %v552_v11, %v470_v25  ;;  %v572_v30 = vadd.f32 %v560_v12, %v513_v26 }
 0x11b   :  { %597 = vst [vmem:[%s1014_s3] sm:$0xff] %v675_v27  ;;  %598 = vst [vmem:[%s1014_s3 + $0x8] sm:$0xff] %v676_v28  ;;  %v677_v31 = vpack.c.bf16 %v570_v29, %v569_v23  ;;  %v678_v32 = vpack.c.bf16 %v572_v30, %v571_v24 }
 0x11d   :  { %599 = vst [vmem:[%s1014_s3 + $0x10] sm:$0xff] %v677_v31  ;;  %600 = vst [vmem:[%s1014_s3 + $0x18] sm:$0xff] %v678_v32 }

// kernel: _lambda_.38
= control target key start
LH: loop header
LB: loop body
LE: loop exit
PB: predicated region body
PF: predicated region fallthrough
CT: control target
= control target key end

     0   :  { %s204_s6 = smov 0   ;;  %s225_s0 = inlined_call_operand.vmem [shape: bf16[2,1,512], index: 0, kind: input, shape index: {}]   ;;  %s226_s1 = inlined_call_operand.vmem [shape: f32[2,1,512], index: 1, kind: output, shape index: {}]  }
   0x1 LB: > { %s182_s7 = sadd.s32 4294967295, %s206_s6   ;;  %p186_p0 = scmp.ge.s32.totalorder %s206_s6, 1  ;;  %s206_s6 = sphi %s204_s6, %s11_s6  }
   0x2   : > { %p86_p1 = scmp.lt.s32.totalorder %s206_s6, 3 }
   0x4   : > { %p87_p2 = pnand %p186_p0, %p86_p1 }
   0x5   : > { %p104_p3 = scmp.lt.s32.totalorder (!%p87_p2), %s182_s7, 1  ;;  %v119_v0 = vlaneseq (!%p87_p2)  ;;  %v208_v1 = vmov (!%p87_p2), 1966171168  }
   0x6   : > { %90 = sbr.rel (%p87_p2) target bundleno = 22 (0x16), region = 24  ;;  %v117_v2 = vunpack.c.l.s4 (!%p87_p2), %v208_v1 }
   0x7   : > { %v120_v3 = vshrl.u32 (!%p87_p2), %v119_v0, 7  ;;  %vm126_vm0 = vcmp.lt.s32.totalorder (!%p87_p2), %v119_v0, 512 }
   0x8   : > { %v118_v4 = vunpack.c.0.s8 (!%p87_p2), %v117_v2 }
   0xa   : > { %v121_v5 = vsub.s32 (!%p87_p2), %v118_v4, %v120_v3 }
   0xd   : > { %s228_s7 = smov (!%p104_p3, %s182_s7), 1 }
   0xe   : > { %s187_s8 = sshll.u32 %s228_s7, 2 }
   0xf   : > { %s107_s11 = scalar_lea.vmem %s225_s0, %s187_s8  ;;  %s111_s14 = scalar_lea.vmem %s226_s1, %s187_s8 }
  0x10   : > { %v112_v6 = vld [vmem:[%s107_s11] sm:$0xf] }
  0x11   : > { %v113_v7 = vunpack.c.l.bf16 %v112_v6 }
  0x13   : > { %v122_v8 = vrot.slane %v113_v7, %v121_v5 }
  0x15   : > { %128 = vst.msk [vmem:[%s111_s14] sm:$0xf] %vm126_vm0, %v122_v8 }
  0x16 PF: > { %s11_s6 = sadd.s32 1, %s206_s6  }
  0x17   : > { %p8_p4 = scmp.ge.s32.totalorder %s11_s6, 4  }
  0x19   :  { %10 = sbr.rel (!%p8_p4) target bundleno = 1 (0x1), region = 54 }

// kernel: _lambda_.35
= control target key start
LH: loop header
LB: loop body
LE: loop exit
PB: predicated region body
PF: predicated region fallthrough
CT: control target
= control target key end

     0   :  { %s853_s12 = smov 0   ;;  %s855_s13 = smov 0   ;;  %s954_s0 = inlined_call_operand.vmem [shape: bf16[4,16,288], index: 0, kind: input, shape index: {}]   ;;  %s955_s1 = inlined_call_operand.vmem [shape: bf16[4,288,128], index: 1, kind: input, shape index: {}]   ;;  %s956_s2 = inlined_call_operand.vmem [shape: f32[4,1,128], index: 2, kind: input, shape index: {}]   ;;  %s957_s3 = inlined_call_operand.vmem [shape: bf16[16,512], index: 3, kind: output, shape index: {}]  }
   0x1   :  { %s857_s14 = smov 0   ;;  %s859_s15 = smov 0  }
   0x2   :  { %s861_s16 = smov 0  }
   0x3 LB: > { %s648_s17 = sadd.s32 4294967295, %s829_s16   ;;  %s25_s18 = sadd.s32 1, %s825_s15  ;;  %s829_s16 = sphi %s861_s16, %s13_s16   ;;  %s825_s15 = sphi %s859_s15, %s962_s15   ;;  %s821_s14 = sphi %s857_s14, %s961_s14   ;;  %s817_s13 = sphi %s855_s13, %s960_s13   ;;  %s813_s12 = sphi %s853_s12, %s959_s12  }
   0x4   : > { %p27_p0 = scmp.ge.s32.totalorder %s25_s18, 4  ;;  %s114_s19 = sadd.s32 1, %s817_s13 }
   0x5   : > { %p124_p1 = scmp.ne.s32.totalorder %s817_s13, %s813_s12  ;;  %p125_p2 = scmp.eq.s32.totalorder %s648_s17, 3 }
   0x6   : > { %s964_s18 = smov (%p27_p0, %s25_s18), 0  ;;  %p652_p4 = scmp.ge.s32.totalorder %s829_s16, 1 }
   0x7   : > { %p885_p3 = por %p125_p2, %p124_p1  ;;  %s110_s21 = ssub.s32 %s825_s15, %s964_s18 }
   0x8   : > { %p177_p5 = scmp.lt.s32.totalorder %s829_s16, 5  ;;  %p112_p6 = scmp.eq.s32.totalorder %s110_s21, 0 }
   0xa   : > { %p178_p7 = pnand %p652_p4, %p177_p5 }
   0xb   : > { %s894_s22 = scalar_select %p112_p6, %s817_s13, %s114_s19  }
   0xc   : > { %181 = sbr.rel (%p178_p7) target bundleno = 291 (0x123), region = 32  ;;  %p214_p8 = scmp.lt.s32.totalorder (!%p178_p7), %s821_s14, 3  ;;  %v831_v0 = vmov (!%p178_p7), 0.0   ;;  %vm832_vm0 = vmmov (!%p178_p7), 0   ;;  %vm404_vm1 = vcmask (!%p178_p7), 261120  }
   0xd   : > { %717 = vmatprep.subr.bf16.mxu1 (!%p178_p7), %v831_v0  ;;  %721 = vmatprep.mubr.msk.bf16.mxu1 (!%p178_p7), %vm832_vm0, %v831_v0  ;;  %s210_s8 = sand.u32 (!%p178_p7), 1, %s813_s12  }
   0xe   : > { %s653_s9 = sshll.u32 (!%p178_p7), %s210_s8, 3 }
   0xf   : > { %s212_s10 = scalar_lea.vmem (!%p178_p7), [#allocation2], %s653_s9 }
  0x13   : > { %s898_s23 = scalar_select %p214_p8, %s821_s14, 3 }
  0x14   : > { %s682_s11 = sshll.u32 (%p885_p3), %s821_s14, 2 }
  0x15   : > { %s726_s24 = smul.u32 144, %s898_s23  ;;  %s231_s7 = scalar_lea.vmem %s956_s2, %s898_s23 }
  0x16   : > { %s725_s28 = smul.u32 24, %s898_s23  ;;  %v656_v28 = vld [vmem:[%s231_s7] ss:$0 sm:$0xff]  ;;  %s513_s12 = scalar_lea.vmem (%p885_p3), %s957_s3, %s682_s11 }
  0x17   : > { %s904_s27 = scalar_lea.vmem %s955_s1, %s726_s24 }
  0x18   : > { %v769_v1 = vld [vmem:[%s904_s27 + $0x40] sm:$0xff]   ;;  %v771_v3 = vld [vmem:[%s904_s27 + $0x48] sm:$0xff]   ;;  %v773_v5 = vld [vmem:[%s904_s27 + $0x50] sm:$0xff]   ;;  %s222_s4 = scalar_lea.vmem %s954_s0, %s725_s28 }
  0x19   : > { %v770_v2 = vld [vmem:[%s904_s27] sm:$0xff]   ;;  %692 = vmatprep.subr.bf16.mxu0 %v769_v1  ;;  %v772_v4 = vld [vmem:[%s904_s27 + $0x8] sm:$0xff]   ;;  %v774_v6 = vld [vmem:[%s904_s27 + $0x10] sm:$0xff]  }
  0x1a   : > { %693 = vmatpush3.bf16.msra.mxu0 %v770_v2  ;;  %v775_v7 = vld [vmem:[%s904_s27 + $0x58] sm:$0xff]   ;;  %v777_v9 = vld [vmem:[%s904_s27 + $0x60] sm:$0xff]   ;;  %v779_v12 = vld [vmem:[%s904_s27 + $0x68] sm:$0xff]  }
  0x1b   : > { %694 = vmatprep.subr.bf16.mxu0 %v771_v3  ;;  %v776_v8 = vld [vmem:[%s904_s27 + $0x18] sm:$0xff]   ;;  %v783_v10 = vld [vmem:[%s904_s27 + $0x80] sm:$0xff]   ;;  %v780_v13 = vld [vmem:[%s904_s27 + $0x28] sm:$0xff]  }
  0x1c   : > { %v778_v11 = vld [vmem:[%s904_s27 + $0x20] sm:$0xff]   ;;  %718 = vmatpush3.bf16.msra.mxu1 %v783_v10  ;;  %v789_v15 = vld [vmem:[%s904_s27 + $0x88] sm:$0xff]   ;;  %v781_v16 = vld [vmem:[%s904_s27 + $0x70] sm:$0xff]  }
  0x1d   : > { %719 = vmatprep.subr.bf16.mxu1 %v831_v0  ;;  %v788_v14 = vld [vmem:[%s222_s4 + $0x4] ss:$12 sps:$4 sm:$0xff]   ;;  %v790_v17 = vld [vmem:[%s222_s4 + $0x8] ss:$12 sps:$4 sm:$0xff]   ;;  %v784_v19 = vld [vmem:[%s904_s27 + $0x78] sm:$0xff]  }
  0x1e   : > { %695 = vmatpush3.bf16.msra.mxu0 %v772_v4  ;;  %440 = vmatprep.mubr.bf16.mxu0 %v788_v14  ;;  %v782_v18 = vld [vmem:[%s904_s27 + $0x30] sm:$0xff]   ;;  %v785_v20 = vld [vmem:[%s904_s27 + $0x38] sm:$0xff]   ;;  %v786_v21 = vld [vmem:[%s222_s4] ss:$12 sps:$4 sm:$0xff]  }
  0x1f   : > { %696 = vmatprep.subr.bf16.mxu0 %v773_v5 }
  0x20   : > { %720 = vmatpush3.bf16.msra.mxu1 %v789_v15 }
  0x22   : > { %697 = vmatpush3.bf16.msra.mxu0 %v774_v6 }
  0x23   : > { %698 = vmatprep.subr.bf16.mxu0 %v775_v7  ;;  %722 = vmatmul.mubr.msk.bf16.vlgmr.msra.gmra.mrb[0].mxu1 %vm404_vm1, %v790_v17 }
  0x26   : > { %699 = vmatpush3.bf16.msra.mxu0 %v776_v8 }
  0x27   : > { %700 = vmatprep.subr.bf16.mxu0 %v777_v9 }
  0x2a   : > { %701 = vmatpush3.bf16.msra.mxu0 %v778_v11 }
  0x2b   : > { %702 = vmatprep.subr.bf16.mxu0 %v779_v12 }
  0x2e   : > { %703 = vmatpush3.bf16.msra.mxu0 %v780_v13 }
  0x2f   : > { %704 = vmatprep.subr.bf16.mxu0 %v781_v16 }
  0x32   : > { %705 = vmatpush3.bf16.msra.mxu0 %v782_v18 }
  0x33   : > { %706 = vmatprep.subr.bf16.mxu0 %v784_v19 }
  0x36   : > { %707 = vmatpush3.bf16.msra.mxu0 %v785_v20 }
  0x39   : > { %441 = vmatmul.mubr.bf16.vlgmr.msra.gmra.mrb[0].mxu0 %v786_v21 }
  0xf6   : > { %v483_v22 = vpop.f32.mrb[0].mxu1 }
  0xf7   : > { %v723_v23 = vpop.f32.mrb[1].mxu1 }
  0xf8   : > { %v486_v24 = vpop.f32.mrb[2].mxu1 }
  0xf9   : > { %v724_v25 = vpop.f32.mrb[3].mxu1 }
 0x10c   : > { %v708_v26 = vpop.f32.mrb[0].mxu0 }
 0x10d   : > { %v709_v27 = vpop.f32.mrb[1].mxu0 }
 0x10e   : > { %v710_v29 = vadd.f32 %v709_v27, %v708_v26  ;;  %v711_v30 = vpop.f32.mrb[2].mxu0 }
 0x10f   : > { %v712_v31 = vpop.f32.mrb[3].mxu0 }
 0x110   : > { %v443_v32 = vadd.f32 %v710_v29, %v656_v28  ;;  %v713_v33 = vadd.f32 %v712_v31, %v711_v30 }
 0x112   : > { %v484_v34 = vadd.f32 %v483_v22, %v443_v32  ;;  %v446_v35 = vadd.f32 %v713_v33, %v656_v28 }
 0x114   : > { %v487_v36 = vadd.f32 %v486_v24, %v446_v35  ;;  %v490_v37 = vmax.f32 %v484_v34, 0.0  ;;  %508 = sbr.rel (!%p885_p3) target bundleno = 291 (0x123), region = 36 }
 0x116   : > { %v491_v38 = vmax.f32 %v487_v36, 0.0 }
 0x118   : > { %v690_v39 = vpack.c.bf16 %v491_v38, %v490_v37 }
 0x11a   : > { %691 = vst [vmem:[%s212_s10] sm:$0xff] %v690_v39  }
 0x121   : > { %v529_v40 = vld [vmem:[%s212_s10] sm:$0xf]  ;;  %v531_v41 = vld [vmem:[%s212_s10 + $0x4] sm:$0xf] }
 0x122   : > { %530 = vst [vmem:[%s513_s12] sm:$0xf] %v529_v40  ;;  %532 = vst [vmem:[%s513_s12 + $0x10] sm:$0xf] %v531_v41 }
 0x123 PF: > { %s13_s16 = sadd.s32 1, %s829_s16   ;;  %s959_s12 = smov %s817_s13 }
 0x124   : > { %p10_p9 = scmp.ge.s32.totalorder %s13_s16, 6   ;;  %s960_s13 = smov %s894_s22 }
 0x125   : > { %s961_s14 = smov %s825_s15  ;;  %s962_s15 = smov %s964_s18 }
 0x126   :  { %12 = sbr.rel (!%p10_p9) target bundleno = 3 (0x3), region = 109 }

// kernel: _lambda_.37
= control target key start
LH: loop header
LB: loop body
LE: loop exit
PB: predicated region body
PF: predicated region fallthrough
CT: control target
= control target key end

     0   :  { %v532_v1 = vmov 0   ;;  %v353_v34 = vlaneseq  ;;  %s684_s1 = inlined_call_operand.vmem [shape: bf16[128,512], index: 1, kind: input, shape index: {}]   ;;  %s685_s0 = inlined_call_operand.vmem [shape: bf16[16,128], index: 0, kind: input, shape index: {}]   ;;  %s686_s2 = inlined_call_operand.vmem [shape: f32[1,512], index: 2, kind: input, shape index: {}]   ;;  %s687_s3 = inlined_call_operand.vmem [shape: bf16[16,512], index: 3, kind: input, shape index: {}]   ;;  %s688_s4 = inlined_call_operand.vmem [shape: bf16[16,512], index: 4, kind: output, shape index: {}]  }
   0x1   :  { %v483_v0 = vld [vmem:[%s684_s1 + $0x4] ss:$16 sps:$4 sm:$0xff]   ;;  %270 = vmatprep.mubr.bf16.mxu0 %v532_v1  ;;  %313 = vmatprep.mubr.bf16.mxu1 %v532_v1  ;;  %v485_v2 = vld [vmem:[%s684_s1 + $0xc] ss:$16 sps:$4 sm:$0xff]   ;;  %v487_v3 = vld [vmem:[%s684_s1] ss:$16 sps:$4 sm:$0xff]  }
   0x2   :  { %238 = vmatprep.subr.bf16.mxu0 %v483_v0  ;;  %v488_v4 = vld [vmem:[%s684_s1 + $0x8] ss:$16 sps:$4 sm:$0xff]   ;;  %281 = vmatprep.subr.bf16.mxu1 %v485_v2  ;;  %v489_v5 = vld [vmem:[%s684_s1 + $0x24] ss:$16 sps:$4 sm:$0xff]   ;;  %v491_v6 = vld [vmem:[%s684_s1 + $0x2c] ss:$16 sps:$4 sm:$0xff]  }
   0x3   :  { %239 = vmatpush1.bf16.msra.mxu0 %v487_v3  ;;  %282 = vmatpush1.bf16.msra.mxu1 %v488_v4  ;;  %v493_v7 = vld [vmem:[%s684_s1 + $0x20] ss:$16 sps:$4 sm:$0xff]   ;;  %v494_v8 = vld [vmem:[%s684_s1 + $0x28] ss:$16 sps:$4 sm:$0xff]   ;;  %v495_v9 = vld [vmem:[%s684_s1 + $0x44] ss:$16 sps:$4 sm:$0xff]  }
   0x4   :  { %240 = vmatprep.subr.bf16.mxu0 %v489_v5  ;;  %283 = vmatprep.subr.bf16.mxu1 %v491_v6  ;;  %v497_v10 = vld [vmem:[%s684_s1 + $0x4c] ss:$16 sps:$4 sm:$0xff]   ;;  %v499_v11 = vld [vmem:[%s684_s1 + $0x40] ss:$16 sps:$4 sm:$0xff]   ;;  %v500_v12 = vld [vmem:[%s684_s1 + $0x48] ss:$16 sps:$4 sm:$0xff]  }
   0x5   :  { %v501_v13 = vld [vmem:[%s684_s1 + $0x64] ss:$16 sps:$4 sm:$0xff]   ;;  %v503_v14 = vld [vmem:[%s684_s1 + $0x6c] ss:$16 sps:$4 sm:$0xff]   ;;  %v505_v15 = vld [vmem:[%s684_s1 + $0x60] ss:$16 sps:$4 sm:$0xff]  }
   0x6   :  { %v506_v16 = vld [vmem:[%s684_s1 + $0x68] ss:$16 sps:$4 sm:$0xff]   ;;  %v507_v17 = vld [vmem:[%s684_s1 + $0x84] ss:$16 sps:$4 sm:$0xff]   ;;  %v509_v18 = vld [vmem:[%s684_s1 + $0x8c] ss:$16 sps:$4 sm:$0xff]  }
   0x7   :  { %241 = vmatpush1.bf16.msra.mxu0 %v493_v7  ;;  %284 = vmatpush1.bf16.msra.mxu1 %v494_v8  ;;  %v511_v19 = vld [vmem:[%s684_s1 + $0x80] ss:$16 sps:$4 sm:$0xff]   ;;  %v512_v20 = vld [vmem:[%s684_s1 + $0x88] ss:$16 sps:$4 sm:$0xff]   ;;  %v513_v21 = vld [vmem:[%s684_s1 + $0xa4] ss:$16 sps:$4 sm:$0xff]  }
   0x8   :  { %242 = vmatprep.subr.bf16.mxu0 %v495_v9  ;;  %285 = vmatprep.subr.bf16.mxu1 %v497_v10  ;;  %v515_v22 = vld [vmem:[%s684_s1 + $0xac] ss:$16 sps:$4 sm:$0xff]   ;;  %v517_v23 = vld [vmem:[%s684_s1 + $0xa0] ss:$16 sps:$4 sm:$0xff]   ;;  %v518_v24 = vld [vmem:[%s684_s1 + $0xa8] ss:$16 sps:$4 sm:$0xff]  }
   0x9   :  { %v519_v25 = vld [vmem:[%s684_s1 + $0xc4] ss:$16 sps:$4 sm:$0xff]   ;;  %v521_v26 = vld [vmem:[%s684_s1 + $0xcc] ss:$16 sps:$4 sm:$0xff]   ;;  %v523_v27 = vld [vmem:[%s684_s1 + $0xc0] ss:$16 sps:$4 sm:$0xff]  }
   0xa   :  { %v524_v28 = vld [vmem:[%s684_s1 + $0xc8] ss:$16 sps:$4 sm:$0xff]   ;;  %v525_v29 = vld [vmem:[%s684_s1 + $0xe4] ss:$16 sps:$4 sm:$0xff]   ;;  %v527_v30 = vld [vmem:[%s684_s1 + $0xec] ss:$16 sps:$4 sm:$0xff]  }
   0xb   :  { %243 = vmatpush1.bf16.msra.mxu0 %v499_v11  ;;  %286 = vmatpush1.bf16.msra.mxu1 %v500_v12  ;;  %v529_v31 = vld [vmem:[%s684_s1 + $0xe0] ss:$16 sps:$4 sm:$0xff]   ;;  %v530_v32 = vld [vmem:[%s684_s1 + $0xe8] ss:$16 sps:$4 sm:$0xff]   ;;  %v354_v35 = vshrl.u32 %v353_v34, 7 }
   0xc   :  { %244 = vmatprep.subr.bf16.mxu0 %v501_v13  ;;  %287 = vmatprep.subr.bf16.mxu1 %v503_v14  ;;  %v531_v33 = vld [vmem:[%s685_s0] sm:$0xff]   ;;  %v382_v42 = vld [vmem:[%s687_s3 + $0x8] sm:$0xff]  ;;  %v383_v47 = vld [vmem:[%s687_s3 + $0x10] sm:$0xff] }
   0xd   :  { %v355_v36 = vsub.s32 0, %v354_v35  ;;  %v363_v37 = vsub.s32 2, %v354_v35  ;;  %v351_v38 = vld [vmem:[%s686_s2] sm:$0xf]  ;;  %v359_v39 = vsub.s32 1, %v354_v35  ;;  %v367_v40 = vsub.s32 3, %v354_v35 }
   0xe   :  { %v381_v41 = vld [vmem:[%s687_s3] sm:$0xff]  ;;  %v384_v48 = vld [vmem:[%s687_s3 + $0x18] sm:$0xff]  ;;  %v387_v50 = vunpack.c.l.bf16 %v382_v42  ;;  %v388_v54 = vunpack.c.h.bf16 %v382_v42  ;;  %v389_v59 = vunpack.c.l.bf16 %v383_v47  ;;  %v390_v1 = vunpack.c.h.bf16 %v383_v47 }
   0xf   :  { %245 = vmatpush1.bf16.msra.mxu0 %v505_v15  ;;  %288 = vmatpush1.bf16.msra.mxu1 %v506_v16  ;;  %v356_v43 = vrot.slane %v351_v38, %v355_v36  ;;  %v364_v44 = vrot.slane %v351_v38, %v363_v37  ;;  %v360_v45 = vrot.slane %v351_v38, %v359_v39  ;;  %v385_v49 = vunpack.c.l.bf16 %v381_v41 }
  0x10   :  { %246 = vmatprep.subr.bf16.mxu0 %v507_v17  ;;  %289 = vmatprep.subr.bf16.mxu1 %v509_v18  ;;  %v368_v46 = vrot.slane %v351_v38, %v367_v40  ;;  %v386_v53 = vunpack.c.h.bf16 %v381_v41  ;;  %v391_v60 = vunpack.c.l.bf16 %v384_v48  ;;  %v392_v2 = vunpack.c.h.bf16 %v384_v48 }
  0x13   :  { %247 = vmatpush1.bf16.msra.mxu0 %v511_v19  ;;  %290 = vmatpush1.bf16.msra.mxu1 %v512_v20 }
  0x14   :  { %248 = vmatprep.subr.bf16.mxu0 %v513_v21  ;;  %291 = vmatprep.subr.bf16.mxu1 %v515_v22 }
  0x17   :  { %249 = vmatpush1.bf16.msra.mxu0 %v517_v23  ;;  %292 = vmatpush1.bf16.msra.mxu1 %v518_v24 }
  0x18   :  { %250 = vmatprep.subr.bf16.mxu0 %v519_v25  ;;  %293 = vmatprep.subr.bf16.mxu1 %v521_v26 }
  0x1b   :  { %251 = vmatpush1.bf16.msra.mxu0 %v523_v27  ;;  %294 = vmatpush1.bf16.msra.mxu1 %v524_v28 }
  0x1c   :  { %252 = vmatprep.subr.bf16.mxu0 %v525_v29  ;;  %295 = vmatprep.subr.bf16.mxu1 %v527_v30 }
  0x1f   :  { %253 = vmatpush1.bf16.msra.mxu0 %v529_v31  ;;  %296 = vmatpush1.bf16.msra.mxu1 %v530_v32 }
  0x22   :  { %271 = vmatmul.mubr.bf16.vlgmr.msra.gmra.mrb[0].mxu0 %v531_v33  ;;  %314 = vmatmul.mubr.bf16.vlgmr.msra.gmra.mrb[0].mxu1 %v531_v33 }
  0xf5   :  { %v272_v51 = vpop.f32.mrb[0].mxu0  ;;  %v315_v52 = vpop.f32.mrb[0].mxu1 }
  0xf6   :  { %v373_v55 = vadd.f32 %v356_v43, %v272_v51  ;;  %v375_v56 = vadd.f32 %v364_v44, %v315_v52  ;;  %v274_v57 = vpop.f32.mrb[1].mxu0  ;;  %v317_v58 = vpop.f32.mrb[1].mxu1 }
  0xf7   :  { %v374_v61 = vadd.f32 %v360_v45, %v274_v57  ;;  %v376_v62 = vadd.f32 %v368_v46, %v317_v58  ;;  %v276_v63 = vpop.f32.mrb[2].mxu0  ;;  %v319_v0 = vpop.f32.mrb[2].mxu1 }
  0xf8   :  { %v393_v3 = vadd.f32 %v385_v49, %v373_v55  ;;  %v395_v4 = vadd.f32 %v387_v50, %v375_v56  ;;  %v377_v5 = vadd.f32 %v356_v43, %v276_v63  ;;  %v379_v6 = vadd.f32 %v364_v44, %v319_v0  ;;  %v278_v7 = vpop.f32.mrb[3].mxu0  ;;  %v321_v8 = vpop.f32.mrb[3].mxu1 }
  0xf9   :  { %v394_v9 = vadd.f32 %v386_v53, %v374_v61  ;;  %v396_v10 = vadd.f32 %v388_v54, %v376_v62  ;;  %v378_v11 = vadd.f32 %v360_v45, %v278_v7  ;;  %v380_v12 = vadd.f32 %v368_v46, %v321_v8 }
  0xfa   :  { %v401_v13 = vmax.f32 %v393_v3, 0.0  ;;  %v403_v14 = vmax.f32 %v395_v4, 0.0  ;;  %v397_v15 = vadd.f32 %v389_v59, %v377_v5  ;;  %v399_v16 = vadd.f32 %v391_v60, %v379_v6 }
  0xfb   :  { %v402_v17 = vmax.f32 %v394_v9, 0.0  ;;  %v404_v18 = vmax.f32 %v396_v10, 0.0  ;;  %v398_v19 = vadd.f32 %v390_v1, %v378_v11  ;;  %v400_v20 = vadd.f32 %v392_v2, %v380_v12 }
  0xfc   :  { %v405_v21 = vmax.f32 %v397_v15, 0.0  ;;  %v407_v22 = vmax.f32 %v399_v16, 0.0 }
  0xfd   :  { %v478_v23 = vpack.c.bf16 %v402_v17, %v401_v13  ;;  %v479_v24 = vpack.c.bf16 %v404_v18, %v403_v14  ;;  %v406_v25 = vmax.f32 %v398_v19, 0.0  ;;  %v408_v26 = vmax.f32 %v400_v20, 0.0 }
  0xff   :  { %433 = vst [vmem:[%s688_s4] sm:$0xff] %v478_v23  ;;  %434 = vst [vmem:[%s688_s4 + $0x8] sm:$0xff] %v479_v24  ;;  %v480_v27 = vpack.c.bf16 %v406_v25, %v405_v21  ;;  %v481_v28 = vpack.c.bf16 %v408_v26, %v407_v22 }
 0x101   :  { %435 = vst [vmem:[%s688_s4 + $0x10] sm:$0xff] %v480_v27  ;;  %436 = vst [vmem:[%s688_s4 + $0x18] sm:$0xff] %v481_v28 }

// kernel: _lambda_.39
= control target key start
LH: loop header
LB: loop body
LE: loop exit
PB: predicated region body
PF: predicated region fallthrough
CT: control target
= control target key end

     0   :  { %v663_v39 = vmov 0.0   ;;  %vm664_vm0 = vmmov 0   ;;  %s830_s1 = inlined_call_operand.vmem [shape: bf16[512,128], index: 1, kind: input, shape index: {}]   ;;  %s831_s0 = inlined_call_operand.vmem [shape: bf16[8,512], index: 0, kind: input, shape index: {}]   ;;  %s832_s3 = inlined_call_operand.vmem [shape: bf16[128,128], index: 3, kind: input, shape index: {}]   ;;  %s833_s2 = inlined_call_operand.vmem [shape: f32[1,128], index: 2, kind: input, shape index: {}]   ;;  %s834_s4 = inlined_call_operand.vmem [shape: f32[1,128], index: 4, kind: input, shape index: {}]   ;;  %s835_s5 = inlined_call_operand.vmem [shape: f32[8,128], index: 5, kind: output, shape index: {}]  }
   0x1   :  { %v619_v0 = vld [vmem:[%s830_s1 + $0x40] sm:$0xff]   ;;  %v623_v4 = vld [vmem:[%s830_s1 + $0x48] sm:$0xff]   ;;  %v627_v8 = vld [vmem:[%s830_s1 + $0x50] sm:$0xff]  }
   0x2   :  { %v620_v1 = vld [vmem:[%s830_s1 + $0xc0] sm:$0xff]   ;;  %544 = vmatprep.subr.bf16.mxu0 %v619_v0  ;;  %v624_v5 = vld [vmem:[%s830_s1 + $0xc8] sm:$0xff]   ;;  %v628_v9 = vld [vmem:[%s830_s1 + $0xd0] sm:$0xff]  }
   0x3   :  { %v621_v2 = vld [vmem:[%s830_s1] sm:$0xff]   ;;  %566 = vmatprep.subr.bf16.mxu1 %v620_v1  ;;  %v625_v6 = vld [vmem:[%s830_s1 + $0x8] sm:$0xff]   ;;  %v629_v10 = vld [vmem:[%s830_s1 + $0x10] sm:$0xff]  }
   0x4   :  { %v622_v3 = vld [vmem:[%s830_s1 + $0x80] sm:$0xff]   ;;  %545 = vmatpush3.bf16.msra.mxu0 %v621_v2  ;;  %v626_v7 = vld [vmem:[%s830_s1 + $0x88] sm:$0xff]   ;;  %v630_v11 = vld [vmem:[%s830_s1 + $0x90] sm:$0xff]  }
   0x5   :  { %567 = vmatpush3.bf16.msra.mxu1 %v622_v3  ;;  %546 = vmatprep.subr.bf16.mxu0 %v623_v4  ;;  %v631_v12 = vld [vmem:[%s830_s1 + $0x58] sm:$0xff]   ;;  %v635_v16 = vld [vmem:[%s830_s1 + $0x60] sm:$0xff]   ;;  %v639_v20 = vld [vmem:[%s830_s1 + $0x68] sm:$0xff]  }
   0x6   :  { %568 = vmatprep.subr.bf16.mxu1 %v624_v5  ;;  %v632_v13 = vld [vmem:[%s830_s1 + $0xd8] sm:$0xff]   ;;  %v636_v17 = vld [vmem:[%s830_s1 + $0xe0] sm:$0xff]   ;;  %v640_v21 = vld [vmem:[%s830_s1 + $0xe8] sm:$0xff]  }
   0x7   :  { %v633_v14 = vld [vmem:[%s830_s1 + $0x18] sm:$0xff]   ;;  %v637_v18 = vld [vmem:[%s830_s1 + $0x20] sm:$0xff]   ;;  %v641_v22 = vld [vmem:[%s830_s1 + $0x28] sm:$0xff]  }
   0x8   :  { %547 = vmatpush3.bf16.msra.mxu0 %v625_v6  ;;  %v634_v15 = vld [vmem:[%s830_s1 + $0x98] sm:$0xff]   ;;  %v638_v19 = vld [vmem:[%s830_s1 + $0xa0] sm:$0xff]   ;;  %v642_v23 = vld [vmem:[%s830_s1 + $0xa8] sm:$0xff]  }
   0x9   :  { %569 = vmatpush3.bf16.msra.mxu1 %v626_v7  ;;  %548 = vmatprep.subr.bf16.mxu0 %v627_v8  ;;  %v643_v24 = vld [vmem:[%s830_s1 + $0x70] sm:$0xff]   ;;  %v647_v28 = vld [vmem:[%s830_s1 + $0x78] sm:$0xff]   ;;  %v21_v32 = vld [vmem:[%s831_s0] sm:$0xff] }
   0xa   :  { %570 = vmatprep.subr.bf16.mxu1 %v628_v9  ;;  %v644_v25 = vld [vmem:[%s830_s1 + $0xf0] sm:$0xff]   ;;  %v648_v29 = vld [vmem:[%s830_s1 + $0xf8] sm:$0xff]   ;;  %v22_v33 = vld [vmem:[%s831_s0 + $0x8] sm:$0xff]  ;;  %v499_v34 = vcombine.low %v21_v32, %v21_v32  ;;  %v500_v35 = vcombine.high %v21_v32, %v21_v32 }
   0xb   :  { %v645_v26 = vld [vmem:[%s830_s1 + $0x30] sm:$0xff]   ;;  %v649_v30 = vld [vmem:[%s830_s1 + $0x38] sm:$0xff]   ;;  %v501_v36 = vcombine.low %v22_v33, %v22_v33  ;;  %v502_v37 = vcombine.high %v22_v33, %v22_v33  ;;  %v655_v38 = vld [vmem:[%s832_s3] sm:$0xff]  }
   0xc   :  { %549 = vmatpush3.bf16.msra.mxu0 %v629_v10  ;;  %v646_v27 = vld [vmem:[%s830_s1 + $0xb0] sm:$0xff]   ;;  %v650_v31 = vld [vmem:[%s830_s1 + $0xb8] sm:$0xff]   ;;  %332 = vmatprep.mubr.bf16.mxu0 %v500_v35  ;;  %v656_v40 = vld [vmem:[%s832_s3 + $0x8] sm:$0xff]  }
   0xd   :  { %571 = vmatpush3.bf16.msra.mxu1 %v630_v11  ;;  %550 = vmatprep.subr.bf16.mxu0 %v631_v12  ;;  %v657_v41 = vld [vmem:[%s832_s3 + $0x10] sm:$0xff]   ;;  %v658_v42 = vld [vmem:[%s832_s3 + $0x18] sm:$0xff]   ;;  %v659_v43 = vld [vmem:[%s832_s3 + $0x20] sm:$0xff]  }
   0xe   :  { %572 = vmatprep.subr.bf16.mxu1 %v632_v13  ;;  %372 = vmatprep.mubr.bf16.mxu1 %v502_v37  ;;  %v660_v44 = vld [vmem:[%s832_s3 + $0x28] sm:$0xff]   ;;  %v661_v45 = vld [vmem:[%s832_s3 + $0x30] sm:$0xff]   ;;  %v662_v46 = vld [vmem:[%s832_s3 + $0x38] sm:$0xff]  }
   0xf   :  { %v498_v49 = vld [vmem:[%s833_s2] ss:$0 sm:$0xff] }
  0x10   :  { %551 = vmatpush3.bf16.msra.mxu0 %v633_v14  ;;  %v535_v62 = vld [vmem:[%s834_s4] ss:$0 sm:$0xff] }
  0x11   :  { %573 = vmatpush3.bf16.msra.mxu1 %v634_v15  ;;  %552 = vmatprep.subr.bf16.mxu0 %v635_v16 }
  0x12   :  { %574 = vmatprep.subr.bf16.mxu1 %v636_v17 }
  0x14   :  { %553 = vmatpush3.bf16.msra.mxu0 %v637_v18 }
  0x15   :  { %575 = vmatpush3.bf16.msra.mxu1 %v638_v19  ;;  %554 = vmatprep.subr.bf16.mxu0 %v639_v20 }
  0x16   :  { %576 = vmatprep.subr.bf16.mxu1 %v640_v21 }
  0x18   :  { %555 = vmatpush3.bf16.msra.mxu0 %v641_v22 }
  0x19   :  { %577 = vmatpush3.bf16.msra.mxu1 %v642_v23  ;;  %556 = vmatprep.subr.bf16.mxu0 %v643_v24 }
  0x1a   :  { %578 = vmatprep.subr.bf16.mxu1 %v644_v25 }
  0x1c   :  { %557 = vmatpush3.bf16.msra.mxu0 %v645_v26 }
  0x1d   :  { %579 = vmatpush3.bf16.msra.mxu1 %v646_v27  ;;  %558 = vmatprep.subr.bf16.mxu0 %v647_v28 }
  0x1e   :  { %580 = vmatprep.subr.bf16.mxu1 %v648_v29 }
  0x20   :  { %559 = vmatpush3.bf16.msra.mxu0 %v649_v30 }
  0x21   :  { %581 = vmatpush3.bf16.msra.mxu1 %v650_v31  ;;  %597 = vmatprep.subr.bf16.mxu0 %v663_v39 }
  0x23   :  { %333 = vmatmul.mubr.bf16.vlgmr.msra.gmra.mrb[0].mxu0 %v499_v34 }
  0x24   :  { %373 = vmatmul.mubr.bf16.vlgmr.msra.gmra.mrb[0].mxu1 %v501_v36  ;;  %598 = vmatpush3.bf16.msra.mxu0 %v655_v38 }
  0x25   :  { %599 = vmatprep.subr.bf16.mxu0 %v663_v39  ;;  %613 = vmatprep.mubr.msk.bf16.mxu0 %vm664_vm0, %v663_v39 }
  0x28   :  { %600 = vmatpush3.bf16.msra.mxu0 %v656_v40 }
  0x29   :  { %601 = vmatprep.subr.bf16.mxu0 %v663_v39 }
  0x2c   :  { %602 = vmatpush3.bf16.msra.mxu0 %v657_v41 }
  0x2d   :  { %603 = vmatprep.subr.bf16.mxu0 %v663_v39 }
  0x30   :  { %604 = vmatpush3.bf16.msra.mxu0 %v658_v42 }
  0x31   :  { %605 = vmatprep.subr.bf16.mxu0 %v663_v39 }
  0x34   :  { %606 = vmatpush3.bf16.msra.mxu0 %v659_v43 }
  0x35   :  { %607 = vmatprep.subr.bf16.mxu0 %v663_v39 }
  0x38   :  { %608 = vmatpush3.bf16.msra.mxu0 %v660_v44 }
  0x39   :  { %609 = vmatprep.subr.bf16.mxu0 %v663_v39 }
  0x3c   :  { %610 = vmatpush3.bf16.msra.mxu0 %v661_v45 }
  0x3d   :  { %611 = vmatprep.subr.bf16.mxu0 %v663_v39 }
  0x40   :  { %612 = vmatpush3.bf16.msra.mxu0 %v662_v46 }
  0xf6   :  { %v560_v47 = vpop.f32.mrb[0].mxu0 }
  0xf7   :  { %v582_v48 = vpop.f32.mrb[0].mxu1  ;;  %v561_v50 = vpop.f32.mrb[1].mxu0 }
  0xf8   :  { %v583_v51 = vpop.f32.mrb[1].mxu1  ;;  %v562_v52 = vadd.f32 %v561_v50, %v560_v47  ;;  %v563_v54 = vpop.f32.mrb[2].mxu0 }
  0xf9   :  { %v584_v53 = vadd.f32 %v583_v51, %v582_v48  ;;  %v585_v55 = vpop.f32.mrb[2].mxu1  ;;  %v564_v56 = vpop.f32.mrb[3].mxu0 }
  0xfa   :  { %v586_v57 = vpop.f32.mrb[3].mxu1  ;;  %v335_v58 = vadd.f32 %v562_v52, %v498_v49 }
  0xfc   :  { %v375_v59 = vadd.f32 %v584_v53, %v335_v58 }
  0xfe   :  { %v380_v60 = vmax.f32 %v375_v59, 0.0 }
 0x100   :  { %v381_v61 = vpack.c.bf16 %v380_v60, %v380_v60 }
 0x102   :  { %614 = vmatmul.mubr.bf16.vlgmr.msra.gmra.mrb[4].mxu0 %v381_v61 }
 0x1d5   :  { %v487_v63 = vpop.f32.mrb[4].mxu0 }
 0x1d6   :  { %v488_v0 = vadd.f32 %v535_v62, %v487_v63  ;;  %v615_v1 = vpop.f32.mrb[5].mxu0 }
 0x1d7   :  { %v490_v2 = vpop.f32.mrb[6].mxu0 }
 0x1d8   :  { %493 = vst [vmem:[%s835_s5] sm:$0xff] %v488_v0  ;;  %v616_v3 = vpop.f32.mrb[7].mxu0 }

</bundles_post_ra>
